<compile_context>
chip_gen: v7x
topology: tpu7x:2x2x1
jax: 0.10.0
libtpu: 0.0.40
codegen_flags: <defaults>
</compile_context>

<pallas_src>
import functools

import numpy as np
import jax
import jax.numpy as jnp
from jax.experimental import pallas as pl
from jax.experimental.pallas import tpu as pltpu

LN_EPS = 1e-5  # PyTorch nn.LayerNorm default


# ------------------------------ kernel helpers --------------------------------
def _layernorm(x, gamma, beta):
    """LayerNorm over the last axis, computed in f32. gamma/beta are (1, C)."""
    x = x.astype(jnp.float32)
    mu = jnp.mean(x, axis=-1, keepdims=True)
    var = jnp.mean((x - mu) ** 2, axis=-1, keepdims=True)
    return (x - mu) * jax.lax.rsqrt(var + LN_EPS) * gamma + beta


def _token_tail(att, vq, wp_ref, bp_ref, g2_ref, b2_ref,
                w1_ref, bm1_ref, w2_ref, bm2_ref):
    """Proj + v-skip + MLP tail of the Token_transformer. att/vq are (TQ, D) f32."""
    bf16 = jnp.bfloat16
    proj = jnp.dot(att.astype(bf16), wp_ref[...],
                   preferred_element_type=jnp.float32) + bp_ref[...]
    y = vq + proj                                  # T2T "skip connection with v"
    yn = _layernorm(y, g2_ref[...], b2_ref[...]).astype(bf16)
    h = jnp.dot(yn, w1_ref[...], preferred_element_type=jnp.float32) + bm1_ref[...]
    # TODO(synk): PyTorch nn.GELU defaults to the exact erf form; the tanh
    # approximation is used here (lowers cleanly to the EUP).
    h = jax.nn.gelu(h, approximate=True)
    m = jnp.dot(h.astype(bf16), w2_ref[...],
                preferred_element_type=jnp.float32) + bm2_ref[...]
    return y + m                                   # (TQ, in_dim) f32


# -------------------- prologue: LayerNorm + QKV projection --------------------
def _qkv_kernel(x_ref, g1_ref, b1_ref, wq_ref, wk_ref, wv_ref,
                q_ref, k_ref, v_ref):
    """Once-per-token LN + QKV GEMMs (attention scale pre-folded into Wq)."""
    bf16 = jnp.bfloat16
    xn = _layernorm(x_ref[0], g1_ref[...], b1_ref[...]).astype(bf16)
    q_ref[0] = jnp.dot(xn, wq_ref[...],
                       preferred_element_type=jnp.float32).astype(bf16)
    k_ref[0] = jnp.dot(xn, wk_ref[...],
                       preferred_element_type=jnp.float32).astype(bf16)
    v_ref[0] = jnp.dot(xn, wv_ref[...],
                       preferred_element_type=jnp.float32).astype(bf16)


# -------------- main kernel, single-pass variant (TK == N) --------------------
def _attn_full_kernel(q_ref, k_ref, v_ref, vq_ref,
                      wp_ref, bp_ref, g2_ref, b2_ref,
                      w1_ref, bm1_ref, w2_ref, bm2_ref,
                      o_ref, *, transpose_out):
    bf16 = jnp.bfloat16
    s = jax.lax.dot_general(                      # (TQ, N); scale folded into q
        q_ref[0], k_ref[0], dimension_numbers=(((1,), (1,)), ((), ())),
        preferred_element_type=jnp.float32)
    m = jnp.max(s, axis=-1, keepdims=True)
    p = jnp.exp(s - m)
    l = jnp.sum(p, axis=-1, keepdims=True)
    att = jnp.dot(p.astype(bf16), v_ref[0],
                  preferred_element_type=jnp.float32) * pl.reciprocal(l, approx=True)
    out = _token_tail(att, vq_ref[0].astype(jnp.float32),
                      wp_ref, bp_ref, g2_ref, b2_ref,
                      w1_ref, bm1_ref, w2_ref, bm2_ref)
    if transpose_out:
        o_ref[0] = out.T.astype(o_ref.dtype)      # lane-dense (in_dim, TQ) store
    else:
        o_ref[0] = out.astype(o_ref.dtype)


# -------------- main kernel, flash (online-softmax) variant -------------------
def _attn_flash_kernel(q_ref, k_ref, v_ref, vq_ref,
                       wp_ref, bp_ref, g2_ref, b2_ref,
                       w1_ref, bm1_ref, w2_ref, bm2_ref,
                       o_ref,
                       acc_sc, m_sc, l_sc, *, transpose_out):
    bf16 = jnp.bfloat16
    ki = pl.program_id(2)

    @pl.when(ki == 0)
    def _init():
        m_sc[...] = jnp.full(m_sc.shape, -jnp.inf, m_sc.dtype)
        l_sc[...] = jnp.zeros(l_sc.shape, l_sc.dtype)
        acc_sc[...] = jnp.zeros(acc_sc.shape, acc_sc.dtype)

    s = jax.lax.dot_general(                      # (TQ, TK); scale folded into q
        q_ref[0], k_ref[0], dimension_numbers=(((1,), (1,)), ((), ())),
        preferred_element_type=jnp.float32)
    m_prev = m_sc[...]
    m_new = jnp.maximum(m_prev, jnp.max(s, axis=-1, keepdims=True))
    alpha = jnp.exp(m_prev - m_new)
    p = jnp.exp(s - m_new)
    l_sc[...] = alpha * l_sc[...] + jnp.sum(p, axis=-1, keepdims=True)
    acc_sc[...] = alpha * acc_sc[...] + jnp.dot(
        p.astype(bf16), v_ref[0], preferred_element_type=jnp.float32)
    m_sc[...] = m_new

    @pl.when(ki == pl.num_programs(2) - 1)
    def _finalize():
        att = acc_sc[...] * pl.reciprocal(l_sc[...], approx=True)
        out = _token_tail(att, vq_ref[0].astype(jnp.float32),
                          wp_ref, bp_ref, g2_ref, b2_ref,
                          w1_ref, bm1_ref, w2_ref, bm2_ref)
        if transpose_out:
            o_ref[0] = out.T.astype(o_ref.dtype)
        else:
            o_ref[0] = out.astype(o_ref.dtype)


# ------------------------------ wrapper utilities ------------------------------
def _unfold_3x3_s1_p1(x):
    """nn.Unfold(kernel=3, stride=1, padding=1) followed by .transpose(1, 2)."""
    # TODO(synk): could be fused into the QKV prologue via 9 shifted DMA windows
    # of the padded input to avoid materializing the 9x-expanded tensor in HBM.
    B, C, H, W = x.shape
    xp = jnp.pad(x, ((0, 0), (0, 0), (1, 1), (1, 1)))
    patches = [xp[:, :, kh:kh + H, kw:kw + W] for kh in range(3) for kw in range(3)]
    p = jnp.stack(patches, axis=2)                      # (B, C, 9, H, W), torch order
    return jnp.transpose(p.reshape(B, C * 9, H * W), (0, 2, 1))   # (B, N, 9*C)


def _vmem_capacity_bytes():
    try:
        return int(pltpu.get_tpu_info().vmem_capacity_bytes)
    except Exception:
        return 64 * 1024 * 1024        # conservative fallback (v7x per-TC size)


def _pick_tile(n, target):
    """Largest tile <= target dividing n; prefers multiples of 256, then 128, then 8."""
    t = min(target, n)
    for step in (256, 128, 8):
        c = (t // step) * step
        while c >= step:
            if n % c == 0:
                return c
            c -= step
    return n


def _attn_vmem_bytes(tq, tk, in_dim, hidden, out_bytes, weight_bytes):
    """Rough per-step VMEM footprint of the attention kernel (bytes)."""
    bf, f32 = 2, 4
    b = 2 * tq * in_dim * bf           # q (double-buffered)
    b += 2 * tq * in_dim * bf          # v of the query rows (skip connection)
    b += 2 * tk * in_dim * bf          # k
    b += 2 * tk * in_dim * bf          # v
    b += 2 * tq * in_dim * out_bytes   # output block
    b += weight_bytes                  # proj / LN / MLP parameters
    b += tq * in_dim * f32 + 2 * tq * f32        # flash scratch (acc, m, l)
    b += 3 * tq * tk * f32                       # score / exp temporaries
    b += 8 * tq * max(in_dim, hidden) * f32      # finalize temporaries
    return b


def _pick_key_tile(n, tq, in_dim, hidden, out_bytes, weight_bytes, budget):
    """Largest key tile (divisor of n) whose per-step footprint fits `budget`.
    Returns n itself (single-pass path) if the whole key axis fits."""
    cands = {n}
    for step in (256, 128, 8):
        cands.update(d for d in range(step, n, step) if n % d == 0)
    cands = sorted(cands, reverse=True)
    for tk in cands:
        if _attn_vmem_bytes(tq, tk, in_dim, hidden, out_bytes, weight_bytes) <= budget:
            return tk
    return cands[-1]


def _const_spec(shape, grid_rank):
    """BlockSpec for a constant (grid-invariant) operand, single-buffered."""
    zeros = (0,) * len(shape)
    index_map = (lambda b, i: zeros) if grid_rank == 2 else (lambda b, i, k: zeros)
    if hasattr(pl, "Buffered"):
        try:
            return pl.BlockSpec(shape, index_map, pipeline_mode=pl.Buffered(1))
        except TypeError:
            pass
    return pl.BlockSpec(shape, index_map)


# ---------------------------------- forward ------------------------------------
def t2t_module4_forward(x, params, pos=None, *, qk_scale=None,
                        tile_q=256, tile_n=512, max_tile_k=None, out_dtype=None):
    """Fused Pallas forward of T2T_module4: (B, C_in, H, W) -> (B, embed_dim, H, W)."""
    B, C_in, H, W = x.shape
    N = H * W
    dim = 9 * C_in
    in_dim = params["wq"].shape[1]
    hidden = params["w1"].shape[1]
    bf16 = jnp.bfloat16
    out_dt = x.dtype if out_dtype is None else out_dtype

    # Attention scale (num_heads=1).
    # TODO(synk): upstream T2T-ViT derives the scale from dim // num_heads; pass
    # qk_scale=dim**-0.5 to reproduce that variant exactly.
    scale = float(qk_scale) if qk_scale is not None else float(in_dim) ** -0.5

    tokens = _unfold_3x3_s1_p1(x)                 # (B, N, dim)
    if pos is not None:
        # TODO(synk): Token_transformer source not provided; assuming additive pos.
        tokens = tokens + pos
    tokens = tokens.astype(bf16)                  # halve unfold-intermediate HBM traffic

    # Weights in bf16; attention scale folded into Wq (no per-step multiply).
    wq = (params["wq"] * scale).astype(bf16)
    wk = params["wk"].astype(bf16)
    wv = params["wv"].astype(bf16)
    wp = params["wp"].astype(bf16)
    w1 = params["w1"].astype(bf16)
    w2 = params["w2"].astype(bf16)

    vmem_limit = int(0.75 * _vmem_capacity_bytes())

    # ---------------- prologue: LN + QKV projection, once per token -------------
    TN = _pick_tile(N, tile_n)
    q, k, v = pl.pallas_call(
        _qkv_kernel,
        out_shape=(jax.ShapeDtypeStruct((B, N, in_dim), bf16),
                   jax.ShapeDtypeStruct((B, N, in_dim), bf16),
                   jax.ShapeDtypeStruct((B, N, in_dim), bf16)),
        grid_spec=pltpu.PrefetchScalarGridSpec(
            num_scalar_prefetch=0,
            grid=(B, N // TN),
            in_specs=[
                pl.BlockSpec((1, TN, dim), lambda b, i: (b, i, 0)),
                _const_spec((1, dim), 2), _const_spec((1, dim), 2),
                _const_spec((dim, in_dim), 2),
                _const_spec((dim, in_dim), 2),
                _const_spec((dim, in_dim), 2),
            ],
            out_specs=[pl.BlockSpec((1, TN, in_dim), lambda b, i: (b, i, 0))] * 3,
        ),
        compiler_params=pltpu.CompilerParams(
            dimension_semantics=("parallel", "parallel"),
            vmem_limit_bytes=vmem_limit,
        ),
    )(tokens, params["g1"], params["b1"], wq, wk, wv)

    # ---------------- main: attention + proj + v-skip + MLP ---------------------
    TQ = _pick_tile(N, tile_q)
    transpose_out = (TQ % 128 == 0) and (in_dim % 8 == 0)

    weight_bytes = (2 * 2 * (in_dim * in_dim + 2 * in_dim * hidden)
                    + 2 * 4 * (4 * in_dim + hidden))
    out_bytes = np.dtype(out_dt).itemsize
    budget = int(0.7 * vmem_limit)
    TK = _pick_key_tile(N, TQ, in_dim, hidden, out_bytes, weight_bytes, budget)
    if max_tile_k is not None:
        TK = min(TK, _pick_tile(N, max_tile_k))
    n_k_steps = N // TK
    grid_rank = 2 if n_k_steps == 1 else 3

    weight_args = (wp, params["bp"], params["g2"], params["b2"],
                   w1, params["bm1"], w2, params["bm2"])
    weight_shapes = [(in_dim, in_dim), (1, in_dim), (1, in_dim), (1, in_dim),
                     (in_dim, hidden), (1, hidden), (hidden, in_dim), (1, in_dim)]
    weight_specs = [_const_spec(s, grid_rank) for s in weight_shapes]

    if transpose_out:
        out_shape = jax.ShapeDtypeStruct((B, in_dim, N), out_dt)
    else:
        out_shape = jax.ShapeDtypeStruct((B, N, in_dim), out_dt)

    if n_k_steps == 1:
        # Full-row softmax per query tile (no online-softmax rescale work).
        qmap = lambda b, qi: (b, qi, 0)
        kmap = lambda b, qi: (b, 0, 0)
        in_specs = [pl.BlockSpec((1, TQ, in_dim), qmap),
                    pl.BlockSpec((1, N, in_dim), kmap),
                    pl.BlockSpec((1, N, in_dim), kmap),
                    pl.BlockSpec((1, TQ, in_dim), qmap),
                    *weight_specs]
        out_spec = (pl.BlockSpec((1, in_dim, TQ), lambda b, qi: (b, 0, qi))
                    if transpose_out else pl.BlockSpec((1, TQ, in_dim), qmap))
        kernel = functools.partial(_attn_full_kernel, transpose_out=transpose_out)
        grid = (B, N // TQ)
        scratch = []
        dims = ("parallel", "parallel")
    else:
        # Flash-style online softmax over key tiles.
        qmap = lambda b, qi, ki: (b, qi, 0)
        kmap = lambda b, qi, ki: (b, ki, 0)
        in_specs = [pl.BlockSpec((1, TQ, in_dim), qmap),
                    pl.BlockSpec((1, TK, in_dim), kmap),
                    pl.BlockSpec((1, TK, in_dim), kmap),
                    pl.BlockSpec((1, TQ, in_dim), qmap),
                    *weight_specs]
        out_spec = (pl.BlockSpec((1, in_dim, TQ), lambda b, qi, ki: (b, 0, qi))
                    if transpose_out else pl.BlockSpec((1, TQ, in_dim), qmap))
        kernel = functools.partial(_attn_flash_kernel, transpose_out=transpose_out)
        grid = (B, N // TQ, n_k_steps)
        scratch = [pltpu.VMEM((TQ, in_dim), jnp.float32),   # online-softmax accumulator
                   pltpu.VMEM((TQ, 1), jnp.float32),        # running max
                   pltpu.VMEM((TQ, 1), jnp.float32)]        # running sum
        dims = ("parallel", "parallel", "arbitrary")

    out = pl.pallas_call(
        kernel,
        out_shape=out_shape,
        grid_spec=pltpu.PrefetchScalarGridSpec(
            num_scalar_prefetch=0,
            grid=grid,
            in_specs=in_specs,
            out_specs=out_spec,
            scratch_shapes=scratch,
        ),
        compiler_params=pltpu.CompilerParams(
            dimension_semantics=dims,
            vmem_limit_bytes=vmem_limit,
        ),
    )(q, k, v, v, *weight_args)

    if transpose_out:
        return out.reshape(B, in_dim, H, W)                 # free reshape
    return jnp.transpose(out, (0, 2, 1)).reshape(B, in_dim, H, W)


# ---------------- pure-JAX reference (for correctness check) -------------------
def _ref_forward(x, params, pos=None, *, qk_scale=None):
    B, C_in, H, W = x.shape
    tokens = _unfold_3x3_s1_p1(x)
    if pos is not None:
        tokens = tokens + pos
    in_dim = params["wq"].shape[1]
    scale = float(qk_scale) if qk_scale is not None else float(in_dim) ** -0.5

    xn = _layernorm(tokens, params["g1"], params["b1"])
    q = xn @ params["wq"]
    k = xn @ params["wk"]
    v = xn @ params["wv"]
    attn = jax.nn.softmax(jnp.einsum("bqd,bkd->bqk", q, k) * scale, axis=-1)
    o = jnp.einsum("bqk,bkd->bqd", attn, v) @ params["wp"] + params["bp"]
    y = v + o                                               # T2T skip connection with v
    h = jax.nn.gelu(_layernorm(y, params["g2"], params["b2"]) @ params["w1"]
                    + params["bm1"], approximate=True)
    y = y + (h @ params["w2"] + params["bm2"])
    return jnp.transpose(y, (0, 2, 1)).reshape(B, in_dim, H, W)


# ------------------------------- params -----------------------------------------
def init_token_transformer_params(key, dim, in_dim, mlp_ratio=1.0):
    """wq/wk/wv are the (dim, in_dim) column blocks of the PyTorch qkv Linear
    (dim -> 3*in_dim, bias=False), stored input-major (x @ W)."""
    hidden = int(in_dim * mlp_ratio)
    ks = jax.random.split(key, 6)
    f32 = jnp.float32
    return {
        "g1": jnp.ones((1, dim), f32), "b1": jnp.zeros((1, dim), f32),
        "wq": 0.02 * jax.random.normal(ks[0], (dim, in_dim), f32),
        "wk": 0.02 * jax.random.normal(ks[1], (dim, in_dim), f32),
        "wv": 0.02 * jax.random.normal(ks[2], (dim, in_dim), f32),
        "wp": 0.02 * jax.random.normal(ks[3], (in_dim, in_dim), f32),
        "bp": jnp.zeros((1, in_dim), f32),
        "g2": jnp.ones((1, in_dim), f32), "b2": jnp.zeros((1, in_dim), f32),
        "w1": 0.02 * jax.random.normal(ks[4], (in_dim, hidden), f32),
        "bm1": jnp.zeros((1, hidden), f32),
        "w2": 0.02 * jax.random.normal(ks[5], (hidden, in_dim), f32),
        "bm2": jnp.zeros((1, in_dim), f32),
    }


if __name__ == "__main__":
    # Small shapes consistent with the module: batch=2, in_chans=4, 16x16 image,
    # embed_dim=128 (real model: in_chans=3, 224x224, embed_dim=768).
    B, C_IN, H, W = 2, 4, 16, 16
    EMBED_DIM = 128
    DIM = 9 * C_IN

    root = jax.random.PRNGKey(0)
    kx, kp = jax.random.split(root)
    x = jax.random.normal(kx, (B, C_IN, H, W), jnp.float32)
    params = init_token_transformer_params(kp, DIM, EMBED_DIM, mlp_ratio=1.0)

    ref = jax.block_until_ready(_ref_forward(x, params))

    # Single-pass (TK == N) path.
    fwd = jax.jit(t2t_module4_forward)
    out = jax.block_until_ready(fwd(x, params))
    assert out.shape == (B, EMBED_DIM, H, W), out.shape
    err = float(jnp.max(jnp.abs(out - ref)))
    assert err < 2e-2, f"full-softmax path mismatch vs. JAX reference: {err}"

    # Flash (multi key-tile) path, exercised by capping the key tile.
    fwd_flash = jax.jit(functools.partial(t2t_module4_forward,
                                          tile_q=128, max_tile_k=128))
    out2 = jax.block_until_ready(fwd_flash(x, params))
    err2 = float(jnp.max(jnp.abs(out2 - ref)))
    assert err2 < 2e-2, f"flash path mismatch vs. JAX reference: {err2}"

    print("KERNEL_OK")
</pallas_src>

<mosaic_0001>
module attributes {stable_mosaic.version = 11 : i64} {
  func.func @_qkv_kernel(%arg0: i32, %arg1: i32, %arg2: memref<1x256x36xbf16, #tpu.memory_space<vmem>>, %arg3: memref<1x36xf32, #tpu.memory_space<vmem>>, %arg4: memref<1x36xf32, #tpu.memory_space<vmem>>, %arg5: memref<36x128xbf16, #tpu.memory_space<vmem>>, %arg6: memref<36x128xbf16, #tpu.memory_space<vmem>>, %arg7: memref<36x128xbf16, #tpu.memory_space<vmem>>, %arg8: memref<1x256x128xbf16, #tpu.memory_space<vmem>>, %arg9: memref<1x256x128xbf16, #tpu.memory_space<vmem>>, %arg10: memref<1x256x128xbf16, #tpu.memory_space<vmem>>) attributes {dimension_semantics = [#tpu.dimension_semantics<parallel>, #tpu.dimension_semantics<parallel>], iteration_bounds = array<i64: 2, 1>, scalar_prefetch = 0 : i64, scratch_operands = 0 : i64, tpu.core_type = #tpu.core_type<tc>, window_params = [{transform_indices = @transform_0, window_bounds = array<i64: 1, 256, 36>}, {pipeline_mode = #tpu.pipeline_mode<synchronous>, transform_indices = @transform_1, window_bounds = array<i64: 1, 36>}, {pipeline_mode = #tpu.pipeline_mode<synchronous>, transform_indices = @transform_2, window_bounds = array<i64: 1, 36>}, {pipeline_mode = #tpu.pipeline_mode<synchronous>, transform_indices = @transform_3, window_bounds = array<i64: 36, 128>}, {pipeline_mode = #tpu.pipeline_mode<synchronous>, transform_indices = @transform_4, window_bounds = array<i64: 36, 128>}, {pipeline_mode = #tpu.pipeline_mode<synchronous>, transform_indices = @transform_5, window_bounds = array<i64: 36, 128>}, {transform_indices = @transform_6, window_bounds = array<i64: 1, 256, 128>}, {transform_indices = @transform_7, window_bounds = array<i64: 1, 256, 128>}, {transform_indices = @transform_8, window_bounds = array<i64: 1, 256, 128>}]} {
    %c0 = arith.constant 0 : index
    %c0_0 = arith.constant 0 : index
    %c0_1 = arith.constant 0 : index
    %0 = vector.load %arg2[%c0, %c0_0, %c0_1] : memref<1x256x36xbf16, #tpu.memory_space<vmem>>, vector<1x256x36xbf16>
    %1 = vector.shape_cast %0 : vector<1x256x36xbf16> to vector<256x36xbf16>
    %c0_2 = arith.constant 0 : index
    %c0_3 = arith.constant 0 : index
    %2 = vector.load %arg3[%c0_2, %c0_3] : memref<1x36xf32, #tpu.memory_space<vmem>>, vector<1x36xf32>
    %c0_4 = arith.constant 0 : index
    %c0_5 = arith.constant 0 : index
    %3 = vector.load %arg4[%c0_4, %c0_5] : memref<1x36xf32, #tpu.memory_space<vmem>>, vector<1x36xf32>
    %4 = arith.extf %1 : vector<256x36xbf16> to vector<256x36xf32>
    %cst = arith.constant dense<0.000000e+00> : vector<256xf32>
    %5 = vector.multi_reduction <add>, %4, %cst [1] : vector<256x36xf32> to vector<256xf32>
    %6 = vector.shape_cast %5 : vector<256xf32> to vector<256x1xf32>
    %cst_6 = arith.constant 3.600000e+01 : f32
    %7 = vector.broadcast %cst_6 : f32 to vector<256x1xf32>
    %8 = arith.divf %6, %7 : vector<256x1xf32>
    %9 = vector.broadcast %8 : vector<256x1xf32> to vector<256x36xf32>
    %10 = arith.subf %4, %9 : vector<256x36xf32>
    %11 = arith.mulf %10, %10 : vector<256x36xf32>
    %cst_7 = arith.constant dense<0.000000e+00> : vector<256xf32>
    %12 = vector.multi_reduction <add>, %11, %cst_7 [1] : vector<256x36xf32> to vector<256xf32>
    %13 = vector.shape_cast %12 : vector<256xf32> to vector<256x1xf32>
    %cst_8 = arith.constant 3.600000e+01 : f32
    %14 = vector.broadcast %cst_8 : f32 to vector<256x1xf32>
    %15 = arith.divf %13, %14 : vector<256x1xf32>
    %16 = vector.broadcast %8 : vector<256x1xf32> to vector<256x36xf32>
    %17 = arith.subf %4, %16 : vector<256x36xf32>
    %cst_9 = arith.constant 9.99999974E-6 : f32
    %18 = vector.broadcast %cst_9 : f32 to vector<256x1xf32>
    %19 = arith.addf %15, %18 : vector<256x1xf32>
    %20 = math.rsqrt %19 : vector<256x1xf32>
    %21 = vector.broadcast %20 : vector<256x1xf32> to vector<256x36xf32>
    %22 = arith.mulf %17, %21 : vector<256x36xf32>
    %23 = vector.broadcast %2 : vector<1x36xf32> to vector<256x36xf32>
    %24 = arith.mulf %22, %23 : vector<256x36xf32>
    %25 = vector.broadcast %3 : vector<1x36xf32> to vector<256x36xf32>
    %26 = arith.addf %24, %25 : vector<256x36xf32>
    %27 = arith.truncf %26 : vector<256x36xf32> to vector<256x36xbf16>
    %c0_10 = arith.constant 0 : index
    %c0_11 = arith.constant 0 : index
    %28 = vector.load %arg5[%c0_10, %c0_11] : memref<36x128xbf16, #tpu.memory_space<vmem>>, vector<36x128xbf16>
    %cst_12 = arith.constant dense<0.000000e+00> : vector<256x128xf32>
    %29 = tpu.matmul %27, %28, %cst_12 {dimension_numbers = #tpu.dot_dimension_numbers<[1], [0], [0], [1], [0, 0, 1, 1], [], []>} : vector<256x36xbf16>, vector<36x128xbf16>, vector<256x128xf32> -> vector<256x128xf32>
    %30 = arith.truncf %29 : vector<256x128xf32> to vector<256x128xbf16>
    %c0_13 = arith.constant 0 : index
    %c0_14 = arith.constant 0 : index
    %c0_15 = arith.constant 0 : index
    %31 = vector.load %arg8[%c0_13, %c0_14, %c0_15] : memref<1x256x128xbf16, #tpu.memory_space<vmem>>, vector<1x256x128xbf16>
    %32 = vector.shape_cast %31 : vector<1x256x128xbf16> to vector<256x128xbf16>
    %33 = vector.shape_cast %30 : vector<256x128xbf16> to vector<1x256x128xbf16>
    tpu.vector_store %arg8[%c0_13, %c0_14, %c0_15], %33 {strides = array<i32>} : memref<1x256x128xbf16, #tpu.memory_space<vmem>>, vector<1x256x128xbf16>,
    %c0_16 = arith.constant 0 : index
    %c0_17 = arith.constant 0 : index
    %34 = vector.load %arg6[%c0_16, %c0_17] : memref<36x128xbf16, #tpu.memory_space<vmem>>, vector<36x128xbf16>
    %cst_18 = arith.constant dense<0.000000e+00> : vector<256x128xf32>
    %35 = tpu.matmul %27, %34, %cst_18 {dimension_numbers = #tpu.dot_dimension_numbers<[1], [0], [0], [1], [0, 0, 1, 1], [], []>} : vector<256x36xbf16>, vector<36x128xbf16>, vector<256x128xf32> -> vector<256x128xf32>
    %36 = arith.truncf %35 : vector<256x128xf32> to vector<256x128xbf16>
    %c0_19 = arith.constant 0 : index
    %c0_20 = arith.constant 0 : index
    %c0_21 = arith.constant 0 : index
    %37 = vector.load %arg9[%c0_19, %c0_20, %c0_21] : memref<1x256x128xbf16, #tpu.memory_space<vmem>>, vector<1x256x128xbf16>
    %38 = vector.shape_cast %37 : vector<1x256x128xbf16> to vector<256x128xbf16>
    %39 = vector.shape_cast %36 : vector<256x128xbf16> to vector<1x256x128xbf16>
    tpu.vector_store %arg9[%c0_19, %c0_20, %c0_21], %39 {strides = array<i32>} : memref<1x256x128xbf16, #tpu.memory_space<vmem>>, vector<1x256x128xbf16>,
    %c0_22 = arith.constant 0 : index
    %c0_23 = arith.constant 0 : index
    %40 = vector.load %arg7[%c0_22, %c0_23] : memref<36x128xbf16, #tpu.memory_space<vmem>>, vector<36x128xbf16>
    %cst_24 = arith.constant dense<0.000000e+00> : vector<256x128xf32>
    %41 = tpu.matmul %27, %40, %cst_24 {dimension_numbers = #tpu.dot_dimension_numbers<[1], [0], [0], [1], [0, 0, 1, 1], [], []>} : vector<256x36xbf16>, vector<36x128xbf16>, vector<256x128xf32> -> vector<256x128xf32>
    %42 = arith.truncf %41 : vector<256x128xf32> to vector<256x128xbf16>
    %c0_25 = arith.constant 0 : index
    %c0_26 = arith.constant 0 : index
    %c0_27 = arith.constant 0 : index
    %43 = vector.load %arg10[%c0_25, %c0_26, %c0_27] : memref<1x256x128xbf16, #tpu.memory_space<vmem>>, vector<1x256x128xbf16>
    %44 = vector.shape_cast %43 : vector<1x256x128xbf16> to vector<256x128xbf16>
    %45 = vector.shape_cast %42 : vector<256x128xbf16> to vector<1x256x128xbf16>
    tpu.vector_store %arg10[%c0_25, %c0_26, %c0_27], %45 {strides = array<i32>} : memref<1x256x128xbf16, #tpu.memory_space<vmem>>, vector<1x256x128xbf16>,
    return
  }
  func.func @transform_0(%arg0: i32, %arg1: i32) -> (i32, i32, i32) {
    %c0_i32 = arith.constant 0 : i32
    %c0_i32_0 = arith.constant 0 : i32
    return %arg0, %arg1, %c0_i32 : i32, i32, i32
  }
  func.func @transform_1(%arg0: i32, %arg1: i32) -> (i32, i32) {
    %c0_i32 = arith.constant 0 : i32
    %c0_i32_0 = arith.constant 0 : i32
    %c0_i32_1 = arith.constant 0 : i32
    return %c0_i32, %c0_i32_0 : i32, i32
  }
  func.func @transform_2(%arg0: i32, %arg1: i32) -> (i32, i32) {
    %c0_i32 = arith.constant 0 : i32
    %c0_i32_0 = arith.constant 0 : i32
    %c0_i32_1 = arith.constant 0 : i32
    return %c0_i32, %c0_i32_0 : i32, i32
  }
  func.func @transform_3(%arg0: i32, %arg1: i32) -> (i32, i32) {
    %c0_i32 = arith.constant 0 : i32
    %c0_i32_0 = arith.constant 0 : i32
    %c0_i32_1 = arith.constant 0 : i32
    return %c0_i32, %c0_i32_0 : i32, i32
  }
  func.func @transform_4(%arg0: i32, %arg1: i32) -> (i32, i32) {
    %c0_i32 = arith.constant 0 : i32
    %c0_i32_0 = arith.constant 0 : i32
    %c0_i32_1 = arith.constant 0 : i32
    return %c0_i32, %c0_i32_0 : i32, i32
  }
  func.func @transform_5(%arg0: i32, %arg1: i32) -> (i32, i32) {
    %c0_i32 = arith.constant 0 : i32
    %c0_i32_0 = arith.constant 0 : i32
    %c0_i32_1 = arith.constant 0 : i32
    return %c0_i32, %c0_i32_0 : i32, i32
  }
  func.func @transform_6(%arg0: i32, %arg1: i32) -> (i32, i32, i32) {
    %c0_i32 = arith.constant 0 : i32
    %c0_i32_0 = arith.constant 0 : i32
    return %arg0, %arg1, %c0_i32 : i32, i32, i32
  }
  func.func @transform_7(%arg0: i32, %arg1: i32) -> (i32, i32, i32) {
    %c0_i32 = arith.constant 0 : i32
    %c0_i32_0 = arith.constant 0 : i32
    return %arg0, %arg1, %c0_i32 : i32, i32, i32
  }
  func.func @transform_8(%arg0: i32, %arg1: i32) -> (i32, i32, i32) {
    %c0_i32 = arith.constant 0 : i32
    %c0_i32_0 = arith.constant 0 : i32
    return %arg0, %arg1, %c0_i32 : i32, i32, i32
  }
}

module attributes {stable_mosaic.version = 11 : i64} {
  func.func @_attn_full_kernel(%arg0: i32, %arg1: i32, %arg2: memref<1x256x128xbf16, #tpu.memory_space<vmem>>, %arg3: memref<1x256x128xbf16, #tpu.memory_space<vmem>>, %arg4: memref<1x256x128xbf16, #tpu.memory_space<vmem>>, %arg5: memref<1x256x128xbf16, #tpu.memory_space<vmem>>, %arg6: memref<128x128xbf16, #tpu.memory_space<vmem>>, %arg7: memref<1x128xf32, #tpu.memory_space<vmem>>, %arg8: memref<1x128xf32, #tpu.memory_space<vmem>>, %arg9: memref<1x128xf32, #tpu.memory_space<vmem>>, %arg10: memref<128x128xbf16, #tpu.memory_space<vmem>>, %arg11: memref<1x128xf32, #tpu.memory_space<vmem>>, %arg12: memref<128x128xbf16, #tpu.memory_space<vmem>>, %arg13: memref<1x128xf32, #tpu.memory_space<vmem>>, %arg14: memref<1x128x256xf32, #tpu.memory_space<vmem>>) attributes {dimension_semantics = [#tpu.dimension_semantics<parallel>, #tpu.dimension_semantics<parallel>], iteration_bounds = array<i64: 2, 1>, scalar_prefetch = 0 : i64, scratch_operands = 0 : i64, tpu.core_type = #tpu.core_type<tc>, window_params = [{transform_indices = @transform_0, window_bounds = array<i64: 1, 256, 128>}, {transform_indices = @transform_1, window_bounds = array<i64: 1, 256, 128>}, {transform_indices = @transform_2, window_bounds = array<i64: 1, 256, 128>}, {transform_indices = @transform_3, window_bounds = array<i64: 1, 256, 128>}, {pipeline_mode = #tpu.pipeline_mode<synchronous>, transform_indices = @transform_4, window_bounds = array<i64: 128, 128>}, {pipeline_mode = #tpu.pipeline_mode<synchronous>, transform_indices = @transform_5, window_bounds = array<i64: 1, 128>}, {pipeline_mode = #tpu.pipeline_mode<synchronous>, transform_indices = @transform_6, window_bounds = array<i64: 1, 128>}, {pipeline_mode = #tpu.pipeline_mode<synchronous>, transform_indices = @transform_7, window_bounds = array<i64: 1, 128>}, {pipeline_mode = #tpu.pipeline_mode<synchronous>, transform_indices = @transform_8, window_bounds = array<i64: 128, 128>}, {pipeline_mode = #tpu.pipeline_mode<synchronous>, transform_indices = @transform_9, window_bounds = array<i64: 1, 128>}, {pipeline_mode = #tpu.pipeline_mode<synchronous>, transform_indices = @transform_10, window_bounds = array<i64: 128, 128>}, {pipeline_mode = #tpu.pipeline_mode<synchronous>, transform_indices = @transform_11, window_bounds = array<i64: 1, 128>}, {transform_indices = @transform_12, window_bounds = array<i64: 1, 128, 256>}]} {
    %c0 = arith.constant 0 : index
    %c0_0 = arith.constant 0 : index
    %c0_1 = arith.constant 0 : index
    %0 = vector.load %arg2[%c0, %c0_0, %c0_1] : memref<1x256x128xbf16, #tpu.memory_space<vmem>>, vector<1x256x128xbf16>
    %1 = vector.shape_cast %0 : vector<1x256x128xbf16> to vector<256x128xbf16>
    %c0_2 = arith.constant 0 : index
    %c0_3 = arith.constant 0 : index
    %c0_4 = arith.constant 0 : index
    %2 = vector.load %arg3[%c0_2, %c0_3, %c0_4] : memref<1x256x128xbf16, #tpu.memory_space<vmem>>, vector<1x256x128xbf16>
    %3 = vector.shape_cast %2 : vector<1x256x128xbf16> to vector<256x128xbf16>
    %cst = arith.constant dense<0.000000e+00> : vector<256x256xf32>
    %4 = tpu.matmul %1, %3, %cst {dimension_numbers = #tpu.dot_dimension_numbers<[1], [1], [0], [0], [0, 0, 1, 0], [], []>} : vector<256x128xbf16>, vector<256x128xbf16>, vector<256x256xf32> -> vector<256x256xf32>
    %cst_5 = arith.constant dense<0xFF800000> : vector<256xf32>
    %5 = vector.multi_reduction <maximumf>, %4, %cst_5 [1] : vector<256x256xf32> to vector<256xf32>
    %6 = vector.shape_cast %5 : vector<256xf32> to vector<256x1xf32>
    %7 = vector.broadcast %6 : vector<256x1xf32> to vector<256x256xf32>
    %8 = arith.subf %4, %7 : vector<256x256xf32>
    %9 = math.exp %8 : vector<256x256xf32>
    %cst_6 = arith.constant dense<0.000000e+00> : vector<256xf32>
    %10 = vector.multi_reduction <add>, %9, %cst_6 [1] : vector<256x256xf32> to vector<256xf32>
    %11 = vector.shape_cast %10 : vector<256xf32> to vector<256x1xf32>
    %12 = arith.truncf %9 : vector<256x256xf32> to vector<256x256xbf16>
    %c0_7 = arith.constant 0 : index
    %c0_8 = arith.constant 0 : index
    %c0_9 = arith.constant 0 : index
    %13 = vector.load %arg4[%c0_7, %c0_8, %c0_9] : memref<1x256x128xbf16, #tpu.memory_space<vmem>>, vector<1x256x128xbf16>
    %14 = vector.shape_cast %13 : vector<1x256x128xbf16> to vector<256x128xbf16>
    %cst_10 = arith.constant dense<0.000000e+00> : vector<256x128xf32>
    %15 = tpu.matmul %12, %14, %cst_10 {dimension_numbers = #tpu.dot_dimension_numbers<[1], [0], [0], [1], [0, 0, 1, 1], [], []>} : vector<256x256xbf16>, vector<256x128xbf16>, vector<256x128xf32> -> vector<256x128xf32>
    %16 = tpu.reciprocal %11 {approx = true} : vector<256x1xf32> -> vector<256x1xf32>
    %17 = vector.broadcast %16 : vector<256x1xf32> to vector<256x128xf32>
    %18 = arith.mulf %15, %17 : vector<256x128xf32>
    %c0_11 = arith.constant 0 : index
    %c0_12 = arith.constant 0 : index
    %c0_13 = arith.constant 0 : index
    %19 = vector.load %arg5[%c0_11, %c0_12, %c0_13] : memref<1x256x128xbf16, #tpu.memory_space<vmem>>, vector<1x256x128xbf16>
    %20 = vector.shape_cast %19 : vector<1x256x128xbf16> to vector<256x128xbf16>
    %21 = arith.extf %20 : vector<256x128xbf16> to vector<256x128xf32>
    %22 = arith.truncf %18 : vector<256x128xf32> to vector<256x128xbf16>
    %c0_14 = arith.constant 0 : index
    %c0_15 = arith.constant 0 : index
    %23 = vector.load %arg6[%c0_14, %c0_15] : memref<128x128xbf16, #tpu.memory_space<vmem>>, vector<128x128xbf16>
    %cst_16 = arith.constant dense<0.000000e+00> : vector<256x128xf32>
    %24 = tpu.matmul %22, %23, %cst_16 {dimension_numbers = #tpu.dot_dimension_numbers<[1], [0], [0], [1], [0, 0, 1, 1], [], []>} : vector<256x128xbf16>, vector<128x128xbf16>, vector<256x128xf32> -> vector<256x128xf32>
    %c0_17 = arith.constant 0 : index
    %c0_18 = arith.constant 0 : index
    %25 = vector.load %arg7[%c0_17, %c0_18] : memref<1x128xf32, #tpu.memory_space<vmem>>, vector<1x128xf32>
    %26 = vector.broadcast %25 : vector<1x128xf32> to vector<256x128xf32>
    %27 = arith.addf %24, %26 : vector<256x128xf32>
    %28 = arith.addf %21, %27 : vector<256x128xf32>
    %c0_19 = arith.constant 0 : index
    %c0_20 = arith.constant 0 : index
    %29 = vector.load %arg8[%c0_19, %c0_20] : memref<1x128xf32, #tpu.memory_space<vmem>>, vector<1x128xf32>
    %c0_21 = arith.constant 0 : index
    %c0_22 = arith.constant 0 : index
    %30 = vector.load %arg9[%c0_21, %c0_22] : memref<1x128xf32, #tpu.memory_space<vmem>>, vector<1x128xf32>
    %cst_23 = arith.constant dense<0.000000e+00> : vector<256xf32>
    %31 = vector.multi_reduction <add>, %28, %cst_23 [1] : vector<256x128xf32> to vector<256xf32>
    %32 = vector.shape_cast %31 : vector<256xf32> to vector<256x1xf32>
    %cst_24 = arith.constant 1.280000e+02 : f32
    %33 = vector.broadcast %cst_24 : f32 to vector<256x1xf32>
    %34 = arith.divf %32, %33 : vector<256x1xf32>
    %35 = vector.broadcast %34 : vector<256x1xf32> to vector<256x128xf32>
    %36 = arith.subf %28, %35 : vector<256x128xf32>
    %37 = arith.mulf %36, %36 : vector<256x128xf32>
    %cst_25 = arith.constant dense<0.000000e+00> : vector<256xf32>
    %38 = vector.multi_reduction <add>, %37, %cst_25 [1] : vector<256x128xf32> to vector<256xf32>
    %39 = vector.shape_cast %38 : vector<256xf32> to vector<256x1xf32>
    %cst_26 = arith.constant 1.280000e+02 : f32
    %40 = vector.broadcast %cst_26 : f32 to vector<256x1xf32>
    %41 = arith.divf %39, %40 : vector<256x1xf32>
    %42 = vector.broadcast %34 : vector<256x1xf32> to vector<256x128xf32>
    %43 = arith.subf %28, %42 : vector<256x128xf32>
    %cst_27 = arith.constant 9.99999974E-6 : f32
    %44 = vector.broadcast %cst_27 : f32 to vector<256x1xf32>
    %45 = arith.addf %41, %44 : vector<256x1xf32>
    %46 = math.rsqrt %45 : vector<256x1xf32>
    %47 = vector.broadcast %46 : vector<256x1xf32> to vector<256x128xf32>
    %48 = arith.mulf %43, %47 : vector<256x128xf32>
    %49 = vector.broadcast %29 : vector<1x128xf32> to vector<256x128xf32>
    %50 = arith.mulf %48, %49 : vector<256x128xf32>
    %51 = vector.broadcast %30 : vector<1x128xf32> to vector<256x128xf32>
    %52 = arith.addf %50, %51 : vector<256x128xf32>
    %53 = arith.truncf %52 : vector<256x128xf32> to vector<256x128xbf16>
    %c0_28 = arith.constant 0 : index
    %c0_29 = arith.constant 0 : index
    %54 = vector.load %arg10[%c0_28, %c0_29] : memref<128x128xbf16, #tpu.memory_space<vmem>>, vector<128x128xbf16>
    %cst_30 = arith.constant dense<0.000000e+00> : vector<256x128xf32>
    %55 = tpu.matmul %53, %54, %cst_30 {dimension_numbers = #tpu.dot_dimension_numbers<[1], [0], [0], [1], [0, 0, 1, 1], [], []>} : vector<256x128xbf16>, vector<128x128xbf16>, vector<256x128xf32> -> vector<256x128xf32>
    %c0_31 = arith.constant 0 : index
    %c0_32 = arith.constant 0 : index
    %56 = vector.load %arg11[%c0_31, %c0_32] : memref<1x128xf32, #tpu.memory_space<vmem>>, vector<1x128xf32>
    %57 = vector.broadcast %56 : vector<1x128xf32> to vector<256x128xf32>
    %58 = arith.addf %55, %57 : vector<256x128xf32>
    %59 = arith.mulf %58, %58 : vector<256x128xf32>
    %60 = arith.mulf %58, %59 : vector<256x128xf32>
    %cst_33 = arith.constant 4.471500e-02 : f32
    %61 = vector.broadcast %cst_33 : f32 to vector<256x128xf32>
    %62 = arith.mulf %61, %60 : vector<256x128xf32>
    %63 = arith.addf %58, %62 : vector<256x128xf32>
    %cst_34 = arith.constant 0.797884583 : f32
    %64 = vector.broadcast %cst_34 : f32 to vector<256x128xf32>
    %65 = arith.mulf %64, %63 : vector<256x128xf32>
    %66 = math.tanh %65 : vector<256x128xf32>
    %cst_35 = arith.constant 1.000000e+00 : f32
    %67 = vector.broadcast %cst_35 : f32 to vector<256x128xf32>
    %68 = arith.addf %67, %66 : vector<256x128xf32>
    %cst_36 = arith.constant 5.000000e-01 : f32
    %69 = vector.broadcast %cst_36 : f32 to vector<256x128xf32>
    %70 = arith.mulf %69, %68 : vector<256x128xf32>
    %71 = arith.mulf %58, %70 : vector<256x128xf32>
    %72 = arith.truncf %71 : vector<256x128xf32> to vector<256x128xbf16>
    %c0_37 = arith.constant 0 : index
    %c0_38 = arith.constant 0 : index
    %73 = vector.load %arg12[%c0_37, %c0_38] : memref<128x128xbf16, #tpu.memory_space<vmem>>, vector<128x128xbf16>
    %cst_39 = arith.constant dense<0.000000e+00> : vector<256x128xf32>
    %74 = tpu.matmul %72, %73, %cst_39 {dimension_numbers = #tpu.dot_dimension_numbers<[1], [0], [0], [1], [0, 0, 1, 1], [], []>} : vector<256x128xbf16>, vector<128x128xbf16>, vector<256x128xf32> -> vector<256x128xf32>
    %c0_40 = arith.constant 0 : index
    %c0_41 = arith.constant 0 : index
    %75 = vector.load %arg13[%c0_40, %c0_41] : memref<1x128xf32, #tpu.memory_space<vmem>>, vector<1x128xf32>
    %76 = vector.broadcast %75 : vector<1x128xf32> to vector<256x128xf32>
    %77 = arith.addf %74, %76 : vector<256x128xf32>
    %78 = arith.addf %28, %77 : vector<256x128xf32>
    %79 = tpu.transpose %78, [1, 0] : vector<256x128xf32> -> vector<128x256xf32>
    %c0_42 = arith.constant 0 : index
    %c0_43 = arith.constant 0 : index
    %c0_44 = arith.constant 0 : index
    %80 = vector.load %arg14[%c0_42, %c0_43, %c0_44] : memref<1x128x256xf32, #tpu.memory_space<vmem>>, vector<1x128x256xf32>
    %81 = vector.shape_cast %80 : vector<1x128x256xf32> to vector<128x256xf32>
    %82 = vector.shape_cast %79 : vector<128x256xf32> to vector<1x128x256xf32>
    tpu.vector_store %arg14[%c0_42, %c0_43, %c0_44], %82 {strides = array<i32>} : memref<1x128x256xf32, #tpu.memory_space<vmem>>, vector<1x128x256xf32>,
    return
  }
  func.func @transform_0(%arg0: i32, %arg1: i32) -> (i32, i32, i32) {
    %c0_i32 = arith.constant 0 : i32
    %c0_i32_0 = arith.constant 0 : i32
    return %arg0, %arg1, %c0_i32 : i32, i32, i32
  }
  func.func @transform_1(%arg0: i32, %arg1: i32) -> (i32, i32, i32) {
    %c0_i32 = arith.constant 0 : i32
    %c0_i32_0 = arith.constant 0 : i32
    %c0_i32_1 = arith.constant 0 : i32
    return %arg0, %c0_i32, %c0_i32_0 : i32, i32, i32
  }
  func.func @transform_2(%arg0: i32, %arg1: i32) -> (i32, i32, i32) {
    %c0_i32 = arith.constant 0 : i32
    %c0_i32_0 = arith.constant 0 : i32
    %c0_i32_1 = arith.constant 0 : i32
    return %arg0, %c0_i32, %c0_i32_0 : i32, i32, i32
  }
  func.func @transform_3(%arg0: i32, %arg1: i32) -> (i32, i32, i32) {
    %c0_i32 = arith.constant 0 : i32
    %c0_i32_0 = arith.constant 0 : i32
    return %arg0, %arg1, %c0_i32 : i32, i32, i32
  }
  func.func @transform_4(%arg0: i32, %arg1: i32) -> (i32, i32) {
    %c0_i32 = arith.constant 0 : i32
    %c0_i32_0 = arith.constant 0 : i32
    %c0_i32_1 = arith.constant 0 : i32
    return %c0_i32, %c0_i32_0 : i32, i32
  }
  func.func @transform_5(%arg0: i32, %arg1: i32) -> (i32, i32) {
    %c0_i32 = arith.constant 0 : i32
    %c0_i32_0 = arith.constant 0 : i32
    %c0_i32_1 = arith.constant 0 : i32
    return %c0_i32, %c0_i32_0 : i32, i32
  }
  func.func @transform_6(%arg0: i32, %arg1: i32) -> (i32, i32) {
    %c0_i32 = arith.constant 0 : i32
    %c0_i32_0 = arith.constant 0 : i32
    %c0_i32_1 = arith.constant 0 : i32
    return %c0_i32, %c0_i32_0 : i32, i32
  }
  func.func @transform_7(%arg0: i32, %arg1: i32) -> (i32, i32) {
    %c0_i32 = arith.constant 0 : i32
    %c0_i32_0 = arith.constant 0 : i32
    %c0_i32_1 = arith.constant 0 : i32
    return %c0_i32, %c0_i32_0 : i32, i32
  }
  func.func @transform_8(%arg0: i32, %arg1: i32) -> (i32, i32) {
    %c0_i32 = arith.constant 0 : i32
    %c0_i32_0 = arith.constant 0 : i32
    %c0_i32_1 = arith.constant 0 : i32
    return %c0_i32, %c0_i32_0 : i32, i32
  }
  func.func @transform_9(%arg0: i32, %arg1: i32) -> (i32, i32) {
    %c0_i32 = arith.constant 0 : i32
    %c0_i32_0 = arith.constant 0 : i32
    %c0_i32_1 = arith.constant 0 : i32
    return %c0_i32, %c0_i32_0 : i32, i32
  }
  func.func @transform_10(%arg0: i32, %arg1: i32) -> (i32, i32) {
    %c0_i32 = arith.constant 0 : i32
    %c0_i32_0 = arith.constant 0 : i32
    %c0_i32_1 = arith.constant 0 : i32
    return %c0_i32, %c0_i32_0 : i32, i32
  }
  func.func @transform_11(%arg0: i32, %arg1: i32) -> (i32, i32) {
    %c0_i32 = arith.constant 0 : i32
    %c0_i32_0 = arith.constant 0 : i32
    %c0_i32_1 = arith.constant 0 : i32
    return %c0_i32, %c0_i32_0 : i32, i32
  }
  func.func @transform_12(%arg0: i32, %arg1: i32) -> (i32, i32, i32) {
    %c0_i32 = arith.constant 0 : i32
    %c0_i32_0 = arith.constant 0 : i32
    return %arg0, %c0_i32, %arg1 : i32, i32, i32
  }
}

</mosaic_0001>

<bundles_post_ra>
// kernel: t2t_module4_forward.2
= control target key start
LH: loop header
LB: loop body
LE: loop exit
PB: predicated region body
PF: predicated region fallthrough
CT: control target
= control target key end

     0   :  { %s3218_s27 = smov 0   ;;  %s3220_s28 = smov 0   ;;  %s3970_s0 = inlined_call_operand.vmem [shape: bf16[2,256,36], index: 0, kind: input, shape index: {}]   ;;  %s3971_s1 = inlined_call_operand.vmem [shape: f32[1,36], index: 1, kind: input, shape index: {}]   ;;  %s3972_s2 = inlined_call_operand.vmem [shape: f32[1,36], index: 2, kind: input, shape index: {}]   ;;  %s3973_s3 = inlined_call_operand.vmem [shape: bf16[36,128], index: 3, kind: input, shape index: {}]   ;;  %s3974_s4 = inlined_call_operand.vmem [shape: bf16[36,128], index: 4, kind: input, shape index: {}]   ;;  %s3975_s5 = inlined_call_operand.vmem [shape: bf16[36,128], index: 5, kind: input, shape index: {}]   ;;  %s3976_s6 = inlined_call_operand.vmem [shape: bf16[2,256,128], index: 6, kind: output, shape index: {0}]   ;;  %s3977_s7 = inlined_call_operand.vmem [shape: bf16[2,256,128], index: 7, kind: output, shape index: {1}]   ;;  %s3978_s8 = inlined_call_operand.vmem [shape: bf16[2,256,128], index: 8, kind: output, shape index: {2}]  }
   0x1   :  { %s3222_s29 = smov 0  }
   0x2 LB: > { %s31_s30 = sadd.s32 1, %s3167_s28  ;;  %p2241_p0 = scmp.ge.s32.totalorder %s3171_s29, 1  ;;  %s3171_s29 = sphi %s3222_s29, %s19_s29   ;;  %s3167_s28 = sphi %s3220_s28, %s3980_s28   ;;  %s3163_s27 = sphi %s3218_s27, %s3979_s27  }
   0x3   : > { %p33_p1 = scmp.ge.s32.totalorder %s31_s30, 2  ;;  %p292_p2 = scmp.lt.s32.totalorder %s3171_s29, 3 }
   0x5   : > { %s3982_s30 = smov (%p33_p1, %s31_s30), 0  ;;  %p293_p3 = pnand %p2241_p0, %p292_p2 }
   0x6   : > { %p353_p4 = scmp.lt.s32.totalorder (!%p293_p3), %s3163_s27, 1  ;;  %vm459_vm0 = vcmask (!%p293_p3), 293888   ;;  %vm1037_vm1 = vcmask (!%p293_p3), 1041408  }
   0x7   : > { %296 = sbr.rel (%p293_p3) target bundleno = 681 (0x2a9), region = 44 }
   0xe   : > { %s3984_s27 = smov (!%p353_p4, %s3163_s27), 1 }
   0xf   : > { %s3236_s9 = sshll.u32 %s3984_s27, 7 }
  0x10   : > { %s3242_s12 = scalar_lea.vmem %s3970_s0, %s3236_s9  ;;  %s3899_s19 = scalar_lea.vmem %s3976_s6, %s3236_s9 }
  0x11   : > { %v3245_v0 = vld [vmem:[%s3242_s12] sm:$0xff]   ;;  %v3255_v6 = vld [vmem:[%s3242_s12 + $0x8] sm:$0xff]   ;;  %v3283_v18 = vld [vmem:[%s3242_s12 + $0x10] sm:$0xff]   ;;  %s3921_s22 = scalar_lea.vmem %s3978_s8, %s3236_s9  ;;  %s3929_s25 = scalar_lea.vmem %s3977_s7, %s3236_s9 }
  0x12   : > { %v3248_v1 = vld [vmem:[%s3242_s12 + $0x40] sm:$0xff]   ;;  %v2509_v2 = vunpack.c.l.bf16 %v3245_v0  ;;  %v2510_v4 = vunpack.c.h.bf16 %v3245_v0  ;;  %v2513_v11 = vunpack.c.l.bf16 %v3255_v6  ;;  %v2514_v12 = vunpack.c.h.bf16 %v3255_v6  ;;  %v3272_v13 = vld [vmem:[%s3242_s12 + $0x48] sm:$0xff]   ;;  %v3294_v23 = vld [vmem:[%s3242_s12 + $0x50] sm:$0xff]  }
  0x13   : > { %v2541_v3 = vunpack.c.l.bf16 %v3248_v1  ;;  %v2542_v5 = vunpack.c.h.bf16 %v3248_v1  ;;  %v2545_v16 = vunpack.c.l.bf16 %v3272_v13  ;;  %v2546_v17 = vunpack.c.h.bf16 %v3272_v13  ;;  %v3305_v28 = vld [vmem:[%s3242_s12 + $0x18] sm:$0xff]   ;;  %v3327_v38 = vld [vmem:[%s3242_s12 + $0x20] sm:$0xff]   ;;  %v3349_v48 = vld [vmem:[%s3242_s12 + $0x28] sm:$0xff]  }
  0x14   : > { %v460_v7 = vsel %vm459_vm0, %v2509_v2, 0.0  ;;  %v463_v9 = vsel %vm459_vm0, %v2510_v4, 0.0  ;;  %v466_v14 = vsel %vm459_vm0, %v2513_v11, 0.0  ;;  %v469_v15 = vsel %vm459_vm0, %v2514_v12, 0.0  ;;  %v3316_v33 = vld [vmem:[%s3242_s12 + $0x58] sm:$0xff]   ;;  %v3338_v43 = vld [vmem:[%s3242_s12 + $0x60] sm:$0xff]  }
  0x15   : > { %v508_v8 = vsel %vm459_vm0, %v2541_v3, 0.0  ;;  %461 = vadd.xlane.f32.xlu0 %v460_v7  ;;  %v511_v10 = vsel %vm459_vm0, %v2542_v5, 0.0  ;;  %v514_v19 = vsel %vm459_vm0, %v2545_v16, 0.0  ;;  %v517_v20 = vsel %vm459_vm0, %v2546_v17, 0.0  ;;  %v3360_v53 = vld [vmem:[%s3242_s12 + $0x68] sm:$0xff]   ;;  %v3371_v58 = vld [vmem:[%s3242_s12 + $0x30] sm:$0xff]  }
  0x16   : > { %509 = vadd.xlane.f32.xlu1 %v508_v8  ;;  %v2517_v21 = vunpack.c.l.bf16 %v3283_v18  ;;  %v2518_v22 = vunpack.c.h.bf16 %v3283_v18  ;;  %v2549_v26 = vunpack.c.l.bf16 %v3294_v23  ;;  %v2550_v27 = vunpack.c.h.bf16 %v3294_v23  ;;  %v3382_v63 = vld [vmem:[%s3242_s12 + $0x70] sm:$0xff]  }
  0x17   : > { %v2521_v31 = vunpack.c.l.bf16 %v3305_v28  ;;  %v2522_v32 = vunpack.c.h.bf16 %v3305_v28  ;;  %v2553_v36 = vunpack.c.l.bf16 %v3316_v33  ;;  %v2554_v37 = vunpack.c.h.bf16 %v3316_v33 }
  0x18   : > { %v472_v24 = vsel %vm459_vm0, %v2517_v21, 0.0  ;;  %v475_v25 = vsel %vm459_vm0, %v2518_v22, 0.0  ;;  %v520_v29 = vsel %vm459_vm0, %v2549_v26, 0.0  ;;  %v523_v30 = vsel %vm459_vm0, %v2550_v27, 0.0 }
  0x19   : > { %464 = vadd.xlane.f32.xlu0 %v463_v9  ;;  %v478_v34 = vsel %vm459_vm0, %v2521_v31, 0.0  ;;  %v481_v35 = vsel %vm459_vm0, %v2522_v32, 0.0  ;;  %v526_v39 = vsel %vm459_vm0, %v2553_v36, 0.0  ;;  %v529_v40 = vsel %vm459_vm0, %v2554_v37, 0.0 }
  0x1a   : > { %512 = vadd.xlane.f32.xlu1 %v511_v10  ;;  %v2525_v41 = vunpack.c.l.bf16 %v3327_v38  ;;  %v2526_v42 = vunpack.c.h.bf16 %v3327_v38  ;;  %v2557_v46 = vunpack.c.l.bf16 %v3338_v43  ;;  %v2558_v47 = vunpack.c.h.bf16 %v3338_v43 }
  0x1b   : > { %v2529_v51 = vunpack.c.l.bf16 %v3349_v48  ;;  %v2530_v52 = vunpack.c.h.bf16 %v3349_v48  ;;  %v2561_v56 = vunpack.c.l.bf16 %v3360_v53  ;;  %v2562_v57 = vunpack.c.h.bf16 %v3360_v53 }
  0x1c   : > { %v484_v44 = vsel %vm459_vm0, %v2525_v41, 0.0  ;;  %v487_v45 = vsel %vm459_vm0, %v2526_v42, 0.0  ;;  %v532_v49 = vsel %vm459_vm0, %v2557_v46, 0.0  ;;  %v535_v50 = vsel %vm459_vm0, %v2558_v47, 0.0 }
  0x1d   : > { %467 = vadd.xlane.f32.xlu0 %v466_v14  ;;  %v490_v54 = vsel %vm459_vm0, %v2529_v51, 0.0  ;;  %v493_v55 = vsel %vm459_vm0, %v2530_v52, 0.0  ;;  %v538_v59 = vsel %vm459_vm0, %v2561_v56, 0.0  ;;  %v541_v60 = vsel %vm459_vm0, %v2562_v57, 0.0  ;;  %v3393_v14 = vld [vmem:[%s3242_s12 + $0x38] sm:$0xff]  }
  0x1e   : > { %470 = vadd.xlane.f32.xlu1 %v469_v15  ;;  %v2533_v61 = vunpack.c.l.bf16 %v3371_v58  ;;  %v2534_v62 = vunpack.c.h.bf16 %v3371_v58  ;;  %v2565_v9 = vunpack.c.l.bf16 %v3382_v63  ;;  %v2566_v10 = vunpack.c.h.bf16 %v3382_v63 }
  0x20   : > { %v496_v7 = vsel %vm459_vm0, %v2533_v61, 0.0  ;;  %v499_v8 = vsel %vm459_vm0, %v2534_v62, 0.0  ;;  %v544_v15 = vsel %vm459_vm0, %v2565_v9, 0.0 }
  0x21   : > { %515 = vadd.xlane.f32.xlu0 %v514_v19  ;;  %v547_v19 = vsel %vm459_vm0, %v2566_v10, 0.0 }
  0x22   : > { %518 = vadd.xlane.f32.xlu1 %v517_v20  ;;  %v2537_v20 = vunpack.c.l.bf16 %v3393_v14 }
  0x25   : > { %473 = vadd.xlane.f32.xlu0 %v472_v24  ;;  %v2538_v24 = vunpack.c.h.bf16 %v3393_v14 }
  0x26   : > { %476 = vadd.xlane.f32.xlu1 %v475_v25  ;;  %v3404_v25 = vld [vmem:[%s3242_s12 + $0x78] sm:$0xff]  }
  0x29   : > { %521 = vadd.xlane.f32.xlu0 %v520_v29  ;;  %v502_v29 = vsel %vm459_vm0, %v2537_v20, 0.0 }
  0x2a   : > { %524 = vadd.xlane.f32.xlu1 %v523_v30  ;;  %v505_v30 = vsel %vm459_vm0, %v2538_v24, 0.0 }
  0x2d   : > { %479 = vadd.xlane.f32.xlu0 %v478_v34  ;;  %v2569_v34 = vunpack.c.l.bf16 %v3404_v25 }
  0x2e   : > { %482 = vadd.xlane.f32.xlu1 %v481_v35  ;;  %v2570_v35 = vunpack.c.h.bf16 %v3404_v25 }
  0x31   : > { %527 = vadd.xlane.f32.xlu0 %v526_v39  ;;  %v550_v39 = vsel %vm459_vm0, %v2569_v34, 0.0 }
  0x32   : > { %530 = vadd.xlane.f32.xlu1 %v529_v40  ;;  %v553_v40 = vsel %vm459_vm0, %v2570_v35, 0.0 }
  0x35   : > { %485 = vadd.xlane.f32.xlu0 %v484_v44 }
  0x36   : > { %488 = vadd.xlane.f32.xlu1 %v487_v45 }
  0x39   : > { %533 = vadd.xlane.f32.xlu0 %v532_v49 }
  0x3a   : > { %536 = vadd.xlane.f32.xlu1 %v535_v50 }
  0x3d   : > { %491 = vadd.xlane.f32.xlu0 %v490_v54 }
  0x3e   : > { %494 = vadd.xlane.f32.xlu1 %v493_v55 }
  0x41   : > { %539 = vadd.xlane.f32.xlu0 %v538_v59 }
  0x42   : > { %542 = vadd.xlane.f32.xlu1 %v541_v60 }
  0x45   : > { %497 = vadd.xlane.f32.xlu0 %v496_v7 }
  0x46   : > { %500 = vadd.xlane.f32.xlu1 %v499_v8 }
  0x49   : > { %545 = vadd.xlane.f32.xlu0 %v544_v15 }
  0x4a   : > { %548 = vadd.xlane.f32.xlu1 %v547_v19 }
  0x4d   : > { %503 = vadd.xlane.f32.xlu0 %v502_v29 }
  0x4e   : > { %506 = vadd.xlane.f32.xlu1 %v505_v30 }
  0x51   : > { %551 = vadd.xlane.f32.xlu0 %v550_v39 }
  0x52   : > { %554 = vadd.xlane.f32.xlu1 %v553_v40 }
  0xa2   : > { %v462_v44 = vpop.xlane.xlu0 %461 }
  0xa3   : > { %v510_v45 = vpop.xlane.xlu1 %509  ;;  %v557_v49 = vmul.f32 0.027777778, %v462_v44 }
  0xa4   : > { %v573_v50 = vmul.f32 0.027777778, %v510_v45 }
  0xa5   : > { %v3422_v54 = vsub.f32 %v2509_v2, %v557_v49 }
  0xa6   : > { %v3426_v55 = vsub.f32 %v2541_v3, %v573_v50  ;;  %v465_v59 = vpop.xlane.xlu0 %464 }
  0xa7   : > { %v513_v60 = vpop.xlane.xlu1 %512  ;;  %v558_v7 = vmul.f32 0.027777778, %v465_v59  ;;  %v621_v15 = vmul.f32 %v3422_v54, %v3422_v54 }
  0xa8   : > { %v574_v8 = vmul.f32 0.027777778, %v513_v60  ;;  %v637_v19 = vmul.f32 %v3426_v55, %v3426_v55 }
  0xa9   : > { %v3434_v29 = vsub.f32 %v2510_v4, %v558_v7  ;;  %v653_v3 = vsel %vm459_vm0, %v621_v15, 0.0 }
  0xaa   : > { %v3438_v2 = vsub.f32 %v2542_v5, %v574_v8  ;;  %654 = vadd.xlane.f32.xlu0 %v653_v3  ;;  %v468_v30 = vpop.xlane.xlu0 %467  ;;  %v701_v40 = vsel %vm459_vm0, %v637_v19, 0.0 }
  0xab   : > { %v471_v39 = vpop.xlane.xlu1 %470  ;;  %v559_v44 = vmul.f32 0.027777778, %v468_v30  ;;  %v622_v49 = vmul.f32 %v3434_v29, %v3434_v29 }
  0xac   : > { %v560_v45 = vmul.f32 0.027777778, %v471_v39  ;;  %v638_v0 = vmul.f32 %v3438_v2, %v3438_v2 }
  0xad   : > { %v3448_v1 = vsub.f32 %v2513_v11, %v559_v44  ;;  %v656_v5 = vsel %vm459_vm0, %v622_v49, 0.0 }
  0xae   : > { %v3452_v4 = vsub.f32 %v2514_v12, %v560_v45  ;;  %702 = vadd.xlane.f32.xlu0 %v701_v40  ;;  %657 = vadd.xlane.f32.xlu1 %v656_v5  ;;  %v516_v50 = vpop.xlane.xlu0 %515  ;;  %v704_v60 = vsel %vm459_vm0, %v638_v0, 0.0 }
  0xaf   : > { %v519_v59 = vpop.xlane.xlu1 %518  ;;  %v575_v7 = vmul.f32 0.027777778, %v516_v50  ;;  %v623_v15 = vmul.f32 %v3448_v1, %v3448_v1 }
  0xb0   : > { %v576_v8 = vmul.f32 0.027777778, %v519_v59  ;;  %v624_v11 = vmul.f32 %v3452_v4, %v3452_v4 }
  0xb1   : > { %v3462_v6 = vsub.f32 %v2545_v16, %v575_v7  ;;  %v659_v19 = vsel %vm459_vm0, %v623_v15, 0.0 }
  0xb2   : > { %v3466_v12 = vsub.f32 %v2546_v17, %v576_v8  ;;  %705 = vadd.xlane.f32.xlu1 %v704_v60  ;;  %660 = vadd.xlane.f32.xlu0 %v659_v19  ;;  %v474_v3 = vpop.xlane.xlu0 %473  ;;  %v662_v39 = vsel %vm459_vm0, %v624_v11, 0.0 }
  0xb3   : > { %v477_v30 = vpop.xlane.xlu1 %476  ;;  %v561_v40 = vmul.f32 0.027777778, %v474_v3  ;;  %v639_v45 = vmul.f32 %v3462_v6, %v3462_v6 }
  0xb4   : > { %v562_v44 = vmul.f32 0.027777778, %v477_v30  ;;  %v640_v16 = vmul.f32 %v3466_v12, %v3466_v12 }
  0xb5   : > { %v3476_v13 = vsub.f32 %v2517_v21, %v561_v40  ;;  %v707_v49 = vsel %vm459_vm0, %v639_v45, 0.0 }
  0xb6   : > { %v3480_v17 = vsub.f32 %v2518_v22, %v562_v44  ;;  %663 = vadd.xlane.f32.xlu1 %v662_v39  ;;  %708 = vadd.xlane.f32.xlu0 %v707_v49  ;;  %v522_v0 = vpop.xlane.xlu0 %521  ;;  %v710_v50 = vsel %vm459_vm0, %v640_v16, 0.0 }
  0xb7   : > { %v525_v5 = vpop.xlane.xlu1 %524  ;;  %v577_v59 = vmul.f32 0.027777778, %v522_v0  ;;  %v625_v7 = vmul.f32 %v3476_v13, %v3476_v13 }
  0xb8   : > { %v578_v60 = vmul.f32 0.027777778, %v525_v5  ;;  %v626_v21 = vmul.f32 %v3480_v17, %v3480_v17 }
  0xb9   : > { %v3490_v18 = vsub.f32 %v2549_v26, %v577_v59  ;;  %v665_v8 = vsel %vm459_vm0, %v625_v7, 0.0 }
  0xba   : > { %v3494_v22 = vsub.f32 %v2550_v27, %v578_v60  ;;  %711 = vadd.xlane.f32.xlu1 %v710_v50  ;;  %666 = vadd.xlane.f32.xlu0 %v665_v8  ;;  %v480_v15 = vpop.xlane.xlu0 %479  ;;  %v668_v19 = vsel %vm459_vm0, %v626_v21, 0.0 }
  0xbb   : > { %v483_v11 = vpop.xlane.xlu1 %482  ;;  %v563_v3 = vmul.f32 0.027777778, %v480_v15  ;;  %v641_v39 = vmul.f32 %v3490_v18, %v3490_v18 }
  0xbc   : > { %v564_v30 = vmul.f32 0.027777778, %v483_v11  ;;  %v642_v26 = vmul.f32 %v3494_v22, %v3494_v22 }
  0xbd   : > { %v3504_v23 = vsub.f32 %v2521_v31, %v563_v3  ;;  %v713_v40 = vsel %vm459_vm0, %v641_v39, 0.0 }
  0xbe   : > { %v3508_v27 = vsub.f32 %v2522_v32, %v564_v30  ;;  %669 = vadd.xlane.f32.xlu1 %v668_v19  ;;  %714 = vadd.xlane.f32.xlu0 %v713_v40  ;;  %v528_v44 = vpop.xlane.xlu0 %527  ;;  %v716_v16 = vsel %vm459_vm0, %v642_v26, 0.0 }
  0xbf   : > { %v531_v45 = vpop.xlane.xlu1 %530  ;;  %v579_v49 = vmul.f32 0.027777778, %v528_v44  ;;  %v627_v5 = vmul.f32 %v3504_v23, %v3504_v23 }
  0xc0   : > { %v580_v0 = vmul.f32 0.027777778, %v531_v45  ;;  %v628_v31 = vmul.f32 %v3508_v27, %v3508_v27 }
  0xc1   : > { %v3518_v28 = vsub.f32 %v2553_v36, %v579_v49  ;;  %v671_v50 = vsel %vm459_vm0, %v627_v5, 0.0 }
  0xc2   : > { %v3522_v32 = vsub.f32 %v2554_v37, %v580_v0  ;;  %717 = vadd.xlane.f32.xlu1 %v716_v16  ;;  %672 = vadd.xlane.f32.xlu0 %v671_v50  ;;  %v486_v59 = vpop.xlane.xlu0 %485  ;;  %v674_v7 = vsel %vm459_vm0, %v628_v31, 0.0 }
  0xc3   : > { %v489_v60 = vpop.xlane.xlu1 %488  ;;  %v565_v21 = vmul.f32 0.027777778, %v486_v59  ;;  %v643_v15 = vmul.f32 %v3518_v28, %v3518_v28 }
  0xc4   : > { %v566_v8 = vmul.f32 0.027777778, %v489_v60  ;;  %v644_v36 = vmul.f32 %v3522_v32, %v3522_v32 }
  0xc5   : > { %v3532_v33 = vsub.f32 %v2525_v41, %v565_v21  ;;  %v719_v11 = vsel %vm459_vm0, %v643_v15, 0.0  ;;  %v3076_v21 = vld [vmem:[%s3973_s3] sm:$0xff]  }
  0xc6   : > { %v3536_v37 = vsub.f32 %v2526_v42, %v566_v8  ;;  %675 = vadd.xlane.f32.xlu1 %v674_v7  ;;  %720 = vadd.xlane.f32.xlu0 %v719_v11  ;;  %v534_v19 = vpop.xlane.xlu0 %533  ;;  %v722_v30 = vsel %vm459_vm0, %v644_v36, 0.0 }
  0xc7   : > { %v537_v3 = vpop.xlane.xlu1 %536  ;;  %v581_v39 = vmul.f32 0.027777778, %v534_v19  ;;  %v629_v40 = vmul.f32 %v3532_v33, %v3532_v33  ;;  %2928 = vmatprep.subr.bf16.mxu0 %v3076_v21  ;;  %3042 = vmatprep.subr.bf16.mxu1 %v3076_v21 }
  0xc8   : > { %v582_v26 = vmul.f32 0.027777778, %v537_v3  ;;  %v630_v41 = vmul.f32 %v3536_v37, %v3536_v37  ;;  %2929 = vmatpush3.bf16.msra.mxu0 %v3076_v21  ;;  %3045 = vmatpush3.bf16.msra.mxu1 %v3076_v21 }
  0xc9   : > { %v3546_v38 = vsub.f32 %v2557_v46, %v581_v39  ;;  %v677_v44 = vsel %vm459_vm0, %v629_v40, 0.0  ;;  %v3077_v39 = vld [vmem:[%s3973_s3 + $0x8] sm:$0xff]  }
  0xca   : > { %v3550_v42 = vsub.f32 %v2558_v47, %v582_v26  ;;  %723 = vadd.xlane.f32.xlu1 %v722_v30  ;;  %678 = vadd.xlane.f32.xlu0 %v677_v44  ;;  %v492_v45 = vpop.xlane.xlu0 %491  ;;  %v680_v49 = vsel %vm459_vm0, %v630_v41, 0.0 }
  0xcb   : > { %v495_v16 = vpop.xlane.xlu1 %494  ;;  %v567_v0 = vmul.f32 0.027777778, %v492_v45  ;;  %v645_v31 = vmul.f32 %v3546_v38, %v3546_v38  ;;  %2930 = vmatprep.subr.bf16.mxu0 %v3077_v39  ;;  %3043 = vmatprep.subr.bf16.mxu1 %v3077_v39 }
  0xcc   : > { %v568_v5 = vmul.f32 0.027777778, %v495_v16  ;;  %v646_v46 = vmul.f32 %v3550_v42, %v3550_v42  ;;  %2931 = vmatpush3.bf16.msra.mxu0 %v3077_v39  ;;  %3046 = vmatpush3.bf16.msra.mxu1 %v3077_v39 }
  0xcd   : > { %v3560_v43 = vsub.f32 %v2529_v51, %v567_v0  ;;  %v725_v50 = vsel %vm459_vm0, %v645_v31, 0.0  ;;  %v3078_v0 = vld [vmem:[%s3973_s3 + $0x10] ss:$0 sps:$4 sm:$0x33]  }
  0xce   : > { %v3564_v47 = vsub.f32 %v2530_v52, %v568_v5  ;;  %681 = vadd.xlane.f32.xlu1 %v680_v49  ;;  %726 = vadd.xlane.f32.xlu0 %v725_v50  ;;  %v540_v59 = vpop.xlane.xlu0 %539  ;;  %v728_v7 = vsel %vm459_vm0, %v646_v46, 0.0  ;;  %v1039_v21 = vsel %vm1037_vm1, %v3078_v0, 0 }
  0xcf   : > { %v543_v60 = vpop.xlane.xlu1 %542  ;;  %v583_v8 = vmul.f32 0.027777778, %v540_v59  ;;  %v631_v51 = vmul.f32 %v3560_v43, %v3560_v43  ;;  %3048 = vmatprep.subr.msk.bf16.mxu0 %vm1037_vm1, %v3078_v0  ;;  %3049 = vmatprep.subr.msk.bf16.mxu1 %vm1037_vm1, %v3078_v0 }
  0xd0   : > { %v584_v15 = vmul.f32 0.027777778, %v543_v60  ;;  %v632_v48 = vmul.f32 %v3564_v47, %v3564_v47  ;;  %2933 = vmatpush3.bf16.msra.mxu0 %v1039_v21  ;;  %3047 = vmatpush3.bf16.msra.mxu1 %v1039_v21 }
  0xd1   : > { %v3577_v52 = vsub.f32 %v2561_v56, %v583_v8  ;;  %v683_v11 = vsel %vm459_vm0, %v631_v51, 0.0 }
  0xd2   : > { %v3581_v36 = vsub.f32 %v2562_v57, %v584_v15  ;;  %729 = vadd.xlane.f32.xlu1 %v728_v7  ;;  %684 = vadd.xlane.f32.xlu0 %v683_v11  ;;  %v498_v19 = vpop.xlane.xlu0 %497  ;;  %v686_v30 = vsel %vm459_vm0, %v632_v48, 0.0 }
  0xd3   : > { %v501_v3 = vpop.xlane.xlu1 %500  ;;  %v569_v56 = vmul.f32 0.027777778, %v498_v19  ;;  %v647_v53 = vmul.f32 %v3577_v52, %v3577_v52 }
  0xd4   : > { %v570_v26 = vmul.f32 0.027777778, %v501_v3  ;;  %v648_v57 = vmul.f32 %v3581_v36, %v3581_v36 }
  0xd5   : > { %v3594_v40 = vsub.f32 %v2533_v61, %v569_v56  ;;  %v731_v44 = vsel %vm459_vm0, %v647_v53, 0.0 }
  0xd6   : > { %v3598_v41 = vsub.f32 %v2534_v62, %v570_v26  ;;  %687 = vadd.xlane.f32.xlu1 %v686_v30  ;;  %732 = vadd.xlane.f32.xlu0 %v731_v44  ;;  %v546_v45 = vpop.xlane.xlu0 %545  ;;  %v734_v49 = vsel %vm459_vm0, %v648_v57, 0.0 }
  0xd7   : > { %v549_v16 = vpop.xlane.xlu1 %548  ;;  %v585_v61 = vmul.f32 0.027777778, %v546_v45  ;;  %v633_v58 = vmul.f32 %v3594_v40, %v3594_v40 }
  0xd8   : > { %v586_v5 = vmul.f32 0.027777778, %v549_v16  ;;  %v634_v62 = vmul.f32 %v3598_v41, %v3598_v41 }
  0xd9   : > { %v3611_v31 = vsub.f32 %v2565_v9, %v585_v61  ;;  %v689_v50 = vsel %vm459_vm0, %v633_v58, 0.0 }
  0xda   : > { %v3615_v46 = vsub.f32 %v2566_v10, %v586_v5  ;;  %735 = vadd.xlane.f32.xlu1 %v734_v49  ;;  %690 = vadd.xlane.f32.xlu0 %v689_v50  ;;  %v504_v59 = vpop.xlane.xlu0 %503  ;;  %v692_v7 = vsel %vm459_vm0, %v634_v62, 0.0 }
  0xdb   : > { %v507_v60 = vpop.xlane.xlu1 %506  ;;  %v571_v9 = vmul.f32 0.027777778, %v504_v59  ;;  %v649_v63 = vmul.f32 %v3611_v31, %v3611_v31 }
  0xdc   : > { %v572_v8 = vmul.f32 0.027777778, %v507_v60  ;;  %v650_v10 = vmul.f32 %v3615_v46, %v3615_v46 }
  0xdd   : > { %v3628_v15 = vsub.f32 %v2537_v20, %v571_v9  ;;  %v737_v48 = vsel %vm459_vm0, %v649_v63, 0.0 }
  0xde   : > { %v3632_v51 = vsub.f32 %v2538_v24, %v572_v8  ;;  %693 = vadd.xlane.f32.xlu1 %v692_v7  ;;  %738 = vadd.xlane.f32.xlu0 %v737_v48  ;;  %v552_v11 = vpop.xlane.xlu0 %551  ;;  %v740_v3 = vsel %vm459_vm0, %v650_v10, 0.0 }
  0xdf   : > { %v555_v19 = vpop.xlane.xlu1 %554  ;;  %v587_v30 = vmul.f32 0.027777778, %v552_v11  ;;  %v635_v56 = vmul.f32 %v3628_v15, %v3628_v15 }
  0xe0   : > { %v588_v39 = vmul.f32 0.027777778, %v555_v19  ;;  %v636_v20 = vmul.f32 %v3632_v51, %v3632_v51 }
  0xe1   : > { %v3642_v14 = vsub.f32 %v2569_v34, %v587_v30  ;;  %v695_v26 = vsel %vm459_vm0, %v635_v56, 0.0  ;;  %v3659_v34 = vld [vmem:[%s3974_s4] sm:$0xff]  }
  0xe2   : > { %v3646_v24 = vsub.f32 %v2570_v35, %v588_v39  ;;  %741 = vadd.xlane.f32.xlu1 %v740_v3  ;;  %696 = vadd.xlane.f32.xlu0 %v695_v26  ;;  %v698_v53 = vsel %vm459_vm0, %v636_v20, 0.0  ;;  %v3664_v35 = vld [vmem:[%s3975_s5] sm:$0xff]  }
  0xe3   : > { %v651_v57 = vmul.f32 %v3642_v14, %v3642_v14  ;;  %2966 = vmatprep.subr.bf16.mxu1 %v3659_v34  ;;  %3004 = vmatprep.subr.bf16.mxu0 %v3664_v35 }
  0xe4   : > { %v652_v44 = vmul.f32 %v3646_v24, %v3646_v24 }
  0xe5   : > { %v743_v45 = vsel %vm459_vm0, %v651_v57, 0.0 }
  0xe6   : > { %699 = vadd.xlane.f32.xlu1 %v698_v53  ;;  %744 = vadd.xlane.f32.xlu0 %v743_v45  ;;  %v746_v25 = vsel %vm459_vm0, %v652_v44, 0.0  ;;  %v3672_v44 = vld [vmem:[%s3971_s1] ss:$0 sm:$0xff] }
  0xea   : > { %747 = vadd.xlane.f32.xlu1 %v746_v25 }
 0x137   : > { %v655_v16 = vpop.xlane.xlu0 %654 }
 0x138   : > { %v749_v49 = vmul.f32 0.027777778, %v655_v16 }
 0x13a   : > { %v781_v0 = vadd.f32 1e-05, %v749_v49 }
 0x13b   : > { %v658_v61 = vpop.xlane.xlu1 %657  ;;  %v703_v5 = vpop.xlane.xlu0 %702 }
 0x13c   : > { %3085 = vrsqrt.f32 %v781_v0  ;;  %v750_v58 = vmul.f32 0.027777778, %v658_v61  ;;  %v765_v62 = vmul.f32 0.027777778, %v703_v5 }
 0x13e   : > { %v782_v50 = vadd.f32 1e-05, %v750_v58  ;;  %v797_v59 = vadd.f32 1e-05, %v765_v62 }
 0x13f   : > { %v706_v60 = vpop.xlane.xlu1 %705  ;;  %v661_v7 = vpop.xlane.xlu0 %660 }
 0x140   : > { %3087 = vrsqrt.f32 %v782_v50  ;;  %v766_v21 = vmul.f32 0.027777778, %v706_v60  ;;  %v751_v9 = vmul.f32 0.027777778, %v661_v7  ;;  %v3679_v50 = vld [vmem:[%s3972_s2] ss:$0 sm:$0xff] }
 0x141   : > { %3089 = vrsqrt.f32 %v797_v59 }
 0x142   : > { %v798_v8 = vadd.f32 1e-05, %v766_v21  ;;  %v783_v63 = vadd.f32 1e-05, %v751_v9 }
 0x143   : > { %v664_v10 = vpop.xlane.xlu1 %663  ;;  %v709_v48 = vpop.xlane.xlu0 %708 }
 0x144   : > { %3091 = vrsqrt.f32 %v798_v8  ;;  %v752_v11 = vmul.f32 0.027777778, %v664_v10  ;;  %v767_v19 = vmul.f32 0.027777778, %v709_v48 }
 0x145   : > { %3093 = vrsqrt.f32 %v783_v63 }
 0x146   : > { %v3086_v3 = vpop.eup %3085  ;;  %v784_v30 = vadd.f32 1e-05, %v752_v11  ;;  %v799_v39 = vadd.f32 1e-05, %v767_v19 }
 0x147   : > { %v712_v56 = vpop.xlane.xlu1 %711  ;;  %v667_v20 = vpop.xlane.xlu0 %666  ;;  %v845_v26 = vmul.f32 %v3086_v3, %v3422_v54 }
 0x148   : > { %3095 = vrsqrt.f32 %v784_v30  ;;  %v768_v53 = vmul.f32 0.027777778, %v712_v56  ;;  %v753_v57 = vmul.f32 0.027777778, %v667_v20 }
 0x149   : > { %3097 = vrsqrt.f32 %v799_v39  ;;  %v883_v58 = vmul.f32 %v3672_v44, %v845_v26 }
 0x14a   : > { %v3088_v45 = vpop.eup %3087  ;;  %v800_v25 = vadd.f32 1e-05, %v768_v53  ;;  %v785_v16 = vadd.f32 1e-05, %v753_v57 }
 0x14b   : > { %v3090_v49 = vpop.eup %3089  ;;  %v670_v0 = vpop.xlane.xlu1 %669  ;;  %v846_v5 = vmul.f32 %v3088_v45, %v3434_v29  ;;  %v921_v10 = vadd.f32 %v3679_v50, %v883_v58 }
 0x14c   : > { %v715_v61 = vpop.xlane.xlu0 %714  ;;  %3099 = vrsqrt.f32 %v800_v25  ;;  %v754_v54 = vmul.f32 0.027777778, %v670_v0  ;;  %v861_v59 = vmul.f32 %v3090_v49, %v3426_v55 }
 0x14d   : > { %v769_v62 = vmul.f32 0.027777778, %v715_v61  ;;  %3101 = vrsqrt.f32 %v785_v16  ;;  %v884_v60 = vmul.f32 %v3672_v44, %v846_v5 }
 0x14e   : > { %v3092_v7 = vpop.eup %3091  ;;  %v786_v21 = vadd.f32 1e-05, %v754_v54  ;;  %v899_v19 = vmul.f32 %v3672_v44, %v861_v59 }
 0x14f   : > { %v801_v9 = vadd.f32 1e-05, %v769_v62  ;;  %v3094_v8 = vpop.eup %3093  ;;  %v718_v29 = vpop.xlane.xlu1 %717  ;;  %v922_v48 = vadd.f32 %v3679_v50, %v884_v60  ;;  %v862_v11 = vmul.f32 %v3092_v7, %v3438_v2 }
 0x150   : > { %v673_v63 = vpop.xlane.xlu0 %672  ;;  %v847_v3 = vmul.f32 %v3094_v8, %v3448_v1  ;;  %3103 = vrsqrt.f32 %v786_v21  ;;  %v770_v55 = vmul.f32 0.027777778, %v718_v29  ;;  %v937_v1 = vadd.f32 %v3679_v50, %v899_v19  ;;  %v3082_v19 = vld [vmem:[%s3975_s5 + $0x8] sm:$0xff]  }
 0x151   : > { %v755_v30 = vmul.f32 0.027777778, %v673_v63  ;;  %3105 = vrsqrt.f32 %v801_v9  ;;  %v3688_v39 = vpack.c.bf16 %v922_v48, %v921_v10  ;;  %v900_v56 = vmul.f32 %v3672_v44, %v862_v11 }
 0x152   : > { %v3096_v20 = vpop.eup %3095  ;;  %v802_v26 = vadd.f32 1e-05, %v770_v55  ;;  %v885_v49 = vmul.f32 %v3672_v44, %v847_v3 }
 0x153   : > { %v787_v53 = vadd.f32 1e-05, %v755_v30  ;;  %v3098_v57 = vpop.eup %3097  ;;  %v848_v45 = vmul.f32 %v3096_v20, %v3452_v4  ;;  %v676_v25 = vpop.xlane.xlu1 %675  ;;  %2934 = vmatprep.mubr.msk.bf16.mxu0 %vm459_vm0, %v3688_v39  ;;  %v938_v16 = vadd.f32 %v3679_v50, %v900_v56 }
 0x154   : > { %v721_v2 = vpop.xlane.xlu0 %720  ;;  %v863_v0 = vmul.f32 %v3098_v57, %v3462_v6  ;;  %3107 = vrsqrt.f32 %v802_v26  ;;  %v756_v61 = vmul.f32 0.027777778, %v676_v25  ;;  %v923_v6 = vadd.f32 %v3679_v50, %v885_v49  ;;  %v3081_v49 = vld [vmem:[%s3974_s4 + $0x8] sm:$0xff]  }
 0x155   : > { %v771_v5 = vmul.f32 0.027777778, %v721_v2  ;;  %3109 = vrsqrt.f32 %v787_v53  ;;  %v3698_v58 = vpack.c.bf16 %v938_v16, %v937_v1  ;;  %v886_v4 = vmul.f32 %v3672_v44, %v848_v45 }
 0x156   : > { %v3100_v54 = vpop.eup %3099  ;;  %v788_v62 = vadd.f32 1e-05, %v756_v61  ;;  %v901_v29 = vmul.f32 %v3672_v44, %v863_v0  ;;  %v3084_v0 = vld [vmem:[%s3975_s5 + $0x10] ss:$0 sps:$4 sm:$0x33]  }
 0x157   : > { %v803_v59 = vadd.f32 1e-05, %v771_v5  ;;  %v3102_v60 = vpop.eup %3101  ;;  %v864_v7 = vmul.f32 %v3100_v54, %v3466_v12  ;;  %v724_v21 = vpop.xlane.xlu1 %723  ;;  %2950 = vmatprep.mubr.msk.bf16.mxu1 %vm459_vm0, %v3698_v58  ;;  %v924_v8 = vadd.f32 %v3679_v50, %v886_v4 }
 0x158   : > { %v679_v9 = vpop.xlane.xlu0 %678  ;;  %v849_v63 = vmul.f32 %v3102_v60, %v3476_v13  ;;  %3111 = vrsqrt.f32 %v788_v62  ;;  %v772_v10 = vmul.f32 0.027777778, %v724_v21  ;;  %v939_v53 = vadd.f32 %v3679_v50, %v901_v29  ;;  %v3083_v29 = vld [vmem:[%s3974_s4 + $0x10] ss:$0 sps:$4 sm:$0x33]  }
 0x159   : > { %v757_v48 = vmul.f32 0.027777778, %v679_v9  ;;  %3113 = vrsqrt.f32 %v803_v59  ;;  %v3708_v11 = vpack.c.bf16 %v924_v8, %v923_v6  ;;  %v902_v12 = vmul.f32 %v3672_v44, %v864_v7 }
 0x15a   : > { %v3104_v3 = vpop.eup %3103  ;;  %v804_v55 = vadd.f32 1e-05, %v772_v10  ;;  %v887_v45 = vmul.f32 %v3672_v44, %v849_v63 }
 0x15b   : > { %v789_v30 = vadd.f32 1e-05, %v757_v48  ;;  %v3106_v56 = vpop.eup %3105  ;;  %v850_v20 = vmul.f32 %v3104_v3, %v3480_v17  ;;  %v682_v26 = vpop.xlane.xlu1 %681  ;;  %2935 = vmatmul.mubr.msk.bf16.vlgmr.msra.gmra.mrb[0].mxu0 %vm459_vm0, %v3708_v11  ;;  %v940_v57 = vadd.f32 %v3679_v50, %v902_v12 }
 0x15c   : > { %v727_v13 = vpop.xlane.xlu0 %726  ;;  %v865_v25 = vmul.f32 %v3106_v56, %v3490_v18  ;;  %3115 = vrsqrt.f32 %v804_v55  ;;  %v758_v2 = vmul.f32 0.027777778, %v682_v26  ;;  %3005 = vmatpush3.bf16.msra.mxu0 %v3664_v35  ;;  %v925_v59 = vadd.f32 %v3679_v50, %v887_v45 }
 0x15d   : > { %v773_v1 = vmul.f32 0.027777778, %v727_v13  ;;  %3117 = vrsqrt.f32 %v789_v30  ;;  %v3722_v17 = vpack.c.bf16 %v940_v57, %v939_v53  ;;  %v888_v16 = vmul.f32 %v3672_v44, %v850_v20  ;;  %3006 = vmatprep.subr.bf16.mxu0 %v3082_v19 }
 0x15e   : > { %v3108_v18 = vpop.eup %3107  ;;  %v790_v61 = vadd.f32 1e-05, %v758_v2  ;;  %v903_v7 = vmul.f32 %v3672_v44, %v865_v25  ;;  %v1383_v57 = vsel %vm1037_vm1, %v3083_v29, 0 }
 0x15f   : > { %v805_v5 = vadd.f32 1e-05, %v773_v1  ;;  %v3110_v4 = vpop.eup %3109  ;;  %v866_v35 = vmul.f32 %v3108_v18, %v3494_v22  ;;  %v730_v54 = vpop.xlane.xlu1 %729  ;;  %2951 = vmatmul.mubr.msk.bf16.vlgmr.msra.gmra.mrb[0].mxu1 %vm459_vm0, %v3722_v17  ;;  %v926_v60 = vadd.f32 %v3679_v50, %v888_v16 }
 0x160   : > { %v685_v62 = vpop.xlane.xlu0 %684  ;;  %v851_v21 = vmul.f32 %v3110_v4, %v3504_v23  ;;  %3119 = vrsqrt.f32 %v790_v61  ;;  %v774_v9 = vmul.f32 0.027777778, %v730_v54  ;;  %2967 = vmatpush3.bf16.msra.mxu1 %v3659_v34  ;;  %3007 = vmatpush3.bf16.msra.mxu0 %v3082_v19  ;;  %v1727_v23 = vsel %vm1037_vm1, %v3084_v0, 0 }
 0x161   : > { %v759_v6 = vmul.f32 0.027777778, %v685_v62  ;;  %3121 = vrsqrt.f32 %v805_v5  ;;  %v3739_v22 = vpack.c.bf16 %v926_v60, %v925_v59  ;;  %v904_v8 = vmul.f32 %v3672_v44, %v866_v35  ;;  %2968 = vmatprep.subr.bf16.mxu1 %v3081_v49  ;;  %3051 = vmatprep.subr.msk.bf16.mxu0 %vm1037_vm1, %v3084_v0 }
 0x162   : > { %v3112_v63 = vpop.eup %3111  ;;  %v806_v10 = vadd.f32 1e-05, %v774_v9  ;;  %v941_v55 = vadd.f32 %v3679_v50, %v903_v7  ;;  %v889_v56 = vmul.f32 %v3672_v44, %v851_v21 }
 0x163   : > { %v791_v48 = vadd.f32 1e-05, %v759_v6  ;;  %v3114_v12 = vpop.eup %3113  ;;  %v852_v34 = vmul.f32 %v3112_v63, %v3508_v27  ;;  %v688_v19 = vpop.xlane.xlu1 %687  ;;  %2938 = vmatprep.mubr.msk.bf16.mxu0 %vm459_vm0, %v3739_v22  ;;  %v942_v30 = vadd.f32 %v3679_v50, %v904_v8 }
 0x164   : > { %v733_v3 = vpop.xlane.xlu0 %732  ;;  %v867_v20 = vmul.f32 %v3114_v12, %v3518_v28  ;;  %3123 = vrsqrt.f32 %v806_v10  ;;  %v760_v26 = vmul.f32 0.027777778, %v688_v19  ;;  %2969 = vmatpush3.bf16.msra.mxu1 %v3081_v49  ;;  %3009 = vmatpush3.bf16.msra.mxu0 %v1727_v23  ;;  %v927_v0 = vadd.f32 %v3679_v50, %v889_v56 }
 0x165   : > { %v775_v13 = vmul.f32 0.027777778, %v733_v3  ;;  %3125 = vrsqrt.f32 %v791_v48  ;;  %v3754_v27 = vpack.c.bf16 %v942_v30, %v941_v55  ;;  %v890_v53 = vmul.f32 %v3672_v44, %v852_v34  ;;  %3050 = vmatprep.subr.msk.bf16.mxu1 %vm1037_vm1, %v3083_v29 }
 0x166   : > { %v3116_v45 = vpop.eup %3115  ;;  %v792_v25 = vadd.f32 1e-05, %v760_v26  ;;  %v905_v61 = vmul.f32 %v3672_v44, %v867_v20 }
 0x167   : > { %v807_v2 = vadd.f32 1e-05, %v775_v13  ;;  %v3118_v1 = vpop.eup %3117  ;;  %v868_v28 = vmul.f32 %v3116_v45, %v3522_v32  ;;  %v736_v16 = vpop.xlane.xlu1 %735  ;;  %2954 = vmatprep.mubr.msk.bf16.mxu1 %vm459_vm0, %v3754_v27  ;;  %v928_v18 = vadd.f32 %v3679_v50, %v890_v53 }
 0x168   : > { %v691_v49 = vpop.xlane.xlu0 %690  ;;  %v853_v5 = vmul.f32 %v3118_v1, %v3532_v33  ;;  %3127 = vrsqrt.f32 %v792_v25  ;;  %v776_v4 = vmul.f32 0.027777778, %v736_v16  ;;  %2971 = vmatpush3.bf16.msra.mxu1 %v1383_v57  ;;  %v943_v6 = vadd.f32 %v3679_v50, %v905_v61 }
 0x169   : > { %v761_v35 = vmul.f32 0.027777778, %v691_v49  ;;  %3129 = vrsqrt.f32 %v807_v2  ;;  %v3766_v54 = vpack.c.bf16 %v928_v18, %v927_v0  ;;  %v906_v32 = vmul.f32 %v3672_v44, %v868_v28 }
 0x16a   : > { %v3120_v62 = vpop.eup %3119  ;;  %v808_v59 = vadd.f32 1e-05, %v776_v4  ;;  %v891_v29 = vmul.f32 %v3672_v44, %v853_v5 }
 0x16b   : > { %v793_v60 = vadd.f32 1e-05, %v761_v35  ;;  %v3122_v7 = vpop.eup %3121  ;;  %v854_v21 = vmul.f32 %v3120_v62, %v3536_v37  ;;  %v694_v9 = vpop.xlane.xlu1 %693  ;;  %2939 = vmatmul.mubr.msk.bf16.gmra.mrb[4].mxu0 %vm459_vm0, %v3766_v54  ;;  %v944_v8 = vadd.f32 %v3679_v50, %v906_v32 }
 0x16c   : > { %v739_v33 = vpop.xlane.xlu0 %738  ;;  %v869_v23 = vmul.f32 %v3122_v7, %v3546_v38  ;;  %3131 = vrsqrt.f32 %v808_v59  ;;  %v762_v63 = vmul.f32 0.027777778, %v694_v9  ;;  %v929_v38 = vadd.f32 %v3679_v50, %v891_v29 }
 0x16d   : > { %v777_v10 = vmul.f32 0.027777778, %v739_v33  ;;  %3133 = vrsqrt.f32 %v793_v60  ;;  %v3776_v48 = vpack.c.bf16 %v944_v8, %v943_v6  ;;  %v892_v37 = vmul.f32 %v3672_v44, %v854_v21 }
 0x16e   : > { %v3124_v12 = vpop.eup %3123  ;;  %v794_v34 = vadd.f32 1e-05, %v762_v63  ;;  %v907_v26 = vmul.f32 %v3672_v44, %v869_v23 }
 0x16f   : > { %v809_v19 = vadd.f32 1e-05, %v777_v10  ;;  %v3126_v3 = vpop.eup %3125  ;;  %v870_v55 = vmul.f32 %v3124_v12, %v3550_v42  ;;  %v742_v30 = vpop.xlane.xlu1 %741  ;;  %2955 = vmatmul.mubr.msk.bf16.gmra.mrb[4].mxu1 %vm459_vm0, %v3776_v48  ;;  %v930_v20 = vadd.f32 %v3679_v50, %v892_v37 }
 0x170   : > { %v697_v56 = vpop.xlane.xlu0 %696  ;;  %v855_v13 = vmul.f32 %v3126_v3, %v3560_v43  ;;  %3135 = vrsqrt.f32 %v794_v34  ;;  %v778_v53 = vmul.f32 0.027777778, %v742_v30  ;;  %v945_v43 = vadd.f32 %v3679_v50, %v907_v26 }
 0x171   : > { %v763_v57 = vmul.f32 0.027777778, %v697_v56  ;;  %3137 = vrsqrt.f32 %v809_v19  ;;  %v3786_v45 = vpack.c.bf16 %v930_v20, %v929_v38  ;;  %v908_v42 = vmul.f32 %v3672_v44, %v870_v55 }
 0x172   : > { %v3128_v25 = vpop.eup %3127  ;;  %v810_v2 = vadd.f32 1e-05, %v778_v53  ;;  %v893_v61 = vmul.f32 %v3672_v44, %v855_v13 }
 0x173   : > { %v795_v1 = vadd.f32 1e-05, %v763_v57  ;;  %v3130_v28 = vpop.eup %3129  ;;  %v856_v16 = vmul.f32 %v3128_v25, %v3564_v47  ;;  %v700_v49 = vpop.xlane.xlu1 %699  ;;  %2942 = vmatprep.mubr.msk.bf16.mxu0 %vm459_vm0, %v3786_v45  ;;  %v946_v18 = vadd.f32 %v3679_v50, %v908_v42 }
 0x174   : > { %v745_v0 = vpop.xlane.xlu0 %744  ;;  %v871_v5 = vmul.f32 %v3130_v28, %v3577_v52  ;;  %3139 = vrsqrt.f32 %v810_v2  ;;  %v764_v4 = vmul.f32 0.027777778, %v700_v49  ;;  %v931_v52 = vadd.f32 %v3679_v50, %v893_v61 }
 0x175   : > { %v779_v35 = vmul.f32 0.027777778, %v745_v0  ;;  %3141 = vrsqrt.f32 %v795_v1  ;;  %v3796_v32 = vpack.c.bf16 %v946_v18, %v945_v43  ;;  %v894_v47 = vmul.f32 %v3672_v44, %v856_v16 }
 0x176   : > { %v3132_v62 = vpop.eup %3131  ;;  %v796_v59 = vadd.f32 1e-05, %v764_v4  ;;  %v909_v6 = vmul.f32 %v3672_v44, %v871_v5 }
 0x177   : > { %v811_v60 = vadd.f32 1e-05, %v779_v35  ;;  %v3134_v7 = vpop.eup %3133  ;;  %v872_v21 = vmul.f32 %v3132_v62, %v3581_v36  ;;  %v748_v9 = vpop.xlane.xlu1 %747  ;;  %2958 = vmatprep.mubr.msk.bf16.mxu1 %vm459_vm0, %v3796_v32  ;;  %v932_v33 = vadd.f32 %v3679_v50, %v894_v47 }
 0x178   : > { %v857_v8 = vmul.f32 %v3134_v7, %v3594_v40  ;;  %3143 = vrsqrt.f32 %v796_v59  ;;  %v780_v29 = vmul.f32 0.027777778, %v748_v9  ;;  %v947_v34 = vadd.f32 %v3679_v50, %v909_v6 }
 0x179   : > { %3145 = vrsqrt.f32 %v811_v60  ;;  %v958_v23 = vpack.c.bf16 %v932_v33, %v931_v52  ;;  %v910_v63 = vmul.f32 %v3672_v44, %v872_v21 }
 0x17a   : > { %v3136_v10 = vpop.eup %3135  ;;  %v812_v36 = vadd.f32 1e-05, %v780_v29  ;;  %v895_v3 = vmul.f32 %v3672_v44, %v857_v8 }
 0x17b   : > { %v3138_v37 = vpop.eup %3137  ;;  %v858_v12 = vmul.f32 %v3136_v10, %v3598_v41  ;;  %2943 = vmatmul.mubr.msk.bf16.gmra.mrb[8].mxu0 %vm459_vm0, %v958_v23  ;;  %v948_v19 = vadd.f32 %v3679_v50, %v910_v63 }
 0x17c   : > { %v873_v40 = vmul.f32 %v3138_v37, %v3611_v31  ;;  %3147 = vrsqrt.f32 %v812_v36  ;;  %v933_v41 = vadd.f32 %v3679_v50, %v895_v3 }
 0x17d   : > { %v3813_v55 = vpack.c.bf16 %v948_v19, %v947_v34  ;;  %v896_v30 = vmul.f32 %v3672_v44, %v858_v12 }
 0x17e   : > { %v3140_v56 = vpop.eup %3139  ;;  %v911_v13 = vmul.f32 %v3672_v44, %v873_v40 }
 0x17f   : > { %v3142_v38 = vpop.eup %3141  ;;  %v874_v20 = vmul.f32 %v3140_v56, %v3615_v46  ;;  %2959 = vmatmul.mubr.msk.bf16.gmra.mrb[8].mxu1 %vm459_vm0, %v3813_v55  ;;  %v934_v26 = vadd.f32 %v3679_v50, %v896_v30 }
 0x180   : > { %v859_v31 = vmul.f32 %v3142_v38, %v3628_v15  ;;  %v949_v46 = vadd.f32 %v3679_v50, %v911_v13 }
 0x181   : > { %v959_v53 = vpack.c.bf16 %v934_v26, %v933_v41  ;;  %v912_v57 = vmul.f32 %v3672_v44, %v874_v20 }
 0x182   : > { %v3144_v42 = vpop.eup %3143  ;;  %v897_v28 = vmul.f32 %v3672_v44, %v859_v31 }
 0x183   : > { %v3146_v25 = vpop.eup %3145  ;;  %v860_v2 = vmul.f32 %v3144_v42, %v3632_v51  ;;  %2946 = vmatprep.mubr.msk.bf16.mxu0 %vm459_vm0, %v959_v53  ;;  %v950_v1 = vadd.f32 %v3679_v50, %v912_v57 }
 0x184   : > { %v875_v16 = vmul.f32 %v3146_v25, %v3642_v14  ;;  %v935_v51 = vadd.f32 %v3679_v50, %v897_v28 }
 0x185   : > { %v967_v49 = vpack.c.bf16 %v950_v1, %v949_v46  ;;  %v898_v15 = vmul.f32 %v3672_v44, %v860_v2 }
 0x186   : > { %v3148_v0 = vpop.eup %3147  ;;  %v913_v61 = vmul.f32 %v3672_v44, %v875_v16 }
 0x187   : > { %v876_v43 = vmul.f32 %v3148_v0, %v3646_v24  ;;  %2962 = vmatprep.mubr.msk.bf16.mxu1 %vm459_vm0, %v967_v49  ;;  %v936_v18 = vadd.f32 %v3679_v50, %v898_v15 }
 0x188   : > { %v951_v14 = vadd.f32 %v3679_v50, %v913_v61 }
 0x189   : > { %v960_v5 = vpack.c.bf16 %v936_v18, %v935_v51  ;;  %v914_v4 = vmul.f32 %v3672_v44, %v876_v43 }
 0x18b   : > { %2947 = vmatmul.mubr.msk.bf16.gmra.mrb[12].mxu0 %vm459_vm0, %v960_v5  ;;  %v952_v35 = vadd.f32 %v3679_v50, %v914_v4 }
 0x18c   : > { %3010 = vmatprep.mubr.msk.bf16.mxu0 %vm459_vm0, %v3688_v39 }
 0x18d   : > { %v968_v24 = vpack.c.bf16 %v952_v35, %v951_v14 }
 0x18f   : > { %2963 = vmatmul.mubr.msk.bf16.gmra.mrb[12].mxu1 %vm459_vm0, %v968_v24 }
 0x190   : > { %2972 = vmatprep.mubr.msk.bf16.mxu1 %vm459_vm0, %v3688_v39 }
 0x193   : > { %3011 = vmatmul.mubr.msk.bf16.vlgmr.msra.gmra.mrb[16].mxu0 %vm459_vm0, %v3708_v11 }
 0x194   : > { %3014 = vmatprep.mubr.msk.bf16.mxu0 %vm459_vm0, %v3739_v22 }
 0x197   : > { %2973 = vmatmul.mubr.msk.bf16.vlgmr.msra.gmra.mrb[16].mxu1 %vm459_vm0, %v3708_v11 }
 0x198   : > { %2976 = vmatprep.mubr.msk.bf16.mxu1 %vm459_vm0, %v3739_v22 }
 0x19b   : > { %3015 = vmatmul.mubr.msk.bf16.gmra.mrb[20].mxu0 %vm459_vm0, %v3766_v54 }
 0x19c   : > { %3018 = vmatprep.mubr.msk.bf16.mxu0 %vm459_vm0, %v3786_v45 }
 0x19f   : > { %2977 = vmatmul.mubr.msk.bf16.gmra.mrb[20].mxu1 %vm459_vm0, %v3766_v54 }
 0x1a0   : > { %2980 = vmatprep.mubr.msk.bf16.mxu1 %vm459_vm0, %v3786_v45 }
 0x1a3   : > { %3019 = vmatmul.mubr.msk.bf16.gmra.mrb[24].mxu0 %vm459_vm0, %v958_v23 }
 0x1a4   : > { %3022 = vmatprep.mubr.msk.bf16.mxu0 %vm459_vm0, %v959_v53 }
 0x1a7   : > { %2981 = vmatmul.mubr.msk.bf16.gmra.mrb[24].mxu1 %vm459_vm0, %v958_v23 }
 0x1a8   : > { %2984 = vmatprep.mubr.msk.bf16.mxu1 %vm459_vm0, %v959_v53 }
 0x1ab   : > { %3023 = vmatmul.mubr.msk.bf16.gmra.mrb[28].mxu0 %vm459_vm0, %v960_v5 }
 0x1ac   : > { %3026 = vmatprep.mubr.msk.bf16.mxu0 %vm459_vm0, %v3698_v58 }
 0x1af   : > { %2985 = vmatmul.mubr.msk.bf16.gmra.mrb[28].mxu1 %vm459_vm0, %v960_v5 }
 0x1b0   : > { %2988 = vmatprep.mubr.msk.bf16.mxu1 %vm459_vm0, %v3698_v58 }
 0x1b3   : > { %3027 = vmatmul.mubr.msk.bf16.gmra.mrb[32].mxu0 %vm459_vm0, %v3722_v17 }
 0x1b4   : > { %3030 = vmatprep.mubr.msk.bf16.mxu0 %vm459_vm0, %v3754_v27 }
 0x1b7   : > { %2989 = vmatmul.mubr.msk.bf16.gmra.mrb[32].mxu1 %vm459_vm0, %v3722_v17 }
 0x1b8   : > { %2992 = vmatprep.mubr.msk.bf16.mxu1 %vm459_vm0, %v3754_v27 }
 0x1bb   : > { %3031 = vmatmul.mubr.msk.bf16.gmra.mrb[36].mxu0 %vm459_vm0, %v3776_v48 }
 0x1bc   : > { %3034 = vmatprep.mubr.msk.bf16.mxu0 %vm459_vm0, %v3796_v32 }
 0x1bf   : > { %2993 = vmatmul.mubr.msk.bf16.gmra.mrb[36].mxu1 %vm459_vm0, %v3776_v48 }
 0x1c0   : > { %2996 = vmatprep.mubr.msk.bf16.mxu1 %vm459_vm0, %v3796_v32 }
 0x1c3   : > { %3035 = vmatmul.mubr.msk.bf16.gmra.mrb[40].mxu0 %vm459_vm0, %v3813_v55 }
 0x1c4   : > { %3038 = vmatprep.mubr.msk.bf16.mxu0 %vm459_vm0, %v967_v49 }
 0x1c7   : > { %2997 = vmatmul.mubr.msk.bf16.gmra.mrb[40].mxu1 %vm459_vm0, %v3813_v55 }
 0x1c8   : > { %3000 = vmatprep.mubr.msk.bf16.mxu1 %vm459_vm0, %v967_v49 }
 0x1cb   : > { %3039 = vmatmul.mubr.msk.bf16.gmra.mrb[44].mxu0 %vm459_vm0, %v968_v24 }
 0x1cf   : > { %3001 = vmatmul.mubr.msk.bf16.gmra.mrb[44].mxu1 %vm459_vm0, %v968_v24 }
 0x22e   : > { %v2936_v44 = vpop.f32.mrb[0].mxu0 }
 0x22f   : > { %v1075_v50 = vpop.f32.mrb[1].mxu0 }
 0x230   : > { %v2937_v39 = vpop.f32.mrb[2].mxu0 }
 0x231   : > { %v2579_v58 = vpack.c.bf16 %v2937_v39, %v2936_v44  ;;  %v1078_v11 = vpop.f32.mrb[3].mxu0 }
 0x232   : > { %v2574_v17 = vpack.c.bf16 %v1078_v11, %v1075_v50  ;;  %v2952_v22 = vpop.f32.mrb[0].mxu1 }
 0x233   : > { %2826 = vst [vmem:[%s3899_s19 + $0x8] sm:$0xff] %v2579_v58   ;;  %v1139_v27 = vpop.f32.mrb[1].mxu1 }
 0x234   : > { %2575 = vst [vmem:[%s3899_s19] sm:$0xff] %v2574_v17   ;;  %v2953_v54 = vpop.f32.mrb[2].mxu1 }
 0x235   : > { %v2619_v48 = vpack.c.bf16 %v2953_v54, %v2952_v22  ;;  %v1142_v45 = vpop.f32.mrb[3].mxu1 }
 0x236   : > { %v2614_v32 = vpack.c.bf16 %v1142_v45, %v1139_v27 }
 0x237   : > { %2834 = vst [vmem:[%s3899_s19 + $0x48] sm:$0xff] %v2619_v48  }
 0x238   : > { %2833 = vst [vmem:[%s3899_s19 + $0x40] sm:$0xff] %v2614_v32  }
 0x23e   : > { %v2940_v47 = vpop.f32.mrb[4].mxu0 }
 0x23f   : > { %v1091_v62 = vpop.f32.mrb[5].mxu0 }
 0x240   : > { %v2941_v59 = vpop.f32.mrb[6].mxu0 }
 0x241   : > { %v2589_v60 = vpack.c.bf16 %v2941_v59, %v2940_v47  ;;  %v1094_v7 = vpop.f32.mrb[7].mxu0 }
 0x242   : > { %v2584_v21 = vpack.c.bf16 %v1094_v7, %v1091_v62  ;;  %v2956_v9 = vpop.f32.mrb[4].mxu1 }
 0x243   : > { %2828 = vst [vmem:[%s3899_s19 + $0x18] sm:$0xff] %v2589_v60   ;;  %v1155_v52 = vpop.f32.mrb[5].mxu1 }
 0x244   : > { %2827 = vst [vmem:[%s3899_s19 + $0x10] sm:$0xff] %v2584_v21   ;;  %v2957_v33 = vpop.f32.mrb[6].mxu1 }
 0x245   : > { %v2629_v6 = vpack.c.bf16 %v2957_v33, %v2956_v9  ;;  %v1158_v8 = vpop.f32.mrb[7].mxu1 }
 0x246   : > { %v2624_v29 = vpack.c.bf16 %v1158_v8, %v1155_v52 }
 0x247   : > { %2836 = vst [vmem:[%s3899_s19 + $0x58] sm:$0xff] %v2629_v6  }
 0x248   : > { %2835 = vst [vmem:[%s3899_s19 + $0x50] sm:$0xff] %v2624_v29  }
 0x24e   : > { %v2944_v23 = vpop.f32.mrb[8].mxu0 }
 0x24f   : > { %v1107_v63 = vpop.f32.mrb[9].mxu0 }
 0x250   : > { %v2945_v10 = vpop.f32.mrb[10].mxu0 }
 0x251   : > { %v2599_v36 = vpack.c.bf16 %v2945_v10, %v2944_v23  ;;  %v1110_v37 = vpop.f32.mrb[11].mxu0 }
 0x252   : > { %v2594_v12 = vpack.c.bf16 %v1110_v37, %v1107_v63  ;;  %v2960_v34 = vpop.f32.mrb[8].mxu1 }
 0x253   : > { %2830 = vst [vmem:[%s3899_s19 + $0x28] sm:$0xff] %v2599_v36   ;;  %v1171_v19 = vpop.f32.mrb[9].mxu1 }
 0x254   : > { %2829 = vst [vmem:[%s3899_s19 + $0x20] sm:$0xff] %v2594_v12   ;;  %v2961_v3 = vpop.f32.mrb[10].mxu1 }
 0x255   : > { %v2639_v40 = vpack.c.bf16 %v2961_v3, %v2960_v34  ;;  %v1174_v55 = vpop.f32.mrb[11].mxu1 }
 0x256   : > { %v2634_v30 = vpack.c.bf16 %v1174_v55, %v1171_v19 }
 0x257   : > { %2838 = vst [vmem:[%s3899_s19 + $0x68] sm:$0xff] %v2639_v40  }
 0x258   : > { %2837 = vst [vmem:[%s3899_s19 + $0x60] sm:$0xff] %v2634_v30  }
 0x25e   : > { %v2948_v56 = vpop.f32.mrb[12].mxu0 }
 0x25f   : > { %v1123_v38 = vpop.f32.mrb[13].mxu0 }
 0x260   : > { %v2949_v20 = vpop.f32.mrb[14].mxu0 }
 0x261   : > { %v2609_v41 = vpack.c.bf16 %v2949_v20, %v2948_v56  ;;  %v1126_v26 = vpop.f32.mrb[15].mxu0 }
 0x262   : > { %v2604_v13 = vpack.c.bf16 %v1126_v26, %v1123_v38  ;;  %v2964_v31 = vpop.f32.mrb[12].mxu1 }
 0x263   : > { %2832 = vst [vmem:[%s3899_s19 + $0x38] sm:$0xff] %v2609_v41   ;;  %v1187_v53 = vpop.f32.mrb[13].mxu1 }
 0x264   : > { %2831 = vst [vmem:[%s3899_s19 + $0x30] sm:$0xff] %v2604_v13   ;;  %v2965_v57 = vpop.f32.mrb[14].mxu1 }
 0x265   : > { %v2649_v42 = vpack.c.bf16 %v2965_v57, %v2964_v31  ;;  %v1190_v25 = vpop.f32.mrb[15].mxu1 }
 0x266   : > { %v2644_v2 = vpack.c.bf16 %v1190_v25, %v1187_v53  ;;  %v3012_v46 = vpop.f32.mrb[16].mxu0 }
 0x267   : > { %2840 = vst [vmem:[%s3899_s19 + $0x78] sm:$0xff] %v2649_v42   ;;  %v1763_v1 = vpop.f32.mrb[17].mxu0 }
 0x268   : > { %2839 = vst [vmem:[%s3899_s19 + $0x70] sm:$0xff] %v2644_v2   ;;  %v3013_v28 = vpop.f32.mrb[18].mxu0 }
 0x269   : > { %v2739_v16 = vpack.c.bf16 %v3013_v28, %v3012_v46  ;;  %v1766_v49 = vpop.f32.mrb[19].mxu0 }
 0x26a   : > { %v2734_v15 = vpack.c.bf16 %v1766_v49, %v1763_v1  ;;  %v2974_v0 = vpop.f32.mrb[16].mxu1 }
 0x26b   : > { %2856 = vst [vmem:[%s3921_s22 + $0x8] sm:$0xff] %v2739_v16   ;;  %v1419_v43 = vpop.f32.mrb[17].mxu1 }
 0x26c   : > { %2735 = vst [vmem:[%s3921_s22] sm:$0xff] %v2734_v15   ;;  %v2975_v51 = vpop.f32.mrb[18].mxu1 }
 0x26d   : > { %v2659_v18 = vpack.c.bf16 %v2975_v51, %v2974_v0  ;;  %v1422_v61 = vpop.f32.mrb[19].mxu1 }
 0x26e   : > { %v2654_v5 = vpack.c.bf16 %v1422_v61, %v1419_v43  ;;  %v3016_v4 = vpop.f32.mrb[20].mxu0 }
 0x26f   : > { %2841 = vst [vmem:[%s3929_s25 + $0x8] sm:$0xff] %v2659_v18   ;;  %v1779_v14 = vpop.f32.mrb[21].mxu0 }
 0x270   : > { %2655 = vst [vmem:[%s3929_s25] sm:$0xff] %v2654_v5   ;;  %v3017_v35 = vpop.f32.mrb[22].mxu0 }
 0x271   : > { %v2749_v24 = vpack.c.bf16 %v3017_v35, %v3016_v4  ;;  %v1782_v44 = vpop.f32.mrb[23].mxu0 }
 0x272   : > { %v2744_v50 = vpack.c.bf16 %v1782_v44, %v1779_v14  ;;  %v2978_v39 = vpop.f32.mrb[20].mxu1 }
 0x273   : > { %2858 = vst [vmem:[%s3921_s22 + $0x18] sm:$0xff] %v2749_v24   ;;  %v1435_v58 = vpop.f32.mrb[21].mxu1 }
 0x274   : > { %2857 = vst [vmem:[%s3921_s22 + $0x10] sm:$0xff] %v2744_v50   ;;  %v2979_v11 = vpop.f32.mrb[22].mxu1 }
 0x275   : > { %v2669_v17 = vpack.c.bf16 %v2979_v11, %v2978_v39  ;;  %v1438_v22 = vpop.f32.mrb[23].mxu1 }
 0x276   : > { %v2664_v27 = vpack.c.bf16 %v1438_v22, %v1435_v58  ;;  %v3020_v54 = vpop.f32.mrb[24].mxu0 }
 0x277   : > { %2843 = vst [vmem:[%s3929_s25 + $0x18] sm:$0xff] %v2669_v17   ;;  %v1795_v48 = vpop.f32.mrb[25].mxu0 }
 0x278   : > { %2842 = vst [vmem:[%s3929_s25 + $0x10] sm:$0xff] %v2664_v27   ;;  %v3021_v45 = vpop.f32.mrb[26].mxu0 }
 0x279   : > { %v2759_v32 = vpack.c.bf16 %v3021_v45, %v3020_v54  ;;  %v1798_v47 = vpop.f32.mrb[27].mxu0 }
 0x27a   : > { %v2754_v62 = vpack.c.bf16 %v1798_v47, %v1795_v48  ;;  %v2982_v59 = vpop.f32.mrb[24].mxu1 }
 0x27b   : > { %2860 = vst [vmem:[%s3921_s22 + $0x28] sm:$0xff] %v2759_v32   ;;  %v1451_v60 = vpop.f32.mrb[25].mxu1 }
 0x27c   : > { %2859 = vst [vmem:[%s3921_s22 + $0x20] sm:$0xff] %v2754_v62   ;;  %v2983_v7 = vpop.f32.mrb[26].mxu1 }
 0x27d   : > { %v2679_v21 = vpack.c.bf16 %v2983_v7, %v2982_v59  ;;  %v1454_v9 = vpop.f32.mrb[27].mxu1 }
 0x27e   : > { %v2674_v52 = vpack.c.bf16 %v1454_v9, %v1451_v60  ;;  %v3024_v33 = vpop.f32.mrb[28].mxu0 }
 0x27f   : > { %2845 = vst [vmem:[%s3929_s25 + $0x28] sm:$0xff] %v2679_v21   ;;  %v1811_v6 = vpop.f32.mrb[29].mxu0 }
 0x280   : > { %2844 = vst [vmem:[%s3929_s25 + $0x20] sm:$0xff] %v2674_v52   ;;  %v3025_v8 = vpop.f32.mrb[30].mxu0 }
 0x281   : > { %v2769_v29 = vpack.c.bf16 %v3025_v8, %v3024_v33  ;;  %v1814_v23 = vpop.f32.mrb[31].mxu0 }
 0x282   : > { %v2764_v63 = vpack.c.bf16 %v1814_v23, %v1811_v6  ;;  %v2986_v10 = vpop.f32.mrb[28].mxu1 }
 0x283   : > { %2862 = vst [vmem:[%s3921_s22 + $0x38] sm:$0xff] %v2769_v29   ;;  %v1467_v36 = vpop.f32.mrb[29].mxu1 }
 0x284   : > { %2861 = vst [vmem:[%s3921_s22 + $0x30] sm:$0xff] %v2764_v63   ;;  %v2987_v37 = vpop.f32.mrb[30].mxu1 }
 0x285   : > { %v2689_v12 = vpack.c.bf16 %v2987_v37, %v2986_v10  ;;  %v1470_v34 = vpop.f32.mrb[31].mxu1 }
 0x286   : > { %v2684_v19 = vpack.c.bf16 %v1470_v34, %v1467_v36  ;;  %v3028_v3 = vpop.f32.mrb[32].mxu0 }
 0x287   : > { %2847 = vst [vmem:[%s3929_s25 + $0x38] sm:$0xff] %v2689_v12   ;;  %v1827_v40 = vpop.f32.mrb[33].mxu0 }
 0x288   : > { %2846 = vst [vmem:[%s3929_s25 + $0x30] sm:$0xff] %v2684_v19   ;;  %v3029_v55 = vpop.f32.mrb[34].mxu0 }
 0x289   : > { %v2779_v30 = vpack.c.bf16 %v3029_v55, %v3028_v3  ;;  %v1830_v56 = vpop.f32.mrb[35].mxu0 }
 0x28a   : > { %v2774_v38 = vpack.c.bf16 %v1830_v56, %v1827_v40  ;;  %v2990_v20 = vpop.f32.mrb[32].mxu1 }
 0x28b   : > { %2864 = vst [vmem:[%s3921_s22 + $0x48] sm:$0xff] %v2779_v30   ;;  %v1483_v41 = vpop.f32.mrb[33].mxu1 }
 0x28c   : > { %2863 = vst [vmem:[%s3921_s22 + $0x40] sm:$0xff] %v2774_v38   ;;  %v2991_v26 = vpop.f32.mrb[34].mxu1 }
 0x28d   : > { %v2699_v13 = vpack.c.bf16 %v2991_v26, %v2990_v20  ;;  %v1486_v31 = vpop.f32.mrb[35].mxu1 }
 0x28e   : > { %v2694_v53 = vpack.c.bf16 %v1486_v31, %v1483_v41  ;;  %v3032_v57 = vpop.f32.mrb[36].mxu0 }
 0x28f   : > { %2849 = vst [vmem:[%s3929_s25 + $0x48] sm:$0xff] %v2699_v13   ;;  %v1843_v42 = vpop.f32.mrb[37].mxu0 }
 0x290   : > { %2848 = vst [vmem:[%s3929_s25 + $0x40] sm:$0xff] %v2694_v53   ;;  %v3033_v25 = vpop.f32.mrb[38].mxu0 }
 0x291   : > { %v2789_v2 = vpack.c.bf16 %v3033_v25, %v3032_v57  ;;  %v1846_v46 = vpop.f32.mrb[39].mxu0 }
 0x292   : > { %v2784_v1 = vpack.c.bf16 %v1846_v46, %v1843_v42  ;;  %v2994_v28 = vpop.f32.mrb[36].mxu1 }
 0x293   : > { %2866 = vst [vmem:[%s3921_s22 + $0x58] sm:$0xff] %v2789_v2   ;;  %v1499_v16 = vpop.f32.mrb[37].mxu1 }
 0x294   : > { %2865 = vst [vmem:[%s3921_s22 + $0x50] sm:$0xff] %v2784_v1   ;;  %v2995_v49 = vpop.f32.mrb[38].mxu1 }
 0x295   : > { %v2709_v15 = vpack.c.bf16 %v2995_v49, %v2994_v28  ;;  %v1502_v0 = vpop.f32.mrb[39].mxu1 }
 0x296   : > { %v2704_v43 = vpack.c.bf16 %v1502_v0, %v1499_v16  ;;  %v3036_v51 = vpop.f32.mrb[40].mxu0 }
 0x297   : > { %2851 = vst [vmem:[%s3929_s25 + $0x58] sm:$0xff] %v2709_v15   ;;  %v1859_v18 = vpop.f32.mrb[41].mxu0 }
 0x298   : > { %2850 = vst [vmem:[%s3929_s25 + $0x50] sm:$0xff] %v2704_v43   ;;  %v3037_v61 = vpop.f32.mrb[42].mxu0 }
 0x299   : > { %v2799_v5 = vpack.c.bf16 %v3037_v61, %v3036_v51  ;;  %v1862_v4 = vpop.f32.mrb[43].mxu0 }
 0x29a   : > { %v2794_v14 = vpack.c.bf16 %v1862_v4, %v1859_v18  ;;  %v2998_v35 = vpop.f32.mrb[40].mxu1 }
 0x29b   : > { %2868 = vst [vmem:[%s3921_s22 + $0x68] sm:$0xff] %v2799_v5   ;;  %v1515_v24 = vpop.f32.mrb[41].mxu1 }
 0x29c   : > { %2867 = vst [vmem:[%s3921_s22 + $0x60] sm:$0xff] %v2794_v14   ;;  %v2999_v44 = vpop.f32.mrb[42].mxu1 }
 0x29d   : > { %v2719_v50 = vpack.c.bf16 %v2999_v44, %v2998_v35  ;;  %v1518_v39 = vpop.f32.mrb[43].mxu1 }
 0x29e   : > { %v2714_v58 = vpack.c.bf16 %v1518_v39, %v1515_v24  ;;  %v3040_v11 = vpop.f32.mrb[44].mxu0 }
 0x29f   : > { %2853 = vst [vmem:[%s3929_s25 + $0x68] sm:$0xff] %v2719_v50   ;;  %v1875_v17 = vpop.f32.mrb[45].mxu0 }
 0x2a0   : > { %2852 = vst [vmem:[%s3929_s25 + $0x60] sm:$0xff] %v2714_v58   ;;  %v3041_v22 = vpop.f32.mrb[46].mxu0 }
 0x2a1   : > { %v2809_v27 = vpack.c.bf16 %v3041_v22, %v3040_v11  ;;  %v1878_v54 = vpop.f32.mrb[47].mxu0 }
 0x2a2   : > { %v2804_v48 = vpack.c.bf16 %v1878_v54, %v1875_v17  ;;  %v3002_v45 = vpop.f32.mrb[44].mxu1 }
 0x2a3   : > { %2870 = vst [vmem:[%s3921_s22 + $0x78] sm:$0xff] %v2809_v27   ;;  %v1531_v32 = vpop.f32.mrb[45].mxu1 }
 0x2a4   : > { %2869 = vst [vmem:[%s3921_s22 + $0x70] sm:$0xff] %v2804_v48   ;;  %v3003_v47 = vpop.f32.mrb[46].mxu1 }
 0x2a5   : > { %v2729_v62 = vpack.c.bf16 %v3003_v47, %v3002_v45  ;;  %v1534_v59 = vpop.f32.mrb[47].mxu1 }
 0x2a6   : > { %v2724_v60 = vpack.c.bf16 %v1534_v59, %v1531_v32 }
 0x2a7   : > { %2855 = vst [vmem:[%s3929_s25 + $0x78] sm:$0xff] %v2729_v62  }
 0x2a8   : > { %2854 = vst [vmem:[%s3929_s25 + $0x70] sm:$0xff] %v2724_v60  }
 0x2a9 PF: > { %s19_s29 = sadd.s32 1, %s3171_s29   ;;  %s3979_s27 = smov %s3167_s28 }
 0x2aa   : > { %p16_p5 = scmp.ge.s32.totalorder %s19_s29, 4   ;;  %s3980_s28 = smov %s3982_s30 }
 0x2ac   :  { %18 = sbr.rel (!%p16_p5) target bundleno = 2 (0x2), region = 98 }

// kernel: t2t_module4_forward.3
= control target key start
LH: loop header
LB: loop body
LE: loop exit
PB: predicated region body
PF: predicated region fallthrough
CT: control target
= control target key end

     0   :  { %s4639_s21 = smov 0   ;;  %s4641_s22 = smov 0   ;;  %s5840_s0 = inlined_call_operand.vmem [shape: bf16[2,256,128], index: 0, kind: input, shape index: {}]   ;;  %s5841_s1 = inlined_call_operand.vmem [shape: bf16[2,256,128], index: 1, kind: input, shape index: {}]   ;;  %s5842_s2 = inlined_call_operand.vmem [shape: bf16[2,256,128], index: 2, kind: input, shape index: {}, may-alias: {2,3}]   ;;  %s5843_s3 = inlined_call_operand.vmem [shape: bf16[2,256,128], index: 3, kind: input, shape index: {}, may-alias: {2,3}]   ;;  %s5844_s4 = inlined_call_operand.vmem [shape: bf16[128,128], index: 4, kind: input, shape index: {}]   ;;  %s5845_s5 = inlined_call_operand.vmem [shape: f32[1,128], index: 5, kind: input, shape index: {}]   ;;  %s5846_s6 = inlined_call_operand.vmem [shape: f32[1,128], index: 6, kind: input, shape index: {}]   ;;  %s5847_s7 = inlined_call_operand.vmem [shape: f32[1,128], index: 7, kind: input, shape index: {}]   ;;  %s5848_s8 = inlined_call_operand.vmem [shape: bf16[128,128], index: 8, kind: input, shape index: {}]   ;;  %s5849_s9 = inlined_call_operand.vmem [shape: f32[1,128], index: 9, kind: input, shape index: {}]   ;;  %s5850_s10 = inlined_call_operand.vmem [shape: bf16[128,128], index: 10, kind: input, shape index: {}]   ;;  %s5851_s11 = inlined_call_operand.vmem [shape: f32[1,128], index: 11, kind: input, shape index: {}]   ;;  %s5852_s12 = inlined_call_operand.vmem [shape: f32[2,128,256], index: 12, kind: output, shape index: {}]  }
   0x1   :  { %s4643_s23 = smov 0  }
   0x2 LB: > { %s34_s24 = sadd.s32 1, %s4568_s22  ;;  %p3568_p0 = scmp.ge.s32.totalorder %s4572_s23, 1  ;;  %s4572_s23 = sphi %s4643_s23, %s22_s23   ;;  %s4568_s22 = sphi %s4641_s22, %s5947_s22   ;;  %s4564_s21 = sphi %s4639_s21, %s5946_s21  }
   0x3   : > { %p36_p1 = scmp.ge.s32.totalorder %s34_s24, 2  ;;  %p420_p2 = scmp.lt.s32.totalorder %s4572_s23, 3 }
   0x5   : > { %s5949_s24 = smov (%p36_p1, %s34_s24), 0  ;;  %p421_p3 = pnand %p3568_p0, %p420_p2 }
   0x7   : > { %424 = sbr.rel (%p421_p3) target bundleno = 1947 (0x79b), region = 68 }
   0xe   : > { %p490_p4 = scmp.lt.s32.totalorder %s4564_s21, 1 }
  0x10   : > { %s5951_s21 = smov (!%p490_p4, %s4564_s21), 1 }
  0x11   : > { %s4660_s25 = sshll.u32 %s5951_s21, 7 }
  0x12   : > { %s4666_s28 = scalar_lea.vmem %s5841_s1, %s4660_s25  ;;  %s4677_s13 = scalar_lea.vmem %s5840_s0, %s4660_s25 }
  0x13   : > { %v4158_v0 = vld [vmem:[%s4666_s28 + $0x40] sm:$0xff]   ;;  %v4160_v2 = vld [vmem:[%s4666_s28 + $0x48] sm:$0xff]   ;;  %v4162_v4 = vld [vmem:[%s4666_s28 + $0x50] sm:$0xff]   ;;  %s4710_s16 = scalar_lea.vmem %s5842_s2, %s4660_s25  ;;  %s5012_s27 = scalar_lea.vmem %s5843_s3, %s4660_s25 }
  0x14   : > { %v4159_v1 = vld [vmem:[%s4666_s28] sm:$0xff]   ;;  %3742 = vmatprep.subr.bf16.mxu0 %v4158_v0  ;;  %v4161_v3 = vld [vmem:[%s4666_s28 + $0x8] sm:$0xff]   ;;  %v4163_v5 = vld [vmem:[%s4666_s28 + $0x10] sm:$0xff]  }
  0x15   : > { %3743 = vmatpush3.bf16.xpose.msra.mxu0 %v4159_v1  ;;  %v4164_v6 = vld [vmem:[%s4666_s28 + $0x58] sm:$0xff]   ;;  %v4174_v7 = vld [vmem:[%s4677_s13] sm:$0xff]   ;;  %v4168_v11 = vld [vmem:[%s4666_s28 + $0x68] sm:$0xff]  }
  0x16   : > { %3744 = vmatprep.subr.bf16.mxu0 %v4160_v2  ;;  %3758 = vmatprep.mubr.bf16.mxu0 %v4174_v7  ;;  %v4165_v8 = vld [vmem:[%s4666_s28 + $0x18] sm:$0xff]   ;;  %v4166_v9 = vld [vmem:[%s4666_s28 + $0x60] sm:$0xff]   ;;  %v4169_v12 = vld [vmem:[%s4666_s28 + $0x28] sm:$0xff]  }
  0x17   : > { %v4167_v10 = vld [vmem:[%s4666_s28 + $0x20] sm:$0xff]   ;;  %v4170_v13 = vld [vmem:[%s4666_s28 + $0x70] sm:$0xff]   ;;  %v4172_v15 = vld [vmem:[%s4666_s28 + $0x78] sm:$0xff]  }
  0x18   : > { %v4171_v14 = vld [vmem:[%s4666_s28 + $0x30] sm:$0xff]   ;;  %v4173_v16 = vld [vmem:[%s4666_s28 + $0x38] sm:$0xff]   ;;  %v4175_v17 = vld [vmem:[%s4677_s13 + $0x8] sm:$0xff]   ;;  %s3662_s28 = sshll.u32 %s5951_s21, 8 }
  0x19   : > { %v4176_v18 = vld [vmem:[%s4677_s13 + $0x10] sm:$0xff]   ;;  %v4177_v19 = vld [vmem:[%s4677_s13 + $0x18] sm:$0xff]   ;;  %v4178_v20 = vld [vmem:[%s4677_s13 + $0x20] sm:$0xff]   ;;  %s5797_s30 = scalar_lea.vmem %s5852_s12, %s3662_s28 }
  0x1a   : > { %v4179_v21 = vld [vmem:[%s4677_s13 + $0x28] sm:$0xff]   ;;  %v4180_v22 = vld [vmem:[%s4677_s13 + $0x30] sm:$0xff]   ;;  %v4181_v23 = vld [vmem:[%s4677_s13 + $0x38] sm:$0xff]  }
  0x1b   : > { %v4182_v24 = vld [vmem:[%s4677_s13 + $0x40] sm:$0xff]   ;;  %v4183_v25 = vld [vmem:[%s4677_s13 + $0x48] sm:$0xff]   ;;  %v4184_v26 = vld [vmem:[%s4677_s13 + $0x50] sm:$0xff]  }
  0x1c   : > { %v4185_v27 = vld [vmem:[%s4677_s13 + $0x58] sm:$0xff]   ;;  %v4186_v28 = vld [vmem:[%s4677_s13 + $0x60] sm:$0xff]   ;;  %v4187_v29 = vld [vmem:[%s4677_s13 + $0x68] sm:$0xff]  }
  0x1d   : > { %3745 = vmatpush3.bf16.xpose.msra.mxu0 %v4161_v3  ;;  %v4188_v30 = vld [vmem:[%s4677_s13 + $0x70] sm:$0xff]   ;;  %v4189_v31 = vld [vmem:[%s4677_s13 + $0x78] sm:$0xff]   ;;  %v4190_v32 = vld [vmem:[%s4710_s16 + $0x40] sm:$0xff]  }
  0x1e   : > { %3746 = vmatprep.subr.bf16.mxu0 %v4162_v4  ;;  %v4191_v34 = vld [vmem:[%s4710_s16] sm:$0xff]   ;;  %3790 = vmatprep.subr.bf16.mxu1 %v4190_v32  ;;  %v4192_v36 = vld [vmem:[%s4710_s16 + $0x48] sm:$0xff]   ;;  %v4194_v41 = vld [vmem:[%s4710_s16 + $0x50] sm:$0xff]  }
  0x1f   : > { %3791 = vmatpush3.bf16.msra.mxu1 %v4191_v34  ;;  %v4193_v39 = vld [vmem:[%s4710_s16 + $0x8] sm:$0xff]   ;;  %v4195_v43 = vld [vmem:[%s4710_s16 + $0x10] sm:$0xff]   ;;  %v4196_v55 = vld [vmem:[%s4710_s16 + $0x58] sm:$0xff]  }
  0x20   : > { %3792 = vmatprep.subr.bf16.mxu1 %v4192_v36  ;;  %v4197_v57 = vld [vmem:[%s4710_s16 + $0x18] sm:$0xff]   ;;  %v4198_v58 = vld [vmem:[%s4710_s16 + $0x60] sm:$0xff]   ;;  %v4200_v1 = vld [vmem:[%s4710_s16 + $0x68] sm:$0xff]  }
  0x21   : > { %v4199_v60 = vld [vmem:[%s4710_s16 + $0x20] sm:$0xff]   ;;  %v4201_v3 = vld [vmem:[%s4710_s16 + $0x28] sm:$0xff]   ;;  %v4202_v4 = vld [vmem:[%s4710_s16 + $0x70] sm:$0xff]  }
  0x23   : > { %3793 = vmatpush3.bf16.msra.mxu1 %v4193_v39 }
  0x24   : > { %3794 = vmatprep.subr.bf16.mxu1 %v4194_v41 }
  0x25   : > { %3747 = vmatpush3.bf16.xpose.msra.mxu0 %v4163_v5 }
  0x26   : > { %3748 = vmatprep.subr.bf16.mxu0 %v4164_v6  ;;  %v4203_v6 = vld [vmem:[%s4710_s16 + $0x30] sm:$0xff]  }
  0x27   : > { %3795 = vmatpush3.bf16.msra.mxu1 %v4195_v43 }
  0x28   : > { %3796 = vmatprep.subr.bf16.mxu1 %v4196_v55 }
  0x2b   : > { %3797 = vmatpush3.bf16.msra.mxu1 %v4197_v57 }
  0x2c   : > { %3798 = vmatprep.subr.bf16.mxu1 %v4198_v58 }
  0x2d   : > { %3749 = vmatpush3.bf16.xpose.msra.mxu0 %v4165_v8 }
  0x2e   : > { %3750 = vmatprep.subr.bf16.mxu0 %v4166_v9 }
  0x2f   : > { %3799 = vmatpush3.bf16.msra.mxu1 %v4199_v60 }
  0x30   : > { %3800 = vmatprep.subr.bf16.mxu1 %v4200_v1 }
  0x33   : > { %3801 = vmatpush3.bf16.msra.mxu1 %v4201_v3 }
  0x34   : > { %3802 = vmatprep.subr.bf16.mxu1 %v4202_v4 }
  0x35   : > { %3751 = vmatpush3.bf16.xpose.msra.mxu0 %v4167_v10 }
  0x36   : > { %3752 = vmatprep.subr.bf16.mxu0 %v4168_v11  ;;  %v4204_v11 = vld [vmem:[%s4710_s16 + $0x78] sm:$0xff]  }
  0x37   : > { %3803 = vmatpush3.bf16.msra.mxu1 %v4203_v6 }
  0x38   : > { %3804 = vmatprep.subr.bf16.mxu1 %v4204_v11 }
  0x3d   : > { %3753 = vmatpush3.bf16.xpose.msra.mxu0 %v4169_v12 }
  0x3e   : > { %3754 = vmatprep.subr.bf16.mxu0 %v4170_v13  ;;  %v4205_v13 = vld [vmem:[%s4710_s16 + $0x38] sm:$0xff]  }
  0x3f   : > { %3805 = vmatpush3.bf16.msra.mxu1 %v4205_v13 }
  0x45   : > { %3755 = vmatpush3.bf16.xpose.msra.mxu0 %v4171_v14 }
  0x46   : > { %3756 = vmatprep.subr.bf16.mxu0 %v4172_v15 }
  0x4d   : > { %3757 = vmatpush3.bf16.xpose.msra.mxu0 %v4173_v16 }
  0x54   : > { %3759 = vmatmul.mubr.bf16.vlgmr.msra.gmra.mrb[0].mxu0 %v4174_v7 }
  0x55   : > { %3760 = vmatprep.mubr.bf16.mxu0 %v4175_v17 }
  0x5c   : > { %3761 = vmatmul.mubr.bf16.gmra.mrb[4].mxu0 %v4175_v17 }
  0x5d   : > { %3762 = vmatprep.mubr.bf16.mxu0 %v4176_v18 }
  0x64   : > { %3763 = vmatmul.mubr.bf16.gmra.mrb[8].mxu0 %v4176_v18 }
  0x65   : > { %3764 = vmatprep.mubr.bf16.mxu0 %v4177_v19 }
  0x6c   : > { %3765 = vmatmul.mubr.bf16.gmra.mrb[12].mxu0 %v4177_v19 }
  0x6d   : > { %3766 = vmatprep.mubr.bf16.mxu0 %v4178_v20 }
  0x74   : > { %3767 = vmatmul.mubr.bf16.gmra.mrb[16].mxu0 %v4178_v20 }
  0x75   : > { %3768 = vmatprep.mubr.bf16.mxu0 %v4179_v21 }
  0x7c   : > { %3769 = vmatmul.mubr.bf16.gmra.mrb[20].mxu0 %v4179_v21 }
  0x7d   : > { %3770 = vmatprep.mubr.bf16.mxu0 %v4180_v22 }
  0x84   : > { %3771 = vmatmul.mubr.bf16.gmra.mrb[24].mxu0 %v4180_v22 }
  0x85   : > { %3772 = vmatprep.mubr.bf16.mxu0 %v4181_v23 }
  0x8c   : > { %3773 = vmatmul.mubr.bf16.gmra.mrb[28].mxu0 %v4181_v23 }
  0x8d   : > { %3774 = vmatprep.mubr.bf16.mxu0 %v4182_v24 }
  0x94   : > { %3775 = vmatmul.mubr.bf16.gmra.mrb[32].mxu0 %v4182_v24 }
  0x95   : > { %3776 = vmatprep.mubr.bf16.mxu0 %v4183_v25 }
  0x9c   : > { %3777 = vmatmul.mubr.bf16.gmra.mrb[36].mxu0 %v4183_v25 }
  0x9d   : > { %3778 = vmatprep.mubr.bf16.mxu0 %v4184_v26 }
  0xa4   : > { %3779 = vmatmul.mubr.bf16.gmra.mrb[40].mxu0 %v4184_v26 }
  0xa5   : > { %3780 = vmatprep.mubr.bf16.mxu0 %v4185_v27 }
  0xac   : > { %3781 = vmatmul.mubr.bf16.gmra.mrb[44].mxu0 %v4185_v27 }
  0xad   : > { %3782 = vmatprep.mubr.bf16.mxu0 %v4186_v28 }
  0xb4   : > { %3783 = vmatmul.mubr.bf16.gmra.mrb[48].mxu0 %v4186_v28 }
  0xb5   : > { %3784 = vmatprep.mubr.bf16.mxu0 %v4187_v29 }
  0xbc   : > { %3785 = vmatmul.mubr.bf16.gmra.mrb[52].mxu0 %v4187_v29 }
  0xbd   : > { %3786 = vmatprep.mubr.bf16.mxu0 %v4188_v30 }
  0xc4   : > { %3787 = vmatmul.mubr.bf16.gmra.mrb[56].mxu0 %v4188_v30 }
  0xc5   : > { %3788 = vmatprep.mubr.bf16.mxu0 %v4189_v31 }
  0xcc   : > { %3789 = vmatmul.mubr.bf16.gmra.mrb[60].mxu0 %v4189_v31 }
 0x127   : > { %v4713_v33 = vpop.f32.mrb[0].mxu0 }
 0x128   : > { %v4716_v35 = vpop.f32.mrb[1].mxu0 }
 0x129   : > { %v4719_v37 = vpop.f32.mrb[2].mxu0  ;;  %v979_v38 = vmax.f32 %v4713_v33, %v4716_v35 }
 0x12a   : > { %v4724_v40 = vpop.f32.mrb[3].mxu0 }
 0x12b   : > { %980 = vmax.xlane.f32.xlu0 %v979_v38  ;;  %v982_v42 = vmax.f32 %v4719_v37, %v4724_v40 }
 0x12f   : > { %983 = vmax.xlane.f32.xlu0 %v982_v42  ;;  %v4730_v44 = vpop.f32.mrb[4].mxu0 }
 0x130   : > { %v4732_v45 = vpop.f32.mrb[5].mxu0 }
 0x131   : > { %v4734_v46 = vpop.f32.mrb[6].mxu0  ;;  %v985_v47 = vmax.f32 %v4730_v44, %v4732_v45 }
 0x132   : > { %v4738_v48 = vpop.f32.mrb[7].mxu0 }
 0x133   : > { %986 = vmax.xlane.f32.xlu1 %v985_v47  ;;  %v988_v49 = vmax.f32 %v4734_v46, %v4738_v48 }
 0x137   : > { %989 = vmax.xlane.f32.xlu1 %v988_v49  ;;  %v4742_v50 = vpop.f32.mrb[8].mxu0 }
 0x138   : > { %v4744_v51 = vpop.f32.mrb[9].mxu0 }
 0x139   : > { %v4746_v52 = vpop.f32.mrb[10].mxu0  ;;  %v991_v53 = vmax.f32 %v4742_v50, %v4744_v51 }
 0x13a   : > { %v4750_v54 = vpop.f32.mrb[11].mxu0 }
 0x13b   : > { %992 = vmax.xlane.f32.xlu0 %v991_v53  ;;  %v994_v56 = vmax.f32 %v4746_v52, %v4750_v54 }
 0x13d   : > { %995 = vmax.xlane.f32.xlu1 %v994_v56 }
 0x13f   : > { %v4757_v59 = vpop.f32.mrb[12].mxu0 }
 0x140   : > { %v4760_v61 = vpop.f32.mrb[13].mxu0 }
 0x141   : > { %v4762_v62 = vpop.f32.mrb[14].mxu0  ;;  %v997_v63 = vmax.f32 %v4757_v59, %v4760_v61 }
 0x142   : > { %v4766_v0 = vpop.f32.mrb[15].mxu0 }
 0x143   : > { %998 = vmax.xlane.f32.xlu0 %v997_v63  ;;  %v1000_v2 = vmax.f32 %v4762_v62, %v4766_v0 }
 0x145   : > { %1001 = vmax.xlane.f32.xlu1 %v1000_v2 }
 0x147   : > { %v4773_v5 = vpop.f32.mrb[16].mxu0 }
 0x148   : > { %v4776_v7 = vpop.f32.mrb[17].mxu0 }
 0x149   : > { %v4778_v8 = vpop.f32.mrb[18].mxu0  ;;  %v1003_v9 = vmax.f32 %v4773_v5, %v4776_v7 }
 0x14a   : > { %v4782_v10 = vpop.f32.mrb[19].mxu0 }
 0x14b   : > { %1004 = vmax.xlane.f32.xlu0 %v1003_v9  ;;  %v1006_v12 = vmax.f32 %v4778_v8, %v4782_v10 }
 0x14d   : > { %1007 = vmax.xlane.f32.xlu1 %v1006_v12 }
 0x14f   : > { %v4788_v14 = vpop.f32.mrb[20].mxu0 }
 0x150   : > { %v4790_v15 = vpop.f32.mrb[21].mxu0 }
 0x151   : > { %v4792_v16 = vpop.f32.mrb[22].mxu0  ;;  %v1009_v17 = vmax.f32 %v4788_v14, %v4790_v15 }
 0x152   : > { %v4796_v18 = vpop.f32.mrb[23].mxu0 }
 0x153   : > { %1010 = vmax.xlane.f32.xlu0 %v1009_v17  ;;  %v1012_v19 = vmax.f32 %v4792_v16, %v4796_v18 }
 0x155   : > { %1013 = vmax.xlane.f32.xlu1 %v1012_v19 }
 0x157   : > { %v4800_v20 = vpop.f32.mrb[24].mxu0 }
 0x158   : > { %v4802_v21 = vpop.f32.mrb[25].mxu0 }
 0x159   : > { %v4804_v22 = vpop.f32.mrb[26].mxu0  ;;  %v1015_v23 = vmax.f32 %v4800_v20, %v4802_v21 }
 0x15a   : > { %v4808_v24 = vpop.f32.mrb[27].mxu0 }
 0x15b   : > { %1016 = vmax.xlane.f32.xlu0 %v1015_v23  ;;  %v1018_v25 = vmax.f32 %v4804_v22, %v4808_v24 }
 0x15d   : > { %1019 = vmax.xlane.f32.xlu1 %v1018_v25 }
 0x15f   : > { %v4812_v26 = vpop.f32.mrb[28].mxu0 }
 0x160   : > { %v4814_v27 = vpop.f32.mrb[29].mxu0 }
 0x161   : > { %v4816_v28 = vpop.f32.mrb[30].mxu0  ;;  %v1021_v29 = vmax.f32 %v4812_v26, %v4814_v27 }
 0x162   : > { %v4820_v30 = vpop.f32.mrb[31].mxu0 }
 0x163   : > { %1022 = vmax.xlane.f32.xlu0 %v1021_v29  ;;  %v1024_v31 = vmax.f32 %v4816_v28, %v4820_v30 }
 0x165   : > { %1025 = vmax.xlane.f32.xlu1 %v1024_v31 }
 0x167   : > { %v4824_v32 = vpop.f32.mrb[32].mxu0 }
 0x168   : > { %v4826_v34 = vpop.f32.mrb[33].mxu0 }
 0x169   : > { %v4828_v36 = vpop.f32.mrb[34].mxu0  ;;  %v1027_v38 = vmax.f32 %v4824_v32, %v4826_v34 }
 0x16a   : > { %v4832_v39 = vpop.f32.mrb[35].mxu0 }
 0x16b   : > { %1028 = vmax.xlane.f32.xlu0 %v1027_v38  ;;  %v1030_v41 = vmax.f32 %v4828_v36, %v4832_v39 }
 0x16d   : > { %1031 = vmax.xlane.f32.xlu1 %v1030_v41 }
 0x16f   : > { %v4836_v42 = vpop.f32.mrb[36].mxu0 }
 0x170   : > { %v4838_v43 = vpop.f32.mrb[37].mxu0 }
 0x171   : > { %v4840_v47 = vpop.f32.mrb[38].mxu0  ;;  %v1033_v49 = vmax.f32 %v4836_v42, %v4838_v43 }
 0x172   : > { %v4844_v53 = vpop.f32.mrb[39].mxu0 }
 0x173   : > { %1034 = vmax.xlane.f32.xlu0 %v1033_v49  ;;  %v1036_v55 = vmax.f32 %v4840_v47, %v4844_v53 }
 0x175   : > { %1037 = vmax.xlane.f32.xlu1 %v1036_v55 }
 0x177   : > { %v4848_v56 = vpop.f32.mrb[40].mxu0 }
 0x178   : > { %v4850_v57 = vpop.f32.mrb[41].mxu0 }
 0x179   : > { %v4852_v58 = vpop.f32.mrb[42].mxu0  ;;  %v1039_v60 = vmax.f32 %v4848_v56, %v4850_v57 }
 0x17a   : > { %v4856_v63 = vpop.f32.mrb[43].mxu0 }
 0x17b   : > { %1040 = vmax.xlane.f32.xlu0 %v1039_v60  ;;  %v1042_v1 = vmax.f32 %v4852_v58, %v4856_v63 }
 0x17d   : > { %1043 = vmax.xlane.f32.xlu1 %v1042_v1 }
 0x17f   : > { %v4860_v2 = vpop.f32.mrb[44].mxu0 }
 0x180   : > { %v4862_v3 = vpop.f32.mrb[45].mxu0 }
 0x181   : > { %v4864_v4 = vpop.f32.mrb[46].mxu0  ;;  %v1045_v6 = vmax.f32 %v4860_v2, %v4862_v3 }
 0x182   : > { %v4868_v9 = vpop.f32.mrb[47].mxu0 }
 0x183   : > { %1046 = vmax.xlane.f32.xlu0 %v1045_v6  ;;  %v1048_v11 = vmax.f32 %v4864_v4, %v4868_v9 }
 0x185   : > { %1049 = vmax.xlane.f32.xlu1 %v1048_v11 }
 0x187   : > { %v4872_v12 = vpop.f32.mrb[48].mxu0 }
 0x188   : > { %v4874_v13 = vpop.f32.mrb[49].mxu0 }
 0x189   : > { %v4876_v17 = vpop.f32.mrb[50].mxu0  ;;  %v1051_v19 = vmax.f32 %v4872_v12, %v4874_v13 }
 0x18a   : > { %5884 = vst [vmem:[#allocation2_spill] sm:$0xff] %v4876_v17  ;;  %v4880_v23 = vpop.f32.mrb[51].mxu0 }
 0x18b   : > { %5885 = vst [vmem:[#allocation3_spill] sm:$0xff] %v4880_v23  ;;  %1052 = vmax.xlane.f32.xlu0 %v1051_v19  ;;  %v1054_v25 = vmax.f32 %v4876_v17, %v4880_v23 }
 0x18d   : > { %1055 = vmax.xlane.f32.xlu1 %v1054_v25 }
 0x18f   : > { %v4884_v29 = vpop.f32.mrb[52].mxu0 }
 0x190   : > { %5886 = vst [vmem:[#allocation4_spill] sm:$0xff] %v4884_v29  ;;  %v4886_v31 = vpop.f32.mrb[53].mxu0 }
 0x191   : > { %5887 = vst [vmem:[#allocation5_spill] sm:$0xff] %v4886_v31  ;;  %v4888_v38 = vpop.f32.mrb[54].mxu0  ;;  %v1057_v41 = vmax.f32 %v4884_v29, %v4886_v31 }
 0x192   : > { %5888 = vst [vmem:[#allocation6_spill] sm:$0xff] %v4888_v38  ;;  %v4892_v49 = vpop.f32.mrb[55].mxu0 }
 0x193   : > { %5889 = vst [vmem:[#allocation7_spill] sm:$0xff] %v4892_v49  ;;  %1058 = vmax.xlane.f32.xlu0 %v1057_v41  ;;  %v1060_v55 = vmax.f32 %v4888_v38, %v4892_v49 }
 0x195   : > { %1061 = vmax.xlane.f32.xlu1 %v1060_v55 }
 0x197   : > { %v4896_v60 = vpop.f32.mrb[56].mxu0 }
 0x198   : > { %5890 = vst [vmem:[#allocation8_spill] sm:$0xff] %v4896_v60  ;;  %v4898_v1 = vpop.f32.mrb[57].mxu0 }
 0x199   : > { %5891 = vst [vmem:[#allocation9_spill] sm:$0xff] %v4898_v1  ;;  %v4900_v6 = vpop.f32.mrb[58].mxu0  ;;  %v1063_v11 = vmax.f32 %v4896_v60, %v4898_v1 }
 0x19a   : > { %5892 = vst [vmem:[#allocation10_spill] sm:$0xff] %v4900_v6  ;;  %v4904_v19 = vpop.f32.mrb[59].mxu0 }
 0x19b   : > { %5893 = vst [vmem:[#allocation11_spill] sm:$0xff] %v4904_v19  ;;  %1064 = vmax.xlane.f32.xlu0 %v1063_v11  ;;  %v1066_v25 = vmax.f32 %v4900_v6, %v4904_v19 }
 0x19d   : > { %1067 = vmax.xlane.f32.xlu1 %v1066_v25 }
 0x19f   : > { %v4908_v41 = vpop.f32.mrb[60].mxu0 }
 0x1a0   : > { %5894 = vst [vmem:[#allocation12_spill] sm:$0xff] %v4908_v41  ;;  %v4910_v49 = vpop.f32.mrb[61].mxu0 }
 0x1a1   : > { %5895 = vst [vmem:[#allocation13_spill] sm:$0xff] %v4910_v49  ;;  %v4912_v55 = vpop.f32.mrb[62].mxu0  ;;  %v1069_v38 = vmax.f32 %v4908_v41, %v4910_v49 }
 0x1a2   : > { %v4916_v31 = vpop.f32.mrb[63].mxu0 }
 0x1a3   : > { %5896 = vst [vmem:[#allocation14_spill] sm:$0xff] %v4916_v31  ;;  %1070 = vmax.xlane.f32.xlu0 %v1069_v38  ;;  %v1072_v1 = vmax.f32 %v4912_v55, %v4916_v31 }
 0x1a5   : > { %1073 = vmax.xlane.f32.xlu1 %v1072_v1 }
 0x1b8   : > { %v981_v11 = vpop.xlane.xlu0 %980 }
 0x1b9   : > { %v1075_v19 = vsub.f32 %v4713_v33, %v981_v11  ;;  %v1076_v25 = vsub.f32 %v4716_v35, %v981_v11 }
 0x1bb   : > { %v1139_v6 = vmul.f32 1.442695, %v1075_v19  ;;  %v1141_v60 = vmul.f32 1.442695, %v1076_v25 }
 0x1bc   : > { %v984_v29 = vpop.xlane.xlu0 %983 }
 0x1bd   : > { %4230 = vpow2.f32 %v1139_v6  ;;  %v1077_v23 = vsub.f32 %v4719_v37, %v984_v29  ;;  %v1078_v49 = vsub.f32 %v4724_v40, %v984_v29 }
 0x1be   : > { %4232 = vpow2.f32 %v1141_v60 }
 0x1bf   : > { %v1143_v41 = vmul.f32 1.442695, %v1077_v23  ;;  %v1145_v38 = vmul.f32 1.442695, %v1078_v49 }
 0x1c0   : > { %v987_v17 = vpop.xlane.xlu1 %986 }
 0x1c1   : > { %4234 = vpow2.f32 %v1143_v41  ;;  %v1079_v1 = vsub.f32 %v4730_v44, %v987_v17  ;;  %v1080_v31 = vsub.f32 %v4732_v45, %v987_v17  ;;  %v4206_v44 = vld [vmem:[%s5844_s4] sm:$0xff]  }
 0x1c2   : > { %4236 = vpow2.f32 %v1145_v38  ;;  %3974 = vmatprep.subr.bf16.mxu1 %v4206_v44 }
 0x1c3   : > { %v1147_v33 = vmul.f32 1.442695, %v1079_v1  ;;  %v1149_v35 = vmul.f32 1.442695, %v1080_v31 }
 0x1c4   : > { %v990_v19 = vpop.xlane.xlu1 %989 }
 0x1c5   : > { %4238 = vpow2.f32 %v1147_v33  ;;  %v1081_v6 = vsub.f32 %v4734_v46, %v990_v19  ;;  %v1082_v37 = vsub.f32 %v4738_v48, %v990_v19 }
 0x1c6   : > { %4240 = vpow2.f32 %v1149_v35 }
 0x1c7   : > { %v4231_v40 = vpop.eup %4230  ;;  %v1151_v29 = vmul.f32 1.442695, %v1081_v6  ;;  %v1153_v23 = vmul.f32 1.442695, %v1082_v37 }
 0x1c8   : > { %v4233_v49 = vpop.eup %4232  ;;  %v993_v60 = vpop.xlane.xlu0 %992 }
 0x1c9   : > { %4242 = vpow2.f32 %v1151_v29  ;;  %v1083_v45 = vsub.f32 %v4742_v50, %v993_v60  ;;  %v1084_v17 = vsub.f32 %v4744_v51, %v993_v60  ;;  %v1267_v31 = vadd.f32 %v4233_v49, %v4231_v40 }
 0x1ca   : > { %4244 = vpow2.f32 %v1153_v23  ;;  %v996_v46 = vpop.xlane.xlu1 %995 }
 0x1cb   : > { %v4235_v48 = vpop.eup %4234  ;;  %v1155_v41 = vmul.f32 1.442695, %v1083_v45  ;;  %v1157_v11 = vmul.f32 1.442695, %v1084_v17  ;;  %v1085_v25 = vsub.f32 %v4746_v52, %v996_v46  ;;  %v1086_v38 = vsub.f32 %v4750_v54, %v996_v46  ;;  %1268 = vadd.xlane.f32.xlu0 %v1267_v31 }
 0x1cc   : > { %v4237_v1 = vpop.eup %4236  ;;  %v1363_v33 = vpack.c.bf16 %v4235_v48, %v4231_v40 }
 0x1cd   : > { %4246 = vpow2.f32 %v1155_v41  ;;  %v1159_v35 = vmul.f32 1.442695, %v1085_v25  ;;  %v1161_v19 = vmul.f32 1.442695, %v1086_v38  ;;  %v1364_v50 = vpack.c.bf16 %v4237_v1, %v4233_v49 }
 0x1ce   : > { %4248 = vpow2.f32 %v1157_v11  ;;  %v1270_v51 = vadd.f32 %v4237_v1, %v4235_v48 }
 0x1cf   : > { %v4239_v6 = vpop.eup %4238  ;;  %4250 = vpow2.f32 %v1159_v35  ;;  %1555 = vmatprep.mubr.bf16.mxu1 %v1364_v50 }
 0x1d0   : > { %v4241_v37 = vpop.eup %4240  ;;  %4252 = vpow2.f32 %v1161_v19  ;;  %1271 = vadd.xlane.f32.xlu1 %v1270_v51  ;;  %1556 = vmatmul.mubr.bf16.vlgmr.msra.gmra.mrb[0].mxu1 %v1363_v33  ;;  %v999_v29 = vpop.xlane.xlu0 %998 }
 0x1d1   : > { %v1087_v52 = vsub.f32 %v4757_v59, %v999_v29  ;;  %v1088_v54 = vsub.f32 %v4760_v61, %v999_v29  ;;  %v1273_v23 = vadd.f32 %v4241_v37, %v4239_v6  ;;  %3975 = vmatpush3.bf16.msra.mxu1 %v4206_v44 }
 0x1d2   : > { %v1002_v40 = vpop.xlane.xlu1 %1001 }
 0x1d3   : > { %v4243_v60 = vpop.eup %4242  ;;  %v1163_v45 = vmul.f32 1.442695, %v1087_v52  ;;  %v1165_v49 = vmul.f32 1.442695, %v1088_v54  ;;  %v1089_v17 = vsub.f32 %v4762_v62, %v1002_v40  ;;  %v1090_v31 = vsub.f32 %v4766_v0, %v1002_v40  ;;  %1274 = vadd.xlane.f32.xlu0 %v1273_v23 }
 0x1d4   : > { %v4245_v46 = vpop.eup %4244  ;;  %v1365_v48 = vpack.c.bf16 %v4243_v60, %v4239_v6 }
 0x1d5   : > { %4254 = vpow2.f32 %v1163_v45  ;;  %v1167_v41 = vmul.f32 1.442695, %v1089_v17  ;;  %v1169_v11 = vmul.f32 1.442695, %v1090_v31  ;;  %v1366_v25 = vpack.c.bf16 %v4245_v46, %v4241_v37  ;;  %v4207_v17 = vld [vmem:[%s5844_s4 + $0x8] sm:$0xff]  }
 0x1d6   : > { %4256 = vpow2.f32 %v1165_v49  ;;  %v1276_v59 = vadd.f32 %v4245_v46, %v4243_v60  ;;  %3976 = vmatprep.subr.bf16.mxu1 %v4207_v17 }
 0x1d7   : > { %v4247_v61 = vpop.eup %4246  ;;  %4258 = vpow2.f32 %v1167_v41  ;;  %1563 = vmatprep.mubr.bf16.mxu1 %v1366_v25  ;;  %3977 = vmatpush3.bf16.msra.mxu1 %v4207_v17 }
 0x1d8   : > { %v4249_v44 = vpop.eup %4248  ;;  %4260 = vpow2.f32 %v1169_v11  ;;  %1277 = vadd.xlane.f32.xlu1 %v1276_v59  ;;  %1564 = vmatmul.mubr.bf16.gmra.mrb[4].mxu1 %v1365_v48  ;;  %v1005_v38 = vpop.xlane.xlu0 %1004 }
 0x1d9   : > { %v4251_v62 = vpop.eup %4250  ;;  %v1091_v0 = vsub.f32 %v4773_v5, %v1005_v38  ;;  %v1092_v1 = vsub.f32 %v4776_v7, %v1005_v38  ;;  %v1279_v33 = vadd.f32 %v4249_v44, %v4247_v61 }
 0x1da   : > { %v4253_v35 = vpop.eup %4252  ;;  %v1008_v19 = vpop.xlane.xlu1 %1007  ;;  %v1367_v50 = vpack.c.bf16 %v4251_v62, %v4247_v61 }
 0x1db   : > { %v1171_v51 = vmul.f32 1.442695, %v1091_v0  ;;  %v1173_v6 = vmul.f32 1.442695, %v1092_v1  ;;  %v1093_v37 = vsub.f32 %v4778_v8, %v1008_v19  ;;  %v1094_v29 = vsub.f32 %v4782_v10, %v1008_v19  ;;  %1280 = vadd.xlane.f32.xlu0 %v1279_v33 }
 0x1dc   : > { %v1368_v52 = vpack.c.bf16 %v4253_v35, %v4249_v44  ;;  %v1282_v54 = vadd.f32 %v4253_v35, %v4251_v62 }
 0x1dd   : > { %4262 = vpow2.f32 %v1171_v51  ;;  %v1175_v23 = vmul.f32 1.442695, %v1093_v37  ;;  %v1177_v40 = vmul.f32 1.442695, %v1094_v29 }
 0x1de   : > { %4264 = vpow2.f32 %v1173_v6  ;;  %1571 = vmatprep.mubr.bf16.mxu1 %v1368_v52  ;;  %1283 = vadd.xlane.f32.xlu1 %v1282_v54 }
 0x1df   : > { %v4255_v5 = vpop.eup %4254  ;;  %4266 = vpow2.f32 %v1175_v23 }
 0x1e0   : > { %v4257_v7 = vpop.eup %4256  ;;  %4268 = vpow2.f32 %v1177_v40  ;;  %1572 = vmatmul.mubr.bf16.gmra.mrb[8].mxu1 %v1367_v50  ;;  %v1011_v60 = vpop.xlane.xlu0 %1010 }
 0x1e1   : > { %v4259_v45 = vpop.eup %4258  ;;  %v1095_v8 = vsub.f32 %v4788_v14, %v1011_v60  ;;  %v1096_v10 = vsub.f32 %v4790_v15, %v1011_v60  ;;  %v1285_v49 = vadd.f32 %v4257_v7, %v4255_v5 }
 0x1e2   : > { %v4261_v31 = vpop.eup %4260  ;;  %v1014_v46 = vpop.xlane.xlu1 %1013  ;;  %v1369_v48 = vpack.c.bf16 %v4259_v45, %v4255_v5 }
 0x1e3   : > { %v1179_v41 = vmul.f32 1.442695, %v1095_v8  ;;  %v1181_v11 = vmul.f32 1.442695, %v1096_v10  ;;  %v1097_v25 = vsub.f32 %v4792_v16, %v1014_v46  ;;  %v1098_v59 = vsub.f32 %v4796_v18, %v1014_v46  ;;  %1286 = vadd.xlane.f32.xlu0 %v1285_v49 }
 0x1e4   : > { %v1370_v61 = vpack.c.bf16 %v4261_v31, %v4257_v7  ;;  %v1288_v14 = vadd.f32 %v4261_v31, %v4259_v45 }
 0x1e5   : > { %4270 = vpow2.f32 %v1179_v41  ;;  %v1183_v15 = vmul.f32 1.442695, %v1097_v25  ;;  %v1185_v44 = vmul.f32 1.442695, %v1098_v59 }
 0x1e6   : > { %4272 = vpow2.f32 %v1181_v11  ;;  %1579 = vmatprep.mubr.bf16.mxu1 %v1370_v61  ;;  %1289 = vadd.xlane.f32.xlu1 %v1288_v14  ;;  %v4208_v11 = vld [vmem:[%s5844_s4 + $0x10] sm:$0xff]  }
 0x1e7   : > { %v4263_v38 = vpop.eup %4262  ;;  %4274 = vpow2.f32 %v1183_v15  ;;  %3978 = vmatprep.subr.bf16.mxu1 %v4208_v11 }
 0x1e8   : > { %v4265_v62 = vpop.eup %4264  ;;  %4276 = vpow2.f32 %v1185_v44  ;;  %1580 = vmatmul.mubr.bf16.gmra.mrb[12].mxu1 %v1369_v48  ;;  %v1017_v0 = vpop.xlane.xlu0 %1016 }
 0x1e9   : > { %v4267_v16 = vpop.eup %4266  ;;  %v1099_v18 = vsub.f32 %v4800_v20, %v1017_v0  ;;  %v1100_v1 = vsub.f32 %v4802_v21, %v1017_v0  ;;  %v1291_v33 = vadd.f32 %v4265_v62, %v4263_v38  ;;  %3979 = vmatpush3.bf16.msra.mxu1 %v4208_v11 }
 0x1ea   : > { %v4269_v35 = vpop.eup %4268  ;;  %v1020_v19 = vpop.xlane.xlu1 %1019  ;;  %v1371_v50 = vpack.c.bf16 %v4267_v16, %v4263_v38 }
 0x1eb   : > { %v1187_v51 = vmul.f32 1.442695, %v1099_v18  ;;  %v1189_v6 = vmul.f32 1.442695, %v1100_v1  ;;  %v1101_v37 = vsub.f32 %v4804_v22, %v1020_v19  ;;  %v1102_v29 = vsub.f32 %v4808_v24, %v1020_v19  ;;  %1292 = vadd.xlane.f32.xlu0 %v1291_v33 }
 0x1ec   : > { %v1372_v52 = vpack.c.bf16 %v4269_v35, %v4265_v62  ;;  %v1294_v54 = vadd.f32 %v4269_v35, %v4267_v16 }
 0x1ed   : > { %4278 = vpow2.f32 %v1187_v51  ;;  %v1191_v23 = vmul.f32 1.442695, %v1101_v37  ;;  %v1193_v40 = vmul.f32 1.442695, %v1102_v29 }
 0x1ee   : > { %4280 = vpow2.f32 %v1189_v6  ;;  %1587 = vmatprep.mubr.bf16.mxu1 %v1372_v52  ;;  %1295 = vadd.xlane.f32.xlu1 %v1294_v54 }
 0x1ef   : > { %v4271_v20 = vpop.eup %4270  ;;  %4282 = vpow2.f32 %v1191_v23 }
 0x1f0   : > { %v4273_v21 = vpop.eup %4272  ;;  %4284 = vpow2.f32 %v1193_v40  ;;  %1588 = vmatmul.mubr.bf16.gmra.mrb[16].mxu1 %v1371_v50  ;;  %v1023_v5 = vpop.xlane.xlu0 %1022 }
 0x1f1   : > { %v4275_v7 = vpop.eup %4274  ;;  %v1103_v22 = vsub.f32 %v4812_v26, %v1023_v5  ;;  %v1104_v24 = vsub.f32 %v4814_v27, %v1023_v5  ;;  %v1297_v60 = vadd.f32 %v4273_v21, %v4271_v20 }
 0x1f2   : > { %v4277_v45 = vpop.eup %4276  ;;  %v1026_v8 = vpop.xlane.xlu1 %1025  ;;  %v1373_v10 = vpack.c.bf16 %v4275_v7, %v4271_v20 }
 0x1f3   : > { %v1195_v49 = vmul.f32 1.442695, %v1103_v22  ;;  %v1197_v17 = vmul.f32 1.442695, %v1104_v24  ;;  %v1105_v31 = vsub.f32 %v4816_v28, %v1026_v8  ;;  %v1106_v46 = vsub.f32 %v4820_v30, %v1026_v8  ;;  %1298 = vadd.xlane.f32.xlu0 %v1297_v60  ;;  %v4209_v22 = vld [vmem:[%s5844_s4 + $0x18] sm:$0xff]  }
 0x1f4   : > { %v1374_v48 = vpack.c.bf16 %v4277_v45, %v4273_v21  ;;  %v1300_v41 = vadd.f32 %v4277_v45, %v4275_v7  ;;  %3980 = vmatprep.subr.bf16.mxu1 %v4209_v22 }
 0x1f5   : > { %4286 = vpow2.f32 %v1195_v49  ;;  %v1199_v26 = vmul.f32 1.442695, %v1105_v31  ;;  %v1201_v27 = vmul.f32 1.442695, %v1106_v46  ;;  %3981 = vmatpush3.bf16.msra.mxu1 %v4209_v22 }
 0x1f6   : > { %4288 = vpow2.f32 %v1197_v17  ;;  %1595 = vmatprep.mubr.bf16.mxu1 %v1374_v48  ;;  %1301 = vadd.xlane.f32.xlu1 %v1300_v41 }
 0x1f7   : > { %v4279_v25 = vpop.eup %4278  ;;  %4290 = vpow2.f32 %v1199_v26 }
 0x1f8   : > { %v4281_v59 = vpop.eup %4280  ;;  %4292 = vpow2.f32 %v1201_v27  ;;  %1596 = vmatmul.mubr.bf16.gmra.mrb[20].mxu1 %v1373_v10  ;;  %v1029_v28 = vpop.xlane.xlu0 %1028 }
 0x1f9   : > { %v4283_v30 = vpop.eup %4282  ;;  %v1107_v61 = vsub.f32 %v4824_v32, %v1029_v28  ;;  %v1108_v14 = vsub.f32 %v4826_v34, %v1029_v28  ;;  %v1303_v15 = vadd.f32 %v4281_v59, %v4279_v25 }
 0x1fa   : > { %v4285_v44 = vpop.eup %4284  ;;  %v1032_v38 = vpop.xlane.xlu1 %1031  ;;  %v1375_v62 = vpack.c.bf16 %v4283_v30, %v4279_v25 }
 0x1fb   : > { %v1203_v0 = vmul.f32 1.442695, %v1107_v61  ;;  %v1205_v16 = vmul.f32 1.442695, %v1108_v14  ;;  %v1109_v18 = vsub.f32 %v4828_v36, %v1032_v38  ;;  %v1110_v1 = vsub.f32 %v4832_v39, %v1032_v38  ;;  %1304 = vadd.xlane.f32.xlu0 %v1303_v15 }
 0x1fc   : > { %v1376_v33 = vpack.c.bf16 %v4285_v44, %v4281_v59  ;;  %v1306_v35 = vadd.f32 %v4285_v44, %v4283_v30 }
 0x1fd   : > { %4294 = vpow2.f32 %v1203_v0  ;;  %v1207_v19 = vmul.f32 1.442695, %v1109_v18  ;;  %v1209_v50 = vmul.f32 1.442695, %v1110_v1 }
 0x1fe   : > { %4296 = vpow2.f32 %v1205_v16  ;;  %1603 = vmatprep.mubr.bf16.mxu1 %v1376_v33  ;;  %1307 = vadd.xlane.f32.xlu1 %v1306_v35  ;;  %v4210_v33 = vld [vmem:[%s5844_s4 + $0x20] sm:$0xff]  }
 0x1ff   : > { %v4287_v32 = vpop.eup %4286  ;;  %4298 = vpow2.f32 %v1207_v19  ;;  %3982 = vmatprep.subr.bf16.mxu1 %v4210_v33 }
 0x200   : > { %v4289_v34 = vpop.eup %4288  ;;  %4300 = vpow2.f32 %v1209_v50  ;;  %1604 = vmatmul.mubr.bf16.gmra.mrb[24].mxu1 %v1375_v62  ;;  %v1035_v51 = vpop.xlane.xlu0 %1034 }
 0x201   : > { %v4291_v6 = vpop.eup %4290  ;;  %v1111_v36 = vsub.f32 %v4836_v42, %v1035_v51  ;;  %v1112_v39 = vsub.f32 %v4838_v43, %v1035_v51  ;;  %v1309_v37 = vadd.f32 %v4289_v34, %v4287_v32  ;;  %3983 = vmatpush3.bf16.msra.mxu1 %v4210_v33 }
 0x202   : > { %v4293_v29 = vpop.eup %4292  ;;  %v1038_v52 = vpop.xlane.xlu1 %1037  ;;  %v1377_v54 = vpack.c.bf16 %v4291_v6, %v4287_v32 }
 0x203   : > { %v1211_v23 = vmul.f32 1.442695, %v1111_v36  ;;  %v1213_v40 = vmul.f32 1.442695, %v1112_v39  ;;  %v1113_v20 = vsub.f32 %v4840_v47, %v1038_v52  ;;  %v1114_v21 = vsub.f32 %v4844_v53, %v1038_v52  ;;  %1310 = vadd.xlane.f32.xlu0 %v1309_v37 }
 0x204   : > { %v1378_v5 = vpack.c.bf16 %v4293_v29, %v4289_v34  ;;  %v1312_v7 = vadd.f32 %v4293_v29, %v4291_v6  ;;  %v5897_v29 = vld [vmem:[#allocation2_spill] sm:$0xff] }
 0x205   : > { %4302 = vpow2.f32 %v1211_v23  ;;  %v1215_v42 = vmul.f32 1.442695, %v1113_v20  ;;  %v1217_v43 = vmul.f32 1.442695, %v1114_v21 }
 0x206   : > { %4304 = vpow2.f32 %v1213_v40  ;;  %1611 = vmatprep.mubr.bf16.mxu1 %v1378_v5  ;;  %1313 = vadd.xlane.f32.xlu1 %v1312_v7 }
 0x207   : > { %v4295_v24 = vpop.eup %4294  ;;  %4306 = vpow2.f32 %v1215_v42  ;;  %v5899_v42 = vld [vmem:[#allocation4_spill] sm:$0xff] }
 0x208   : > { %v4297_v60 = vpop.eup %4296  ;;  %4308 = vpow2.f32 %v1217_v43  ;;  %1612 = vmatmul.mubr.bf16.gmra.mrb[28].mxu1 %v1377_v54  ;;  %v1041_v47 = vpop.xlane.xlu0 %1040  ;;  %v5898_v54 = vld [vmem:[#allocation3_spill] sm:$0xff] }
 0x209   : > { %v4299_v53 = vpop.eup %4298  ;;  %v1115_v45 = vsub.f32 %v4848_v56, %v1041_v47  ;;  %v1116_v8 = vsub.f32 %v4850_v57, %v1041_v47  ;;  %v1315_v10 = vadd.f32 %v4297_v60, %v4295_v24 }
 0x20a   : > { %v4301_v49 = vpop.eup %4300  ;;  %v1044_v17 = vpop.xlane.xlu1 %1043  ;;  %v1379_v31 = vpack.c.bf16 %v4299_v53, %v4295_v24  ;;  %v5900_v24 = vld [vmem:[#allocation5_spill] sm:$0xff] }
 0x20b   : > { %v1219_v46 = vmul.f32 1.442695, %v1115_v45  ;;  %v1221_v48 = vmul.f32 1.442695, %v1116_v8  ;;  %v1117_v41 = vsub.f32 %v4852_v58, %v1044_v17  ;;  %v1118_v11 = vsub.f32 %v4856_v63, %v1044_v17  ;;  %1316 = vadd.xlane.f32.xlu0 %v1315_v10  ;;  %v5901_v17 = vld [vmem:[#allocation6_spill] sm:$0xff] }
 0x20c   : > { %v1380_v26 = vpack.c.bf16 %v4301_v49, %v4297_v60  ;;  %v1318_v27 = vadd.f32 %v4301_v49, %v4299_v53 }
 0x20d   : > { %4310 = vpow2.f32 %v1219_v46  ;;  %v1223_v25 = vmul.f32 1.442695, %v1117_v41  ;;  %v1225_v59 = vmul.f32 1.442695, %v1118_v11  ;;  %v5902_v46 = vld [vmem:[#allocation7_spill] sm:$0xff] }
 0x20e   : > { %4312 = vpow2.f32 %v1221_v48  ;;  %1619 = vmatprep.mubr.bf16.mxu1 %v1380_v26  ;;  %1319 = vadd.xlane.f32.xlu1 %v1318_v27 }
 0x20f   : > { %v4303_v56 = vpop.eup %4302  ;;  %4314 = vpow2.f32 %v1223_v25 }
 0x210   : > { %v4305_v57 = vpop.eup %4304  ;;  %4316 = vpow2.f32 %v1225_v59  ;;  %1620 = vmatmul.mubr.bf16.gmra.mrb[32].mxu1 %v1379_v31  ;;  %v1047_v28 = vpop.xlane.xlu0 %1046  ;;  %v4211_v59 = vld [vmem:[%s5844_s4 + $0x28] sm:$0xff]  }
 0x211   : > { %v4307_v30 = vpop.eup %4306  ;;  %v1119_v58 = vsub.f32 %v4860_v2, %v1047_v28  ;;  %v1120_v63 = vsub.f32 %v4862_v3, %v1047_v28  ;;  %v1321_v61 = vadd.f32 %v4305_v57, %v4303_v56  ;;  %3984 = vmatprep.subr.bf16.mxu1 %v4211_v59 }
 0x212   : > { %v4309_v14 = vpop.eup %4308  ;;  %v1050_v15 = vpop.xlane.xlu1 %1049  ;;  %v1381_v44 = vpack.c.bf16 %v4307_v30, %v4303_v56  ;;  %3985 = vmatpush3.bf16.msra.mxu1 %v4211_v59 }
 0x213   : > { %v1227_v38 = vmul.f32 1.442695, %v1119_v58  ;;  %v1229_v62 = vmul.f32 1.442695, %v1120_v63  ;;  %v1121_v0 = vsub.f32 %v4864_v4, %v1050_v15  ;;  %v1122_v16 = vsub.f32 %v4868_v9, %v1050_v15  ;;  %1322 = vadd.xlane.f32.xlu0 %v1321_v61  ;;  %v5904_v63 = vld [vmem:[#allocation9_spill] sm:$0xff] }
 0x214   : > { %v1382_v18 = vpack.c.bf16 %v4309_v14, %v4305_v57  ;;  %v1324_v1 = vadd.f32 %v4309_v14, %v4307_v30  ;;  %v5903_v30 = vld [vmem:[#allocation8_spill] sm:$0xff] }
 0x215   : > { %4318 = vpow2.f32 %v1227_v38  ;;  %v1231_v2 = vmul.f32 1.442695, %v1121_v0  ;;  %v1233_v3 = vmul.f32 1.442695, %v1122_v16  ;;  %v5905_v16 = vld [vmem:[#allocation10_spill] sm:$0xff] }
 0x216   : > { %4320 = vpow2.f32 %v1229_v62  ;;  %1627 = vmatprep.mubr.bf16.mxu1 %v1382_v18  ;;  %1325 = vadd.xlane.f32.xlu1 %v1324_v1  ;;  %v5906_v1 = vld [vmem:[#allocation11_spill] sm:$0xff] }
 0x217   : > { %v4311_v35 = vpop.eup %4310  ;;  %4322 = vpow2.f32 %v1231_v2 }
 0x218   : > { %v4313_v19 = vpop.eup %4312  ;;  %4324 = vpow2.f32 %v1233_v3  ;;  %1628 = vmatmul.mubr.bf16.gmra.mrb[36].mxu1 %v1381_v44  ;;  %v1053_v4 = vpop.xlane.xlu0 %1052 }
 0x219   : > { %v4315_v9 = vpop.eup %4314  ;;  %v1123_v50 = vsub.f32 %v4872_v12, %v1053_v4  ;;  %v1124_v32 = vsub.f32 %v4874_v13, %v1053_v4  ;;  %v1327_v34 = vadd.f32 %v4313_v19, %v4311_v35 }
 0x21a   : > { %v4317_v51 = vpop.eup %4316  ;;  %v1056_v6 = vpop.xlane.xlu1 %1055  ;;  %v1383_v36 = vpack.c.bf16 %v4315_v9, %v4311_v35  ;;  %v4212_v35 = vld [vmem:[%s5844_s4 + $0x30] sm:$0xff]  }
 0x21b   : > { %v1235_v39 = vmul.f32 1.442695, %v1123_v50  ;;  %v1237_v37 = vmul.f32 1.442695, %v1124_v32  ;;  %v1125_v52 = vsub.f32 %v5897_v29, %v1056_v6  ;;  %v1126_v23 = vsub.f32 %v5898_v54, %v1056_v6  ;;  %1328 = vadd.xlane.f32.xlu0 %v1327_v34  ;;  %3986 = vmatprep.subr.bf16.mxu1 %v4212_v35  ;;  %v4213_v34 = vld [vmem:[%s5844_s4 + $0x38] sm:$0xff]   ;;  %v5907_v6 = vld [vmem:[#allocation12_spill] sm:$0xff] }
 0x21c   : > { %v1384_v40 = vpack.c.bf16 %v4317_v51, %v4313_v19  ;;  %v1330_v20 = vadd.f32 %v4317_v51, %v4315_v9  ;;  %3987 = vmatpush3.bf16.msra.mxu1 %v4212_v35 }
 0x21d   : > { %4326 = vpow2.f32 %v1235_v39  ;;  %v1239_v21 = vmul.f32 1.442695, %v1125_v52  ;;  %v1241_v5 = vmul.f32 1.442695, %v1126_v23  ;;  %v5908_v39 = vld [vmem:[#allocation13_spill] sm:$0xff]  ;;  %3988 = vmatprep.subr.bf16.mxu1 %v4213_v34 }
 0x21e   : > { %4328 = vpow2.f32 %v1237_v37  ;;  %1635 = vmatprep.mubr.bf16.mxu1 %v1384_v40  ;;  %1331 = vadd.xlane.f32.xlu1 %v1330_v20 }
 0x21f   : > { %v4319_v12 = vpop.eup %4318  ;;  %4330 = vpow2.f32 %v1239_v21 }
 0x220   : > { %v4321_v13 = vpop.eup %4320  ;;  %4332 = vpow2.f32 %v1241_v5  ;;  %1636 = vmatmul.mubr.bf16.gmra.mrb[40].mxu1 %v1383_v36  ;;  %v1059_v7 = vpop.xlane.xlu0 %1058  ;;  %v5909_v5 = vld [vmem:[#allocation14_spill] sm:$0xff] }
 0x221   : > { %v4323_v22 = vpop.eup %4322  ;;  %v1127_v43 = vsub.f32 %v5899_v42, %v1059_v7  ;;  %v1128_v60 = vsub.f32 %v5900_v24, %v1059_v7  ;;  %v1333_v47 = vadd.f32 %v4321_v13, %v4319_v12  ;;  %3989 = vmatpush3.bf16.msra.mxu1 %v4213_v34 }
 0x222   : > { %v4325_v53 = vpop.eup %4324  ;;  %v1062_v45 = vpop.xlane.xlu1 %1061  ;;  %v1385_v8 = vpack.c.bf16 %v4323_v22, %v4319_v12 }
 0x223   : > { %v1243_v10 = vmul.f32 1.442695, %v1127_v43  ;;  %v1245_v49 = vmul.f32 1.442695, %v1128_v60  ;;  %v1129_v31 = vsub.f32 %v5901_v17, %v1062_v45  ;;  %v1130_v48 = vsub.f32 %v5902_v46, %v1062_v45  ;;  %1334 = vadd.xlane.f32.xlu0 %v1333_v47 }
 0x224   : > { %v1386_v41 = vpack.c.bf16 %v4325_v53, %v4321_v13  ;;  %v1336_v11 = vadd.f32 %v4325_v53, %v4323_v22 }
 0x225   : > { %4334 = vpow2.f32 %v1243_v10  ;;  %v1247_v26 = vmul.f32 1.442695, %v1129_v31  ;;  %v1249_v27 = vmul.f32 1.442695, %v1130_v48 }
 0x226   : > { %4336 = vpow2.f32 %v1245_v49  ;;  %1643 = vmatprep.mubr.bf16.mxu1 %v1386_v41  ;;  %1337 = vadd.xlane.f32.xlu1 %v1336_v11 }
 0x227   : > { %v4327_v25 = vpop.eup %4326  ;;  %4338 = vpow2.f32 %v1247_v26 }
 0x228   : > { %v4329_v56 = vpop.eup %4328  ;;  %4340 = vpow2.f32 %v1249_v27  ;;  %1644 = vmatmul.mubr.bf16.gmra.mrb[44].mxu1 %v1385_v8  ;;  %v1065_v57 = vpop.xlane.xlu0 %1064 }
 0x229   : > { %v4331_v28 = vpop.eup %4330  ;;  %v1131_v58 = vsub.f32 %v5903_v30, %v1065_v57  ;;  %v1132_v61 = vsub.f32 %v5904_v63, %v1065_v57  ;;  %v1339_v14 = vadd.f32 %v4329_v56, %v4327_v25 }
 0x22a   : > { %v4333_v15 = vpop.eup %4332  ;;  %v1068_v44 = vpop.xlane.xlu1 %1067  ;;  %v1387_v38 = vpack.c.bf16 %v4331_v28, %v4327_v25 }
 0x22b   : > { %v1251_v62 = vmul.f32 1.442695, %v1131_v58  ;;  %v1253_v0 = vmul.f32 1.442695, %v1132_v61  ;;  %v1133_v18 = vsub.f32 %v5905_v16, %v1068_v44  ;;  %v1134_v33 = vsub.f32 %v5906_v1, %v1068_v44  ;;  %1340 = vadd.xlane.f32.xlu0 %v1339_v14 }
 0x22c   : > { %v1388_v2 = vpack.c.bf16 %v4333_v15, %v4329_v56  ;;  %v1342_v3 = vadd.f32 %v4333_v15, %v4331_v28 }
 0x22d   : > { %4342 = vpow2.f32 %v1251_v62  ;;  %v1255_v19 = vmul.f32 1.442695, %v1133_v18  ;;  %v1257_v4 = vmul.f32 1.442695, %v1134_v33 }
 0x22e   : > { %4344 = vpow2.f32 %v1253_v0  ;;  %1651 = vmatprep.mubr.bf16.mxu1 %v1388_v2  ;;  %1343 = vadd.xlane.f32.xlu1 %v1342_v3 }
 0x22f   : > { %v4335_v9 = vpop.eup %4334  ;;  %4346 = vpow2.f32 %v1255_v19 }
 0x230   : > { %v4337_v50 = vpop.eup %4336  ;;  %4348 = vpow2.f32 %v1257_v4  ;;  %1652 = vmatmul.mubr.bf16.gmra.mrb[48].mxu1 %v1387_v38  ;;  %v1071_v32 = vpop.xlane.xlu0 %1070 }
 0x231   : > { %v4339_v51 = vpop.eup %4338  ;;  %v1135_v36 = vsub.f32 %v5907_v6, %v1071_v32  ;;  %v1136_v37 = vsub.f32 %v5908_v39, %v1071_v32  ;;  %v1345_v29 = vadd.f32 %v4337_v50, %v4335_v9 }
 0x232   : > { %v4341_v52 = vpop.eup %4340  ;;  %v1074_v54 = vpop.xlane.xlu1 %1073  ;;  %v1389_v23 = vpack.c.bf16 %v4339_v51, %v4335_v9 }
 0x233   : > { %v1259_v40 = vmul.f32 1.442695, %v1135_v36  ;;  %v1261_v20 = vmul.f32 1.442695, %v1136_v37  ;;  %1346 = vadd.xlane.f32.xlu0 %v1345_v29  ;;  %v1137_v21 = vsub.f32 %v4912_v55, %v1074_v54  ;;  %v1138_v12 = vsub.f32 %v5909_v5, %v1074_v54 }
 0x234   : > { %v1390_v13 = vpack.c.bf16 %v4341_v52, %v4337_v50  ;;  %v1348_v7 = vadd.f32 %v4341_v52, %v4339_v51 }
 0x235   : > { %4350 = vpow2.f32 %v1259_v40  ;;  %v1263_v22 = vmul.f32 1.442695, %v1137_v21  ;;  %v1265_v42 = vmul.f32 1.442695, %v1138_v12 }
 0x236   : > { %4352 = vpow2.f32 %v1261_v20  ;;  %1659 = vmatprep.mubr.bf16.mxu1 %v1390_v13  ;;  %1349 = vadd.xlane.f32.xlu1 %v1348_v7 }
 0x237   : > { %v4343_v43 = vpop.eup %4342  ;;  %4354 = vpow2.f32 %v1263_v22 }
 0x238   : > { %v4345_v24 = vpop.eup %4344  ;;  %4356 = vpow2.f32 %v1265_v42  ;;  %1660 = vmatmul.mubr.bf16.gmra.mrb[52].mxu1 %v1389_v23 }
 0x239   : > { %v4347_v60 = vpop.eup %4346  ;;  %v1351_v47 = vadd.f32 %v4345_v24, %v4343_v43 }
 0x23a   : > { %v4349_v53 = vpop.eup %4348  ;;  %v1391_v55 = vpack.c.bf16 %v4347_v60, %v4343_v43 }
 0x23b   : > { %1352 = vadd.xlane.f32.xlu0 %v1351_v47  ;;  %v1392_v45 = vpack.c.bf16 %v4349_v53, %v4345_v24  ;;  %v1354_v8 = vadd.f32 %v4349_v53, %v4347_v60 }
 0x23d   : > { %1667 = vmatprep.mubr.bf16.mxu1 %v1392_v45  ;;  %1355 = vadd.xlane.f32.xlu1 %v1354_v8 }
 0x23f   : > { %v4351_v10 = vpop.eup %4350 }
 0x240   : > { %v4353_v49 = vpop.eup %4352  ;;  %1668 = vmatmul.mubr.bf16.gmra.mrb[56].mxu1 %v1391_v55 }
 0x241   : > { %v4355_v17 = vpop.eup %4354  ;;  %v1357_v31 = vadd.f32 %v4353_v49, %v4351_v10 }
 0x242   : > { %v4357_v46 = vpop.eup %4356  ;;  %v1393_v48 = vpack.c.bf16 %v4355_v17, %v4351_v10 }
 0x243   : > { %1358 = vadd.xlane.f32.xlu0 %v1357_v31  ;;  %v1394_v41 = vpack.c.bf16 %v4357_v46, %v4353_v49  ;;  %v1360_v11 = vadd.f32 %v4357_v46, %v4355_v17 }
 0x245   : > { %1675 = vmatprep.mubr.bf16.mxu1 %v1394_v41  ;;  %1361 = vadd.xlane.f32.xlu1 %v1360_v11 }
 0x248   : > { %1676 = vmatmul.mubr.bf16.gmra.mrb[60].mxu1 %v1393_v48 }
 0x258   : > { %v1269_v26 = vpop.xlane.xlu0 %1268 }
 0x259   : > { %4358 = vrcp.f32 %v1269_v26 }
 0x25d   : > { %v1272_v27 = vpop.xlane.xlu1 %1271 }
 0x25e   : > { %4360 = vrcp.f32 %v1272_v27 }
 0x260   : > { %v1275_v25 = vpop.xlane.xlu0 %1274 }
 0x261   : > { %4362 = vrcp.f32 %v1275_v25 }
 0x263   : > { %v4359_v63 = vpop.eup %4358 }
 0x265   : > { %v1278_v59 = vpop.xlane.xlu1 %1277 }
 0x266   : > { %4364 = vrcp.f32 %v1278_v59 }
 0x268   : > { %v4361_v14 = vpop.eup %4360  ;;  %v1281_v38 = vpop.xlane.xlu0 %1280 }
 0x269   : > { %4366 = vrcp.f32 %v1281_v38 }
 0x26b   : > { %v1284_v62 = vpop.xlane.xlu1 %1283  ;;  %v4363_v3 = vpop.eup %4362 }
 0x26c   : > { %4368 = vrcp.f32 %v1284_v62 }
 0x270   : > { %v4365_v19 = vpop.eup %4364  ;;  %v1287_v50 = vpop.xlane.xlu0 %1286 }
 0x271   : > { %4370 = vrcp.f32 %v1287_v50 }
 0x273   : > { %v1290_v32 = vpop.xlane.xlu1 %1289  ;;  %v4367_v29 = vpop.eup %4366 }
 0x274   : > { %4372 = vrcp.f32 %v1290_v32 }
 0x276   : > { %v4369_v54 = vpop.eup %4368 }
 0x278   : > { %v1293_v20 = vpop.xlane.xlu0 %1292 }
 0x279   : > { %4374 = vrcp.f32 %v1293_v20 }
 0x27b   : > { %v1296_v21 = vpop.xlane.xlu1 %1295  ;;  %v4371_v43 = vpop.eup %4370 }
 0x27c   : > { %4376 = vrcp.f32 %v1296_v21 }
 0x27e   : > { %v4373_v60 = vpop.eup %4372 }
 0x280   : > { %v1299_v55 = vpop.xlane.xlu0 %1298 }
 0x281   : > { %4378 = vrcp.f32 %v1299_v55 }
 0x283   : > { %v1302_v45 = vpop.xlane.xlu1 %1301  ;;  %v4375_v48 = vpop.eup %4374 }
 0x284   : > { %4380 = vrcp.f32 %v1302_v45 }
 0x286   : > { %v4377_v11 = vpop.eup %4376 }
 0x288   : > { %v1305_v25 = vpop.xlane.xlu0 %1304 }
 0x289   : > { %4382 = vrcp.f32 %v1305_v25 }
 0x28b   : > { %v1308_v59 = vpop.xlane.xlu1 %1307 }
 0x28c   : > { %4384 = vrcp.f32 %v1308_v59 }
 0x290   : > { %v1311_v62 = vpop.xlane.xlu0 %1310 }
 0x291   : > { %4386 = vrcp.f32 %v1311_v62 }
 0x298   : > { %v1317_v32 = vpop.xlane.xlu0 %1316 }
 0x2a0   : > { %v1323_v21 = vpop.xlane.xlu0 %1322 }
 0x2a3   : > { %v3806_v56 = vpop.f32.mrb[0].mxu1 }
 0x2a4   : > { %v3807_v57 = vpop.f32.mrb[1].mxu1 }
 0x2a5   : > { %v3808_v28 = vadd.f32 %v3807_v57, %v3806_v56  ;;  %v3809_v30 = vpop.f32.mrb[2].mxu1 }
 0x2a6   : > { %v3810_v58 = vpop.f32.mrb[3].mxu1 }
 0x2a7   : > { %v3811_v61 = vadd.f32 %v3810_v58, %v3809_v30  ;;  %v1716_v15 = vmul.f32 %v4359_v63, %v3808_v28 }
 0x2a8   : > { %v1329_v45 = vpop.xlane.xlu0 %1328 }
 0x2a9   : > { %v1717_v44 = vmul.f32 %v4361_v14, %v3811_v61  ;;  %v4379_v61 = vpop.eup %4378 }
 0x2ab   : > { %v3812_v0 = vpop.f32.mrb[4].mxu1  ;;  %v1812_v16 = vpack.c.bf16 %v1717_v44, %v1716_v15  ;;  %v4381_v15 = vpop.eup %4380 }
 0x2ac   : > { %v3813_v18 = vpop.f32.mrb[5].mxu1 }
 0x2ad   : > { %v3814_v1 = vadd.f32 %v3813_v18, %v3812_v0  ;;  %v3815_v33 = vpop.f32.mrb[6].mxu1  ;;  %3990 = vmatprep.mubr.bf16.mxu1 %v1812_v16  ;;  %v1314_v0 = vpop.xlane.xlu1 %1313 }
 0x2ae   : > { %v3816_v2 = vpop.f32.mrb[7].mxu1  ;;  %4388 = vrcp.f32 %v1314_v0 }
 0x2af   : > { %v3817_v35 = vadd.f32 %v3816_v2, %v3815_v33  ;;  %v1718_v4 = vmul.f32 %v4363_v3, %v3814_v1  ;;  %4390 = vrcp.f32 %v1317_v32 }
 0x2b0   : > { %v1335_v59 = vpop.xlane.xlu0 %1334 }
 0x2b1   : > { %v1719_v9 = vmul.f32 %v4365_v19, %v3817_v35  ;;  %v4383_v35 = vpop.eup %4382 }
 0x2b3   : > { %v1813_v34 = vpack.c.bf16 %v1719_v9, %v1718_v4  ;;  %v3818_v51 = vpop.f32.mrb[8].mxu1  ;;  %v4385_v4 = vpop.eup %4384 }
 0x2b4   : > { %v3819_v6 = vpop.f32.mrb[9].mxu1 }
 0x2b5   : > { %v3820_v36 = vadd.f32 %v3819_v6, %v3818_v51  ;;  %v3821_v39 = vpop.f32.mrb[10].mxu1  ;;  %3991 = vmatmul.mubr.bf16.vlgmr.msra.gmra.mrb[64].mxu1 %v1813_v34  ;;  %v1320_v34 = vpop.xlane.xlu1 %1319 }
 0x2b6   : > { %v3822_v37 = vpop.f32.mrb[11].mxu1  ;;  %4392 = vrcp.f32 %v1320_v34 }
 0x2b7   : > { %v3823_v52 = vadd.f32 %v3822_v37, %v3821_v39  ;;  %v1720_v23 = vmul.f32 %v4367_v29, %v3820_v36  ;;  %4394 = vrcp.f32 %v1323_v21 }
 0x2b8   : > { %v1341_v0 = vpop.xlane.xlu0 %1340 }
 0x2b9   : > { %v1721_v40 = vmul.f32 %v4369_v54, %v3823_v52  ;;  %v4387_v52 = vpop.eup %4386 }
 0x2bb   : > { %v3824_v5 = vpop.f32.mrb[12].mxu1  ;;  %v1814_v12 = vpack.c.bf16 %v1721_v40, %v1720_v23  ;;  %v4389_v23 = vpop.eup %4388 }
 0x2bc   : > { %v3825_v13 = vpop.f32.mrb[13].mxu1 }
 0x2bd   : > { %v3826_v7 = vadd.f32 %v3825_v13, %v3824_v5  ;;  %v3827_v22 = vpop.f32.mrb[14].mxu1  ;;  %3994 = vmatprep.mubr.bf16.mxu1 %v1814_v12  ;;  %v1326_v5 = vpop.xlane.xlu1 %1325 }
 0x2be   : > { %v3828_v42 = vpop.f32.mrb[15].mxu1  ;;  %4396 = vrcp.f32 %v1326_v5 }
 0x2bf   : > { %v3829_v24 = vadd.f32 %v3828_v42, %v3827_v22  ;;  %v1722_v47 = vmul.f32 %v4371_v43, %v3826_v7  ;;  %4398 = vrcp.f32 %v1329_v45 }
 0x2c0   : > { %v1347_v34 = vpop.xlane.xlu0 %1346 }
 0x2c1   : > { %v1723_v53 = vmul.f32 %v4373_v60, %v3829_v24  ;;  %v4391_v24 = vpop.eup %4390 }
 0x2c3   : > { %v3830_v8 = vpop.f32.mrb[16].mxu1  ;;  %v1815_v10 = vpack.c.bf16 %v1723_v53, %v1722_v47  ;;  %v4393_v47 = vpop.eup %4392 }
 0x2c4   : > { %v3831_v49 = vpop.f32.mrb[17].mxu1 }
 0x2c5   : > { %v3832_v17 = vadd.f32 %v3831_v49, %v3830_v8  ;;  %v3833_v31 = vpop.f32.mrb[18].mxu1  ;;  %3995 = vmatmul.mubr.bf16.gmra.mrb[68].mxu1 %v1815_v10  ;;  %v1332_v8 = vpop.xlane.xlu1 %1331 }
 0x2c6   : > { %v3834_v46 = vpop.f32.mrb[19].mxu1  ;;  %4400 = vrcp.f32 %v1332_v8 }
 0x2c7   : > { %v3835_v41 = vadd.f32 %v3834_v46, %v3833_v31  ;;  %v1724_v26 = vmul.f32 %v4375_v48, %v3832_v17  ;;  %4402 = vrcp.f32 %v1335_v59 }
 0x2c8   : > { %v1353_v5 = vpop.xlane.xlu0 %1352 }
 0x2c9   : > { %v1725_v27 = vmul.f32 %v4377_v11, %v3835_v41  ;;  %v4395_v41 = vpop.eup %4394 }
 0x2cb   : > { %v3836_v56 = vpop.f32.mrb[20].mxu1  ;;  %v1816_v57 = vpack.c.bf16 %v1725_v27, %v1724_v26  ;;  %v4397_v26 = vpop.eup %4396 }
 0x2cc   : > { %v3837_v28 = vpop.f32.mrb[21].mxu1 }
 0x2cd   : > { %v3838_v30 = vadd.f32 %v3837_v28, %v3836_v56  ;;  %v3839_v58 = vpop.f32.mrb[22].mxu1  ;;  %3998 = vmatprep.mubr.bf16.mxu1 %v1816_v57  ;;  %v1338_v56 = vpop.xlane.xlu1 %1337 }
 0x2ce   : > { %v3840_v63 = vpop.f32.mrb[23].mxu1  ;;  %4404 = vrcp.f32 %v1338_v56 }
 0x2cf   : > { %v3841_v14 = vadd.f32 %v3840_v63, %v3839_v58  ;;  %v1726_v44 = vmul.f32 %v4379_v61, %v3838_v30  ;;  %4406 = vrcp.f32 %v1341_v0  ;;  %v3664_v0 = vld [vmem:[%s5012_s27] sm:$0xff]  }
 0x2d0   : > { %v1359_v8 = vpop.xlane.xlu0 %1358 }
 0x2d1   : > { %v1727_v38 = vmul.f32 %v4381_v15, %v3841_v14  ;;  %v4399_v14 = vpop.eup %4398 }
 0x2d3   : > { %v3842_v16 = vpop.f32.mrb[24].mxu1  ;;  %v1817_v18 = vpack.c.bf16 %v1727_v38, %v1726_v44  ;;  %v4401_v44 = vpop.eup %4400 }
 0x2d4   : > { %v3843_v1 = vpop.f32.mrb[25].mxu1 }
 0x2d5   : > { %v3844_v33 = vadd.f32 %v3843_v1, %v3842_v16  ;;  %v3845_v2 = vpop.f32.mrb[26].mxu1  ;;  %3999 = vmatmul.mubr.bf16.gmra.mrb[72].mxu1 %v1817_v18  ;;  %v1344_v16 = vpop.xlane.xlu1 %1343 }
 0x2d6   : > { %v3846_v3 = vpop.f32.mrb[27].mxu1  ;;  %4408 = vrcp.f32 %v1344_v16  ;;  %v5018_v16 = vld [vmem:[%s5845_s5] ss:$0 sm:$0xff] }
 0x2d7   : > { %v3847_v19 = vadd.f32 %v3846_v3, %v3845_v2  ;;  %v1728_v9 = vmul.f32 %v4383_v35, %v3844_v33  ;;  %4410 = vrcp.f32 %v1347_v34 }
 0x2d9   : > { %v1729_v50 = vmul.f32 %v4385_v4, %v3847_v19  ;;  %v4403_v19 = vpop.eup %4402 }
 0x2db   : > { %v3848_v51 = vpop.f32.mrb[28].mxu1  ;;  %v1818_v6 = vpack.c.bf16 %v1729_v50, %v1728_v9  ;;  %v4405_v9 = vpop.eup %4404 }
 0x2dc   : > { %v3849_v36 = vpop.f32.mrb[29].mxu1 }
 0x2dd   : > { %v3850_v39 = vadd.f32 %v3849_v36, %v3848_v51  ;;  %v3851_v37 = vpop.f32.mrb[30].mxu1  ;;  %4002 = vmatprep.mubr.bf16.mxu1 %v1818_v6  ;;  %v1350_v51 = vpop.xlane.xlu1 %1349 }
 0x2de   : > { %v3852_v29 = vpop.f32.mrb[31].mxu1  ;;  %4412 = vrcp.f32 %v1350_v51 }
 0x2df   : > { %v3853_v54 = vadd.f32 %v3852_v29, %v3851_v37  ;;  %v1730_v40 = vmul.f32 %v4387_v52, %v3850_v39  ;;  %4414 = vrcp.f32 %v1353_v5 }
 0x2e1   : > { %v1731_v20 = vmul.f32 %v4389_v23, %v3853_v54  ;;  %v4407_v54 = vpop.eup %4406 }
 0x2e3   : > { %v3854_v12 = vpop.f32.mrb[32].mxu1  ;;  %v1819_v13 = vpack.c.bf16 %v1731_v20, %v1730_v40  ;;  %v4409_v40 = vpop.eup %4408 }
 0x2e4   : > { %v3855_v7 = vpop.f32.mrb[33].mxu1 }
 0x2e5   : > { %v3856_v22 = vadd.f32 %v3855_v7, %v3854_v12  ;;  %v3857_v42 = vpop.f32.mrb[34].mxu1  ;;  %4003 = vmatmul.mubr.bf16.gmra.mrb[76].mxu1 %v1819_v13  ;;  %v1356_v12 = vpop.xlane.xlu1 %1355 }
 0x2e6   : > { %v3858_v43 = vpop.f32.mrb[35].mxu1  ;;  %4416 = vrcp.f32 %v1356_v12 }
 0x2e7   : > { %v3859_v60 = vadd.f32 %v3858_v43, %v3857_v42  ;;  %v1732_v53 = vmul.f32 %v4391_v24, %v3856_v22  ;;  %4418 = vrcp.f32 %v1359_v8 }
 0x2e9   : > { %v1733_v55 = vmul.f32 %v4393_v47, %v3859_v60  ;;  %v4411_v60 = vpop.eup %4410 }
 0x2eb   : > { %v3860_v10 = vpop.f32.mrb[36].mxu1  ;;  %v1820_v49 = vpack.c.bf16 %v1733_v55, %v1732_v53  ;;  %v4413_v53 = vpop.eup %4412 }
 0x2ec   : > { %v3861_v17 = vpop.f32.mrb[37].mxu1 }
 0x2ed   : > { %v3862_v31 = vadd.f32 %v3861_v17, %v3860_v10  ;;  %v3863_v46 = vpop.f32.mrb[38].mxu1  ;;  %4006 = vmatprep.mubr.bf16.mxu1 %v1820_v49  ;;  %v1362_v10 = vpop.xlane.xlu1 %1361 }
 0x2ee   : > { %v3864_v48 = vpop.f32.mrb[39].mxu1  ;;  %4420 = vrcp.f32 %v1362_v10  ;;  %v3731_v10 = vld [vmem:[%s5012_s27 + $0x28] sm:$0xff]  }
 0x2ef   : > { %v3865_v11 = vadd.f32 %v3864_v48, %v3863_v46  ;;  %v1734_v27 = vmul.f32 %v4395_v41, %v3862_v31 }
 0x2f1   : > { %v1735_v25 = vmul.f32 %v4397_v26, %v3865_v11  ;;  %v4415_v11 = vpop.eup %4414 }
 0x2f3   : > { %v3866_v57 = vpop.f32.mrb[40].mxu1  ;;  %v1821_v28 = vpack.c.bf16 %v1735_v25, %v1734_v27  ;;  %v4417_v27 = vpop.eup %4416 }
 0x2f4   : > { %v3867_v30 = vpop.f32.mrb[41].mxu1 }
 0x2f5   : > { %v3868_v58 = vadd.f32 %v3867_v30, %v3866_v57  ;;  %v3869_v63 = vpop.f32.mrb[42].mxu1  ;;  %4007 = vmatmul.mubr.bf16.gmra.mrb[80].mxu1 %v1821_v28 }
 0x2f6   : > { %v3870_v61 = vpop.f32.mrb[43].mxu1 }
 0x2f7   : > { %v3871_v15 = vadd.f32 %v3870_v61, %v3869_v63  ;;  %v1736_v38 = vmul.f32 %v4399_v14, %v3868_v58  ;;  %v4419_v61 = vpop.eup %4418 }
 0x2f9   : > { %v1737_v62 = vmul.f32 %v4401_v44, %v3871_v15  ;;  %v4421_v15 = vpop.eup %4420 }
 0x2fb   : > { %v3872_v18 = vpop.f32.mrb[44].mxu1  ;;  %v1822_v1 = vpack.c.bf16 %v1737_v62, %v1736_v38 }
 0x2fc   : > { %v3873_v33 = vpop.f32.mrb[45].mxu1 }
 0x2fd   : > { %v3874_v2 = vadd.f32 %v3873_v33, %v3872_v18  ;;  %v3875_v3 = vpop.f32.mrb[46].mxu1  ;;  %4010 = vmatprep.mubr.bf16.mxu1 %v1822_v1  ;;  %v3665_v1 = vunpack.c.l.bf16 %v3664_v0  ;;  %v3727_v33 = vld [vmem:[%s5012_s27 + $0x8] sm:$0xff]  }
 0x2fe   : > { %v3876_v35 = vpop.f32.mrb[47].mxu1  ;;  %v3670_v51 = vunpack.c.h.bf16 %v3727_v33 }
 0x2ff   : > { %v3877_v4 = vadd.f32 %v3876_v35, %v3875_v3  ;;  %v1738_v50 = vmul.f32 %v4403_v19, %v3874_v2  ;;  %v3666_v19 = vunpack.c.h.bf16 %v3664_v0 }
 0x301   : > { %v1739_v32 = vmul.f32 %v4405_v9, %v3877_v4  ;;  %v3669_v9 = vunpack.c.l.bf16 %v3727_v33 }
 0x303   : > { %v3878_v6 = vpop.f32.mrb[48].mxu1  ;;  %v1823_v36 = vpack.c.bf16 %v1739_v32, %v1738_v50 }
 0x304   : > { %v3879_v39 = vpop.f32.mrb[49].mxu1 }
 0x305   : > { %v3880_v37 = vadd.f32 %v3879_v39, %v3878_v6  ;;  %v3881_v29 = vpop.f32.mrb[50].mxu1  ;;  %4011 = vmatmul.mubr.bf16.gmra.mrb[84].mxu1 %v1823_v36 }
 0x306   : > { %v3882_v52 = vpop.f32.mrb[51].mxu1 }
 0x307   : > { %v3883_v23 = vadd.f32 %v3882_v52, %v3881_v29  ;;  %v1740_v20 = vmul.f32 %v4407_v54, %v3880_v37  ;;  %v3728_v29 = vld [vmem:[%s5012_s27 + $0x10] sm:$0xff]  }
 0x308   : > { %v3673_v54 = vunpack.c.l.bf16 %v3728_v29  ;;  %v3674_v5 = vunpack.c.h.bf16 %v3728_v29 }
 0x309   : > { %v1741_v21 = vmul.f32 %v4409_v40, %v3883_v23  ;;  %v3729_v23 = vld [vmem:[%s5012_s27 + $0x18] sm:$0xff]  }
 0x30b   : > { %v3884_v13 = vpop.f32.mrb[52].mxu1  ;;  %v1824_v7 = vpack.c.bf16 %v1741_v21, %v1740_v20 }
 0x30c   : > { %v3885_v22 = vpop.f32.mrb[53].mxu1 }
 0x30d   : > { %v3886_v42 = vadd.f32 %v3885_v22, %v3884_v13  ;;  %v3887_v43 = vpop.f32.mrb[54].mxu1  ;;  %4014 = vmatprep.mubr.bf16.mxu1 %v1824_v7  ;;  %v3677_v13 = vunpack.c.l.bf16 %v3729_v23 }
 0x30e   : > { %v3888_v24 = vpop.f32.mrb[55].mxu1 }
 0x30f   : > { %v3889_v47 = vadd.f32 %v3888_v24, %v3887_v43  ;;  %v1742_v55 = vmul.f32 %v4411_v60, %v3886_v42  ;;  %v3678_v43 = vunpack.c.h.bf16 %v3729_v23 }
 0x311   : > { %v1743_v45 = vmul.f32 %v4413_v53, %v3889_v47 }
 0x313   : > { %v3890_v49 = vpop.f32.mrb[56].mxu1  ;;  %v1825_v17 = vpack.c.bf16 %v1743_v45, %v1742_v55  ;;  %v3730_v55 = vld [vmem:[%s5012_s27 + $0x20] sm:$0xff]  }
 0x314   : > { %v3891_v31 = vpop.f32.mrb[57].mxu1  ;;  %v3681_v8 = vunpack.c.l.bf16 %v3730_v55 }
 0x315   : > { %v3892_v46 = vadd.f32 %v3891_v31, %v3890_v49  ;;  %v3893_v48 = vpop.f32.mrb[58].mxu1  ;;  %4015 = vmatmul.mubr.bf16.gmra.mrb[88].mxu1 %v1825_v17 }
 0x316   : > { %v3894_v41 = vpop.f32.mrb[59].mxu1 }
 0x317   : > { %v3895_v26 = vadd.f32 %v3894_v41, %v3893_v48  ;;  %v1744_v25 = vmul.f32 %v4415_v11, %v3892_v46  ;;  %v3682_v46 = vunpack.c.h.bf16 %v3730_v55  ;;  %v3685_v41 = vunpack.c.l.bf16 %v3731_v10 }
 0x319   : > { %v1745_v59 = vmul.f32 %v4417_v27, %v3895_v26 }
 0x31b   : > { %v3896_v56 = vpop.f32.mrb[60].mxu1  ;;  %v1826_v57 = vpack.c.bf16 %v1745_v59, %v1744_v25  ;;  %v3686_v25 = vunpack.c.h.bf16 %v3731_v10 }
 0x31c   : > { %v3897_v28 = vpop.f32.mrb[61].mxu1 }
 0x31d   : > { %v3898_v30 = vadd.f32 %v3897_v28, %v3896_v56  ;;  %v3899_v58 = vpop.f32.mrb[62].mxu1  ;;  %4018 = vmatprep.mubr.bf16.mxu1 %v1826_v57 }
 0x31e   : > { %v3900_v63 = vpop.f32.mrb[63].mxu1 }
 0x31f   : > { %v3901_v14 = vadd.f32 %v3900_v63, %v3899_v58  ;;  %v1746_v44 = vmul.f32 %v4419_v61, %v3898_v30  ;;  %v3732_v30 = vld [vmem:[%s5012_s27 + $0x30] sm:$0xff]   ;;  %v3733_v61 = vld [vmem:[%s5012_s27 + $0x38] sm:$0xff]  }
 0x320   : > { %v3689_v63 = vunpack.c.l.bf16 %v3732_v30  ;;  %v3693_v0 = vunpack.c.l.bf16 %v3733_v61 }
 0x321   : > { %v1747_v38 = vmul.f32 %v4421_v15, %v3901_v14 }
 0x323   : > { %v1827_v62 = vpack.c.bf16 %v1747_v38, %v1746_v44  ;;  %v3690_v38 = vunpack.c.h.bf16 %v3732_v30 }
 0x325   : > { %4019 = vmatmul.mubr.bf16.gmra.mrb[92].mxu1 %v1827_v62 }
 0x388   : > { %v3992_v18 = vpop.f32.mrb[64].mxu1 }
 0x389   : > { %v1933_v2 = vpop.f32.mrb[65].mxu1  ;;  %v1942_v50 = vadd.f32 %v3992_v18, %v5018_v16 }
 0x38a   : > { %v1934_v3 = vadd.f32 %v5018_v16, %v1933_v2  ;;  %v3993_v35 = vpop.f32.mrb[66].mxu1  ;;  %v3694_v2 = vunpack.c.h.bf16 %v3733_v61  ;;  %v3738_v61 = vld [vmem:[%s5012_s27 + $0x60] sm:$0xff]  }
 0x38b   : > { %v1936_v4 = vpop.f32.mrb[67].mxu1  ;;  %v1945_v6 = vadd.f32 %v3993_v35, %v5018_v16  ;;  %v5030_v39 = vadd.f32 %v3669_v9, %v1942_v50  ;;  %v3734_v9 = vld [vmem:[%s5012_s27 + $0x40] sm:$0xff]  }
 0x38c   : > { %v5023_v32 = vadd.f32 %v3665_v1, %v1934_v3  ;;  %v1937_v34 = vadd.f32 %v5018_v16, %v1936_v4 }
 0x38d   : > { %v5033_v37 = vadd.f32 %v3670_v51, %v1945_v6  ;;  %v3735_v51 = vld [vmem:[%s5012_s27 + $0x48] sm:$0xff]  }
 0x38e   : > { %v5027_v36 = vadd.f32 %v3666_v19, %v1937_v34  ;;  %2094 = vadd.xlane.f32.xlu0 %v5023_v32  ;;  %v3697_v34 = vunpack.c.l.bf16 %v3734_v9 }
 0x390   : > { %2096 = vadd.xlane.f32.xlu1 %v5027_v36 }
 0x392   : > { %2098 = vadd.xlane.f32.xlu0 %v5030_v39 }
 0x394   : > { %2100 = vadd.xlane.f32.xlu1 %v5033_v37 }
 0x398   : > { %v3996_v52 = vpop.f32.mrb[68].mxu1 }
 0x399   : > { %v1949_v40 = vpop.f32.mrb[69].mxu1  ;;  %v1958_v7 = vadd.f32 %v3996_v52, %v5018_v16 }
 0x39a   : > { %v1950_v20 = vadd.f32 %v5018_v16, %v1949_v40  ;;  %v3997_v21 = vpop.f32.mrb[70].mxu1  ;;  %v3701_v40 = vunpack.c.l.bf16 %v3735_v51 }
 0x39b   : > { %v1952_v12 = vpop.f32.mrb[71].mxu1  ;;  %v1961_v24 = vadd.f32 %v3997_v21, %v5018_v16  ;;  %v5048_v47 = vadd.f32 %v3677_v13, %v1958_v7 }
 0x39c   : > { %v5041_v22 = vadd.f32 %v3673_v54, %v1950_v20  ;;  %v1953_v42 = vadd.f32 %v5018_v16, %v1952_v12  ;;  %v3698_v54 = vunpack.c.h.bf16 %v3734_v9  ;;  %v3702_v12 = vunpack.c.h.bf16 %v3735_v51 }
 0x39d   : > { %v5051_v53 = vadd.f32 %v3678_v43, %v1961_v24  ;;  %v3736_v24 = vld [vmem:[%s5012_s27 + $0x50] sm:$0xff]  }
 0x39e   : > { %v5045_v60 = vadd.f32 %v3674_v5, %v1953_v42  ;;  %2102 = vadd.xlane.f32.xlu0 %v5041_v22 }
 0x3a0   : > { %2104 = vadd.xlane.f32.xlu1 %v5045_v60 }
 0x3a2   : > { %2106 = vadd.xlane.f32.xlu0 %v5048_v47 }
 0x3a4   : > { %2108 = vadd.xlane.f32.xlu1 %v5051_v53 }
 0x3a8   : > { %v4000_v45 = vpop.f32.mrb[72].mxu1 }
 0x3a9   : > { %v1965_v49 = vpop.f32.mrb[73].mxu1  ;;  %v1974_v11 = vadd.f32 %v4000_v45, %v5018_v16  ;;  %v3705_v45 = vunpack.c.l.bf16 %v3736_v24 }
 0x3aa   : > { %v1966_v17 = vadd.f32 %v5018_v16, %v1965_v49  ;;  %v4001_v31 = vpop.f32.mrb[74].mxu1 }
 0x3ab   : > { %v1968_v48 = vpop.f32.mrb[75].mxu1  ;;  %v1977_v59 = vadd.f32 %v4001_v31, %v5018_v16  ;;  %v5066_v57 = vadd.f32 %v3685_v41, %v1974_v11  ;;  %v3706_v31 = vunpack.c.h.bf16 %v3736_v24 }
 0x3ac   : > { %v5059_v26 = vadd.f32 %v3681_v8, %v1966_v17  ;;  %v1969_v27 = vadd.f32 %v5018_v16, %v1968_v48  ;;  %v3737_v8 = vld [vmem:[%s5012_s27 + $0x58] sm:$0xff]  }
 0x3ad   : > { %v5069_v28 = vadd.f32 %v3686_v25, %v1977_v59  ;;  %v3709_v48 = vunpack.c.l.bf16 %v3737_v8  ;;  %v3710_v25 = vunpack.c.h.bf16 %v3737_v8 }
 0x3ae   : > { %v5063_v56 = vadd.f32 %v3682_v46, %v1969_v27  ;;  %2110 = vadd.xlane.f32.xlu0 %v5059_v26 }
 0x3b0   : > { %2112 = vadd.xlane.f32.xlu1 %v5063_v56 }
 0x3b2   : > { %2114 = vadd.xlane.f32.xlu0 %v5066_v57 }
 0x3b4   : > { %2116 = vadd.xlane.f32.xlu1 %v5069_v28 }
 0x3b8   : > { %v4004_v58 = vpop.f32.mrb[76].mxu1 }
 0x3b9   : > { %v1981_v14 = vpop.f32.mrb[77].mxu1  ;;  %v1990_v18 = vadd.f32 %v4004_v58, %v5018_v16 }
 0x3ba   : > { %v1982_v15 = vadd.f32 %v5018_v16, %v1981_v14  ;;  %v4005_v44 = vpop.f32.mrb[78].mxu1 }
 0x3bb   : > { %v1984_v62 = vpop.f32.mrb[79].mxu1  ;;  %v1993_v3 = vadd.f32 %v4005_v44, %v5018_v16  ;;  %v5084_v19 = vadd.f32 %v3693_v0, %v1990_v18  ;;  %v3739_v44 = vld [vmem:[%s5012_s27 + $0x68] sm:$0xff]   ;;  %v3714_v18 = vunpack.c.h.bf16 %v3738_v61 }
 0x3bc   : > { %v5077_v1 = vadd.f32 %v3689_v63, %v1982_v15  ;;  %v1985_v33 = vadd.f32 %v5018_v16, %v1984_v62  ;;  %v3713_v15 = vunpack.c.l.bf16 %v3738_v61  ;;  %v4218_v61 = vld [vmem:[%s5848_s8 + $0x20] sm:$0xff]  }
 0x3bd   : > { %5910 = vst [vmem:[#allocation2_spill] sm:$0xff] %v5084_v19  ;;  %v5087_v4 = vadd.f32 %v3694_v2, %v1993_v3  ;;  %v3717_v2 = vunpack.c.l.bf16 %v3739_v44 }
 0x3be   : > { %v5081_v35 = vadd.f32 %v3690_v38, %v1985_v33  ;;  %2118 = vadd.xlane.f32.xlu0 %v5077_v1 }
 0x3bf   : > { %5911 = vst [vmem:[#allocation3_spill] sm:$0xff] %v5087_v4 }
 0x3c0   : > { %2120 = vadd.xlane.f32.xlu1 %v5081_v35 }
 0x3c2   : > { %2122 = vadd.xlane.f32.xlu0 %v5084_v19 }
 0x3c4   : > { %2124 = vadd.xlane.f32.xlu1 %v5087_v4 }
 0x3c8   : > { %v4008_v50 = vpop.f32.mrb[80].mxu1 }
 0x3c9   : > { %v1997_v6 = vpop.f32.mrb[81].mxu1  ;;  %v2006_v20 = vadd.f32 %v4008_v50, %v5018_v16 }
 0x3ca   : > { %v1998_v29 = vadd.f32 %v5018_v16, %v1997_v6  ;;  %v4009_v52 = vpop.f32.mrb[82].mxu1 }
 0x3cb   : > { %v2000_v23 = vpop.f32.mrb[83].mxu1  ;;  %v2009_v13 = vadd.f32 %v4009_v52, %v5018_v16  ;;  %v5102_v42 = vadd.f32 %v3701_v40, %v2006_v20 }
 0x3cc   : > { %v5095_v21 = vadd.f32 %v3697_v34, %v1998_v29  ;;  %v2001_v5 = vadd.f32 %v5018_v16, %v2000_v23  ;;  %v3718_v34 = vunpack.c.h.bf16 %v3739_v44  ;;  %v4214_v29 = vld [vmem:[%s5848_s8] sm:$0xff]   ;;  %v3740_v23 = vld [vmem:[%s5012_s27 + $0x70] sm:$0xff]  }
 0x3cd   : > { %5914 = vst [vmem:[#allocation6_spill] sm:$0xff] %v5102_v42  ;;  %v5105_v43 = vadd.f32 %v3702_v12, %v2009_v13  ;;  %4022 = vmatprep.subr.bf16.mxu0 %v4214_v29  ;;  %v3721_v20 = vunpack.c.l.bf16 %v3740_v23 }
 0x3ce   : > { %5912 = vst [vmem:[#allocation4_spill] sm:$0xff] %v5095_v21  ;;  %v5099_v7 = vadd.f32 %v3698_v54, %v2001_v5  ;;  %2126 = vadd.xlane.f32.xlu0 %v5095_v21  ;;  %4023 = vmatpush3.bf16.msra.mxu0 %v4214_v29  ;;  %v3741_v5 = vld [vmem:[%s5012_s27 + $0x78] sm:$0xff]  }
 0x3cf   : > { %5915 = vst [vmem:[#allocation7_spill] sm:$0xff] %v5105_v43  ;;  %v3725_v8 = vunpack.c.l.bf16 %v3741_v5 }
 0x3d0   : > { %5913 = vst [vmem:[#allocation5_spill] sm:$0xff] %v5099_v7  ;;  %2128 = vadd.xlane.f32.xlu1 %v5099_v7 }
 0x3d2   : > { %2130 = vadd.xlane.f32.xlu0 %v5102_v42 }
 0x3d4   : > { %2132 = vadd.xlane.f32.xlu1 %v5105_v43 }
 0x3d8   : > { %v4012_v55 = vpop.f32.mrb[84].mxu1 }
 0x3d9   : > { %v2013_v10 = vpop.f32.mrb[85].mxu1  ;;  %v2022_v41 = vadd.f32 %v4012_v55, %v5018_v16  ;;  %v3722_v55 = vunpack.c.h.bf16 %v3740_v23 }
 0x3da   : > { %v2014_v49 = vadd.f32 %v5018_v16, %v2013_v10  ;;  %v4013_v17 = vpop.f32.mrb[86].mxu1 }
 0x3db   : > { %v2016_v46 = vpop.f32.mrb[87].mxu1  ;;  %v2025_v59 = vadd.f32 %v4013_v17, %v5018_v16  ;;  %v5120_v58 = vadd.f32 %v3709_v48, %v2022_v41  ;;  %v4215_v41 = vld [vmem:[%s5848_s8 + $0x8] sm:$0xff]  }
 0x3dc   : > { %v5113_v11 = vadd.f32 %v3705_v45, %v2014_v49  ;;  %v2017_v27 = vadd.f32 %v5018_v16, %v2016_v46  ;;  %4024 = vmatprep.subr.bf16.mxu0 %v4215_v41 }
 0x3dd   : > { %5918 = vst [vmem:[#allocation10_spill] sm:$0xff] %v5120_v58  ;;  %v5123_v63 = vadd.f32 %v3710_v25, %v2025_v59  ;;  %4025 = vmatpush3.bf16.msra.mxu0 %v4215_v41  ;;  %v4217_v59 = vld [vmem:[%s5848_s8 + $0x18] sm:$0xff]  }
 0x3de   : > { %5916 = vst [vmem:[#allocation8_spill] sm:$0xff] %v5113_v11  ;;  %v5117_v30 = vadd.f32 %v3706_v31, %v2017_v27  ;;  %2134 = vadd.xlane.f32.xlu0 %v5113_v11  ;;  %v3726_v31 = vunpack.c.h.bf16 %v3741_v5 }
 0x3df   : > { %5919 = vst [vmem:[#allocation11_spill] sm:$0xff] %v5123_v63 }
 0x3e0   : > { %5917 = vst [vmem:[#allocation9_spill] sm:$0xff] %v5117_v30  ;;  %2136 = vadd.xlane.f32.xlu1 %v5117_v30 }
 0x3e2   : > { %2138 = vadd.xlane.f32.xlu0 %v5120_v58 }
 0x3e4   : > { %2140 = vadd.xlane.f32.xlu1 %v5123_v63 }
 0x3e8   : > { %v4016_v14 = vpop.f32.mrb[88].mxu1 }
 0x3e9   : > { %v2029_v38 = vpop.f32.mrb[89].mxu1  ;;  %v2038_v3 = vadd.f32 %v4016_v14, %v5018_v16 }
 0x3ea   : > { %v2030_v62 = vadd.f32 %v5018_v16, %v2029_v38  ;;  %v4017_v0 = vpop.f32.mrb[90].mxu1 }
 0x3eb   : > { %v2032_v33 = vpop.f32.mrb[91].mxu1  ;;  %v2041_v51 = vadd.f32 %v4017_v0, %v5018_v16  ;;  %v5141_v52 = vadd.f32 %v3717_v2, %v2038_v3 }
 0x3ec   : > { %v5131_v9 = vadd.f32 %v3713_v15, %v2030_v62  ;;  %v2033_v50 = vadd.f32 %v5018_v16, %v2032_v33 }
 0x3ed   : > { %5922 = vst [vmem:[#allocation14_spill] sm:$0xff] %v5141_v52  ;;  %v5144_v54 = vadd.f32 %v3718_v34, %v2041_v51 }
 0x3ee   : > { %5920 = vst [vmem:[#allocation12_spill] sm:$0xff] %v5131_v9  ;;  %v5135_v6 = vadd.f32 %v3714_v18, %v2033_v50  ;;  %2142 = vadd.xlane.f32.xlu0 %v5131_v9 }
 0x3ef   : > { %5923 = vst [vmem:[#allocation15_spill] sm:$0xff] %v5144_v54 }
 0x3f0   : > { %5921 = vst [vmem:[#allocation13_spill] sm:$0xff] %v5135_v6  ;;  %2144 = vadd.xlane.f32.xlu1 %v5135_v6 }
 0x3f2   : > { %2146 = vadd.xlane.f32.xlu0 %v5141_v52 }
 0x3f4   : > { %2148 = vadd.xlane.f32.xlu1 %v5144_v54 }
 0x3f8   : > { %v4020_v40 = vpop.f32.mrb[92].mxu1 }
 0x3f9   : > { %v2045_v12 = vpop.f32.mrb[93].mxu1  ;;  %v2054_v10 = vadd.f32 %v4020_v40, %v5018_v16 }
 0x3fa   : > { %v2046_v13 = vadd.f32 %v5018_v16, %v2045_v12  ;;  %v4021_v24 = vpop.f32.mrb[94].mxu1 }
 0x3fb   : > { %v2048_v45 = vpop.f32.mrb[95].mxu1  ;;  %v2057_v46 = vadd.f32 %v4021_v24, %v5018_v16  ;;  %v5162_v27 = vadd.f32 %v3725_v8, %v2054_v10 }
 0x3fc   : > { %v5152_v49 = vadd.f32 %v3721_v20, %v2046_v13  ;;  %v2049_v17 = vadd.f32 %v5018_v16, %v2048_v45  ;;  %v4216_v16 = vld [vmem:[%s5848_s8 + $0x10] sm:$0xff]  }
 0x3fd   : > { %5926 = vst [vmem:[#allocation18_spill] sm:$0xff] %v5162_v27  ;;  %v5165_v25 = vadd.f32 %v3726_v31, %v2057_v46  ;;  %4026 = vmatprep.subr.bf16.mxu0 %v4216_v16 }
 0x3fe   : > { %5924 = vst [vmem:[#allocation16_spill] sm:$0xff] %v5152_v49  ;;  %v5156_v48 = vadd.f32 %v3722_v55, %v2049_v17  ;;  %2150 = vadd.xlane.f32.xlu0 %v5152_v49  ;;  %4027 = vmatpush3.bf16.msra.mxu0 %v4216_v16 }
 0x3ff   : > { %5927 = vst [vmem:[#allocation19_spill] sm:$0xff] %v5165_v25  ;;  %4028 = vmatprep.subr.bf16.mxu0 %v4217_v59 }
 0x400   : > { %5925 = vst [vmem:[#allocation17_spill] sm:$0xff] %v5156_v48  ;;  %2152 = vadd.xlane.f32.xlu1 %v5156_v48 }
 0x402   : > { %2154 = vadd.xlane.f32.xlu0 %v5162_v27  ;;  %4029 = vmatpush3.bf16.msra.mxu0 %v4217_v59 }
 0x403   : > { %4030 = vmatprep.subr.bf16.mxu0 %v4218_v61 }
 0x404   : > { %2156 = vadd.xlane.f32.xlu1 %v5165_v25 }
 0x406   : > { %4031 = vmatpush3.bf16.msra.mxu0 %v4218_v61 }
 0x41b   : > { %v2095_v14 = vpop.xlane.xlu0 %2094 }
 0x41c   : > { %v2159_v15 = vmul.f32 0.0078125, %v2095_v14 }
 0x41d   : > { %v2097_v44 = vpop.xlane.xlu1 %2096 }
 0x41e   : > { %v5179_v38 = vsub.f32 %v5023_v32, %v2159_v15  ;;  %v2160_v62 = vmul.f32 0.0078125, %v2097_v44 }
 0x41f   : > { %v2099_v0 = vpop.xlane.xlu0 %2098 }
 0x420   : > { %v5182_v18 = vsub.f32 %v5027_v36, %v2160_v62  ;;  %v2161_v33 = vmul.f32 0.0078125, %v2099_v0  ;;  %v2223_v2 = vmul.f32 %v5179_v38, %v5179_v38 }
 0x421   : > { %v2101_v3 = vpop.xlane.xlu1 %2100 }
 0x422   : > { %v5187_v50 = vsub.f32 %v5030_v39, %v2161_v33  ;;  %v2162_v34 = vmul.f32 0.0078125, %v2101_v3  ;;  %2255 = vadd.xlane.f32.xlu0 %v2223_v2  ;;  %v2224_v51 = vmul.f32 %v5182_v18, %v5182_v18 }
 0x424   : > { %v5192_v29 = vsub.f32 %v5033_v37, %v2162_v34  ;;  %2257 = vadd.xlane.f32.xlu1 %v2224_v51  ;;  %v2225_v23 = vmul.f32 %v5187_v50, %v5187_v50  ;;  %v4219_v51 = vld [vmem:[%s5848_s8 + $0x28] sm:$0xff]  }
 0x425   : > { %4032 = vmatprep.subr.bf16.mxu0 %v4219_v51 }
 0x426   : > { %2259 = vadd.xlane.f32.xlu0 %v2225_v23  ;;  %v2226_v40 = vmul.f32 %v5192_v29, %v5192_v29  ;;  %4033 = vmatpush3.bf16.msra.mxu0 %v4219_v51 }
 0x428   : > { %2261 = vadd.xlane.f32.xlu1 %v2226_v40 }
 0x42b   : > { %v2103_v20 = vpop.xlane.xlu0 %2102 }
 0x42c   : > { %v2163_v5 = vmul.f32 0.0078125, %v2103_v20 }
 0x42d   : > { %v2105_v12 = vpop.xlane.xlu1 %2104 }
 0x42e   : > { %v5199_v13 = vsub.f32 %v5041_v22, %v2163_v5  ;;  %v2164_v24 = vmul.f32 0.0078125, %v2105_v12 }
 0x42f   : > { %v2107_v55 = vpop.xlane.xlu0 %2106 }
 0x430   : > { %v5202_v45 = vsub.f32 %v5045_v60, %v2164_v24  ;;  %v2165_v8 = vmul.f32 0.0078125, %v2107_v55  ;;  %v2227_v10 = vmul.f32 %v5199_v13, %v5199_v13  ;;  %v4220_v55 = vld [vmem:[%s5848_s8 + $0x30] sm:$0xff]  }
 0x431   : > { %v2109_v17 = vpop.xlane.xlu1 %2108  ;;  %4034 = vmatprep.subr.bf16.mxu0 %v4220_v55 }
 0x432   : > { %v5207_v31 = vsub.f32 %v5048_v47, %v2165_v8  ;;  %v2166_v46 = vmul.f32 0.0078125, %v2109_v17  ;;  %2263 = vadd.xlane.f32.xlu0 %v2227_v10  ;;  %v2228_v41 = vmul.f32 %v5202_v45, %v5202_v45  ;;  %4035 = vmatpush3.bf16.msra.mxu0 %v4220_v55  ;;  %v4221_v10 = vld [vmem:[%s5848_s8 + $0x38] sm:$0xff]  }
 0x433   : > { %4036 = vmatprep.subr.bf16.mxu0 %v4221_v10 }
 0x434   : > { %v5212_v16 = vsub.f32 %v5051_v53, %v2166_v46  ;;  %2265 = vadd.xlane.f32.xlu1 %v2228_v41  ;;  %v2229_v59 = vmul.f32 %v5207_v31, %v5207_v31 }
 0x436   : > { %2267 = vadd.xlane.f32.xlu0 %v2229_v59  ;;  %v2230_v61 = vmul.f32 %v5212_v16, %v5212_v16  ;;  %4037 = vmatpush3.bf16.msra.mxu0 %v4221_v10 }
 0x438   : > { %2269 = vadd.xlane.f32.xlu1 %v2230_v61 }
 0x43b   : > { %v2111_v14 = vpop.xlane.xlu0 %2110 }
 0x43c   : > { %v2167_v15 = vmul.f32 0.0078125, %v2111_v14 }
 0x43d   : > { %v2113_v44 = vpop.xlane.xlu1 %2112 }
 0x43e   : > { %v5219_v62 = vsub.f32 %v5059_v26, %v2167_v15  ;;  %v2168_v0 = vmul.f32 0.0078125, %v2113_v44 }
 0x43f   : > { %v2115_v33 = vpop.xlane.xlu0 %2114 }
 0x440   : > { %v5222_v2 = vsub.f32 %v5063_v56, %v2168_v0  ;;  %v2169_v3 = vmul.f32 0.0078125, %v2115_v33  ;;  %v2231_v34 = vmul.f32 %v5219_v62, %v5219_v62 }
 0x441   : > { %v2117_v23 = vpop.xlane.xlu1 %2116 }
 0x442   : > { %v5230_v40 = vsub.f32 %v5066_v57, %v2169_v3  ;;  %v2170_v20 = vmul.f32 0.0078125, %v2117_v23  ;;  %2271 = vadd.xlane.f32.xlu0 %v2231_v34  ;;  %v2232_v5 = vmul.f32 %v5222_v2, %v5222_v2 }
 0x444   : > { %v5235_v12 = vsub.f32 %v5069_v28, %v2170_v20  ;;  %2273 = vadd.xlane.f32.xlu1 %v2232_v5  ;;  %v2233_v24 = vmul.f32 %v5230_v40, %v5230_v40 }
 0x446   : > { %2275 = vadd.xlane.f32.xlu0 %v2233_v24  ;;  %v2234_v8 = vmul.f32 %v5235_v12, %v5235_v12 }
 0x448   : > { %2277 = vadd.xlane.f32.xlu1 %v2234_v8 }
 0x44b   : > { %v2119_v17 = vpop.xlane.xlu0 %2118 }
 0x44c   : > { %v2171_v46 = vmul.f32 0.0078125, %v2119_v17 }
 0x44d   : > { %v2121_v41 = vpop.xlane.xlu1 %2120 }
 0x44e   : > { %v5248_v59 = vsub.f32 %v5077_v1, %v2171_v46  ;;  %v2172_v61 = vmul.f32 0.0078125, %v2121_v41 }
 0x44f   : > { %v2123_v14 = vpop.xlane.xlu0 %2122 }
 0x450   : > { %v5251_v15 = vsub.f32 %v5081_v35, %v2172_v61  ;;  %v2173_v44 = vmul.f32 0.0078125, %v2123_v14  ;;  %v2235_v0 = vmul.f32 %v5248_v59, %v5248_v59 }
 0x451   : > { %v2125_v33 = vpop.xlane.xlu1 %2124 }
 0x452   : > { %v5256_v3 = vsub.f32 %v5084_v19, %v2173_v44  ;;  %v2174_v34 = vmul.f32 0.0078125, %v2125_v33  ;;  %2279 = vadd.xlane.f32.xlu0 %v2235_v0  ;;  %v2236_v51 = vmul.f32 %v5251_v15, %v5251_v15 }
 0x454   : > { %v5261_v23 = vsub.f32 %v5087_v4, %v2174_v34  ;;  %2281 = vadd.xlane.f32.xlu1 %v2236_v51  ;;  %v2237_v20 = vmul.f32 %v5256_v3, %v5256_v3 }
 0x456   : > { %2283 = vadd.xlane.f32.xlu0 %v2237_v20  ;;  %v2238_v5 = vmul.f32 %v5261_v23, %v5261_v23 }
 0x458   : > { %2285 = vadd.xlane.f32.xlu1 %v2238_v5 }
 0x45b   : > { %v2127_v24 = vpop.xlane.xlu0 %2126 }
 0x45c   : > { %v2175_v55 = vmul.f32 0.0078125, %v2127_v24 }
 0x45d   : > { %v2129_v8 = vpop.xlane.xlu1 %2128 }
 0x45e   : > { %v5268_v10 = vsub.f32 %v5095_v21, %v2175_v55  ;;  %v2176_v17 = vmul.f32 0.0078125, %v2129_v8 }
 0x45f   : > { %v2131_v46 = vpop.xlane.xlu0 %2130 }
 0x460   : > { %v5271_v41 = vsub.f32 %v5099_v7, %v2176_v17  ;;  %v2177_v61 = vmul.f32 0.0078125, %v2131_v46  ;;  %v2239_v14 = vmul.f32 %v5268_v10, %v5268_v10 }
 0x461   : > { %v2133_v44 = vpop.xlane.xlu1 %2132 }
 0x462   : > { %v5276_v0 = vsub.f32 %v5102_v42, %v2177_v61  ;;  %v2178_v33 = vmul.f32 0.0078125, %v2133_v44  ;;  %2287 = vadd.xlane.f32.xlu0 %v2239_v14  ;;  %v2240_v34 = vmul.f32 %v5271_v41, %v5271_v41 }
 0x464   : > { %v5281_v51 = vsub.f32 %v5105_v43, %v2178_v33  ;;  %2289 = vadd.xlane.f32.xlu1 %v2240_v34  ;;  %v2241_v20 = vmul.f32 %v5276_v0, %v5276_v0 }
 0x466   : > { %2291 = vadd.xlane.f32.xlu0 %v2241_v20  ;;  %v2242_v5 = vmul.f32 %v5281_v51, %v5281_v51 }
 0x468   : > { %2293 = vadd.xlane.f32.xlu1 %v2242_v5 }
 0x46b   : > { %v2135_v24 = vpop.xlane.xlu0 %2134 }
 0x46c   : > { %v2179_v55 = vmul.f32 0.0078125, %v2135_v24 }
 0x46d   : > { %v2137_v8 = vpop.xlane.xlu1 %2136 }
 0x46e   : > { %v5288_v17 = vsub.f32 %v5113_v11, %v2179_v55  ;;  %v2180_v46 = vmul.f32 0.0078125, %v2137_v8 }
 0x46f   : > { %v2139_v61 = vpop.xlane.xlu0 %2138 }
 0x470   : > { %v5291_v14 = vsub.f32 %v5117_v30, %v2180_v46  ;;  %v2181_v44 = vmul.f32 0.0078125, %v2139_v61  ;;  %v2243_v33 = vmul.f32 %v5288_v17, %v5288_v17 }
 0x471   : > { %v2141_v34 = vpop.xlane.xlu1 %2140 }
 0x472   : > { %v5296_v20 = vsub.f32 %v5120_v58, %v2181_v44  ;;  %v2182_v5 = vmul.f32 0.0078125, %v2141_v34  ;;  %2295 = vadd.xlane.f32.xlu0 %v2243_v33  ;;  %v2244_v24 = vmul.f32 %v5291_v14, %v5291_v14 }
 0x474   : > { %v5301_v55 = vsub.f32 %v5123_v63, %v2182_v5  ;;  %2297 = vadd.xlane.f32.xlu1 %v2244_v24  ;;  %v2245_v8 = vmul.f32 %v5296_v20, %v5296_v20 }
 0x476   : > { %2299 = vadd.xlane.f32.xlu0 %v2245_v8  ;;  %v2246_v46 = vmul.f32 %v5301_v55, %v5301_v55 }
 0x478   : > { %2301 = vadd.xlane.f32.xlu1 %v2246_v46 }
 0x47b   : > { %v2143_v61 = vpop.xlane.xlu0 %2142 }
 0x47c   : > { %v2183_v44 = vmul.f32 0.0078125, %v2143_v61 }
 0x47d   : > { %v2145_v58 = vpop.xlane.xlu1 %2144 }
 0x47e   : > { %v5308_v33 = vsub.f32 %v5131_v9, %v2183_v44  ;;  %v2184_v34 = vmul.f32 0.0078125, %v2145_v58 }
 0x47f   : > { %v2147_v30 = vpop.xlane.xlu0 %2146 }
 0x480   : > { %v5311_v5 = vsub.f32 %v5135_v6, %v2184_v34  ;;  %v2185_v24 = vmul.f32 0.0078125, %v2147_v30  ;;  %v2247_v63 = vmul.f32 %v5308_v33, %v5308_v33 }
 0x481   : > { %v2149_v8 = vpop.xlane.xlu1 %2148 }
 0x482   : > { %v5316_v11 = vsub.f32 %v5141_v52, %v2185_v24  ;;  %v2186_v46 = vmul.f32 0.0078125, %v2149_v8  ;;  %2303 = vadd.xlane.f32.xlu0 %v2247_v63  ;;  %v2248_v61 = vmul.f32 %v5311_v5, %v5311_v5 }
 0x484   : > { %v5321_v44 = vsub.f32 %v5144_v54, %v2186_v46  ;;  %2305 = vadd.xlane.f32.xlu1 %v2248_v61  ;;  %v2249_v58 = vmul.f32 %v5316_v11, %v5316_v11 }
 0x486   : > { %2307 = vadd.xlane.f32.xlu0 %v2249_v58  ;;  %v2250_v30 = vmul.f32 %v5321_v44, %v5321_v44 }
 0x488   : > { %2309 = vadd.xlane.f32.xlu1 %v2250_v30 }
 0x48b   : > { %v2151_v34 = vpop.xlane.xlu0 %2150 }
 0x48c   : > { %v2187_v24 = vmul.f32 0.0078125, %v2151_v34 }
 0x48d   : > { %v2153_v52 = vpop.xlane.xlu1 %2152 }
 0x48e   : > { %v5328_v63 = vsub.f32 %v5152_v49, %v2187_v24  ;;  %v2188_v8 = vmul.f32 0.0078125, %v2153_v52 }
 0x48f   : > { %v2155_v6 = vpop.xlane.xlu0 %2154 }
 0x490   : > { %v5331_v46 = vsub.f32 %v5156_v48, %v2188_v8  ;;  %v2189_v61 = vmul.f32 0.0078125, %v2155_v6  ;;  %v2251_v54 = vmul.f32 %v5328_v63, %v5328_v63 }
 0x491   : > { %v2157_v58 = vpop.xlane.xlu1 %2156 }
 0x492   : > { %v5336_v9 = vsub.f32 %v5162_v27, %v2189_v61  ;;  %v2190_v30 = vmul.f32 0.0078125, %v2157_v58  ;;  %2311 = vadd.xlane.f32.xlu0 %v2251_v54  ;;  %v2252_v34 = vmul.f32 %v5331_v46, %v5331_v46 }
 0x494   : > { %v5341_v24 = vsub.f32 %v5165_v25, %v2190_v30  ;;  %2313 = vadd.xlane.f32.xlu1 %v2252_v34  ;;  %v2253_v52 = vmul.f32 %v5336_v9, %v5336_v9 }
 0x496   : > { %2315 = vadd.xlane.f32.xlu0 %v2253_v52  ;;  %v2254_v6 = vmul.f32 %v5341_v24, %v5341_v24 }
 0x498   : > { %2317 = vadd.xlane.f32.xlu1 %v2254_v6  ;;  %v5350_v6 = vld [vmem:[%s5846_s6] ss:$0 sm:$0xff] }
 0x4af   : > { %v2256_v8 = vpop.xlane.xlu0 %2255 }
 0x4b0   : > { %v2319_v61 = vmul.f32 0.0078125, %v2256_v8 }
 0x4b1   : > { %v2258_v27 = vpop.xlane.xlu1 %2257 }
 0x4b2   : > { %v2351_v58 = vadd.f32 1e-05, %v2319_v61  ;;  %v2320_v54 = vmul.f32 0.0078125, %v2258_v27 }
 0x4b3   : > { %v2260_v48 = vpop.xlane.xlu0 %2259 }
 0x4b4   : > { %4422 = vrsqrt.f32 %v2351_v58  ;;  %v2352_v49 = vadd.f32 1e-05, %v2320_v54  ;;  %v2321_v43 = vmul.f32 0.0078125, %v2260_v48 }
 0x4b5   : > { %v2262_v30 = vpop.xlane.xlu1 %2261 }
 0x4b6   : > { %4424 = vrsqrt.f32 %v2352_v49  ;;  %v2353_v34 = vadd.f32 1e-05, %v2321_v43  ;;  %v2322_v25 = vmul.f32 0.0078125, %v2262_v30 }
 0x4b8   : > { %4426 = vrsqrt.f32 %v2353_v34  ;;  %v2354_v42 = vadd.f32 1e-05, %v2322_v25 }
 0x4ba   : > { %4428 = vrsqrt.f32 %v2354_v42  ;;  %v5358_v42 = vld [vmem:[%s5847_s7] ss:$0 sm:$0xff] }
 0x4be   : > { %v4423_v52 = vpop.eup %4422 }
 0x4bf   : > { %v2264_v8 = vpop.xlane.xlu0 %2263  ;;  %v2415_v27 = vmul.f32 %v4423_v52, %v5179_v38 }
 0x4c0   : > { %v4425_v61 = vpop.eup %4424  ;;  %v2323_v58 = vmul.f32 0.0078125, %v2264_v8 }
 0x4c1   : > { %v2266_v54 = vpop.xlane.xlu1 %2265  ;;  %v2416_v48 = vmul.f32 %v4425_v61, %v5182_v18  ;;  %v2453_v43 = vmul.f32 %v5350_v6, %v2415_v27 }
 0x4c2   : > { %v4427_v49 = vpop.eup %4426  ;;  %v2355_v30 = vadd.f32 1e-05, %v2323_v58  ;;  %v2324_v25 = vmul.f32 0.0078125, %v2266_v54 }
 0x4c3   : > { %v2417_v34 = vmul.f32 %v4427_v49, %v5187_v50  ;;  %v2268_v7 = vpop.xlane.xlu0 %2267  ;;  %v2454_v38 = vmul.f32 %v5350_v6, %v2416_v48  ;;  %v2491_v58 = vadd.f32 %v5358_v42, %v2453_v43 }
 0x4c4   : > { %v4429_v52 = vpop.eup %4428  ;;  %4430 = vrsqrt.f32 %v2355_v30  ;;  %v2356_v8 = vadd.f32 1e-05, %v2324_v25  ;;  %v2325_v21 = vmul.f32 0.0078125, %v2268_v7 }
 0x4c5   : > { %v2455_v18 = vmul.f32 %v5350_v6, %v2417_v34  ;;  %v2418_v27 = vmul.f32 %v4429_v52, %v5192_v29  ;;  %v2270_v61 = vpop.xlane.xlu1 %2269  ;;  %v2492_v54 = vadd.f32 %v5358_v42, %v2454_v38 }
 0x4c6   : > { %4432 = vrsqrt.f32 %v2356_v8  ;;  %v2357_v4 = vadd.f32 1e-05, %v2325_v21  ;;  %v2326_v19 = vmul.f32 0.0078125, %v2270_v61 }
 0x4c7   : > { %v2456_v50 = vmul.f32 %v5350_v6, %v2418_v27  ;;  %v2523_v49 = vpack.c.bf16 %v2492_v54, %v2491_v58  ;;  %v2493_v7 = vadd.f32 %v5358_v42, %v2455_v18 }
 0x4c8   : > { %4434 = vrsqrt.f32 %v2357_v4  ;;  %v2358_v48 = vadd.f32 1e-05, %v2326_v19 }
 0x4c9   : > { %4038 = vmatprep.mubr.bf16.mxu0 %v2523_v49  ;;  %v2494_v30 = vadd.f32 %v5358_v42, %v2456_v50 }
 0x4ca   : > { %4436 = vrsqrt.f32 %v2358_v48 }
 0x4cb   : > { %v2524_v29 = vpack.c.bf16 %v2494_v30, %v2493_v7 }
 0x4cd   : > { %4039 = vmatmul.mubr.bf16.vlgmr.msra.gmra.mrb[64].mxu0 %v2524_v29 }
 0x4ce   : > { %v4431_v25 = vpop.eup %4430 }
 0x4cf   : > { %v2272_v43 = vpop.xlane.xlu0 %2271  ;;  %v2419_v34 = vmul.f32 %v4431_v25, %v5199_v13 }
 0x4d0   : > { %v4433_v38 = vpop.eup %4432  ;;  %v2327_v21 = vmul.f32 0.0078125, %v2272_v43 }
 0x4d1   : > { %v2274_v52 = vpop.xlane.xlu1 %2273  ;;  %v2420_v8 = vmul.f32 %v4433_v38, %v5202_v45  ;;  %v2457_v4 = vmul.f32 %v5350_v6, %v2419_v34 }
 0x4d2   : > { %v4435_v19 = vpop.eup %4434  ;;  %v2359_v27 = vadd.f32 1e-05, %v2327_v21  ;;  %v2328_v61 = vmul.f32 0.0078125, %v2274_v52 }
 0x4d3   : > { %v2276_v18 = vpop.xlane.xlu0 %2275  ;;  %v2458_v58 = vmul.f32 %v5350_v6, %v2420_v8  ;;  %v2421_v54 = vmul.f32 %v4435_v19, %v5207_v31  ;;  %v2495_v7 = vadd.f32 %v5358_v42, %v2457_v4 }
 0x4d4   : > { %v4437_v50 = vpop.eup %4436  ;;  %4438 = vrsqrt.f32 %v2359_v27  ;;  %v2360_v49 = vadd.f32 1e-05, %v2328_v61  ;;  %v2329_v48 = vmul.f32 0.0078125, %v2276_v18 }
 0x4d5   : > { %v2278_v13 = vpop.xlane.xlu1 %2277  ;;  %v2496_v30 = vadd.f32 %v5358_v42, %v2458_v58  ;;  %v2422_v45 = vmul.f32 %v4437_v50, %v5212_v16  ;;  %v2459_v29 = vmul.f32 %v5350_v6, %v2421_v54 }
 0x4d6   : > { %4440 = vrsqrt.f32 %v2360_v49  ;;  %v2361_v25 = vadd.f32 1e-05, %v2329_v48  ;;  %v2330_v43 = vmul.f32 0.0078125, %v2278_v13 }
 0x4d7   : > { %v2525_v34 = vpack.c.bf16 %v2496_v30, %v2495_v7  ;;  %v2460_v38 = vmul.f32 %v5350_v6, %v2422_v45  ;;  %v2497_v21 = vadd.f32 %v5358_v42, %v2459_v29 }
 0x4d8   : > { %4442 = vrsqrt.f32 %v2361_v25  ;;  %v2362_v31 = vadd.f32 1e-05, %v2330_v43 }
 0x4d9   : > { %4042 = vmatprep.mubr.bf16.mxu0 %v2525_v34  ;;  %v2498_v52 = vadd.f32 %v5358_v42, %v2460_v38 }
 0x4da   : > { %4444 = vrsqrt.f32 %v2362_v31 }
 0x4db   : > { %v2526_v8 = vpack.c.bf16 %v2498_v52, %v2497_v21 }
 0x4dd   : > { %4043 = vmatmul.mubr.bf16.gmra.mrb[68].mxu0 %v2526_v8 }
 0x4de   : > { %v4439_v4 = vpop.eup %4438 }
 0x4df   : > { %v2280_v16 = vpop.xlane.xlu0 %2279  ;;  %v2423_v19 = vmul.f32 %v4439_v4, %v5219_v62 }
 0x4e0   : > { %v4441_v27 = vpop.eup %4440  ;;  %v2331_v61 = vmul.f32 0.0078125, %v2280_v16 }
 0x4e1   : > { %v2282_v18 = vpop.xlane.xlu1 %2281  ;;  %v2424_v58 = vmul.f32 %v4441_v27, %v5222_v2  ;;  %v2461_v54 = vmul.f32 %v5350_v6, %v2423_v19 }
 0x4e2   : > { %v4443_v50 = vpop.eup %4442  ;;  %v2363_v49 = vadd.f32 1e-05, %v2331_v61  ;;  %v2332_v48 = vmul.f32 0.0078125, %v2282_v18 }
 0x4e3   : > { %v2284_v13 = vpop.xlane.xlu0 %2283  ;;  %v2462_v7 = vmul.f32 %v5350_v6, %v2424_v58  ;;  %v2425_v30 = vmul.f32 %v4443_v50, %v5230_v40  ;;  %v2499_v43 = vadd.f32 %v5358_v42, %v2461_v54 }
 0x4e4   : > { %v4445_v45 = vpop.eup %4444  ;;  %4446 = vrsqrt.f32 %v2363_v49  ;;  %v2364_v29 = vadd.f32 1e-05, %v2332_v48  ;;  %v2333_v25 = vmul.f32 0.0078125, %v2284_v13 }
 0x4e5   : > { %v2286_v62 = vpop.xlane.xlu1 %2285  ;;  %v2500_v34 = vadd.f32 %v5358_v42, %v2462_v7  ;;  %v2426_v2 = vmul.f32 %v4445_v45, %v5235_v12  ;;  %v2463_v38 = vmul.f32 %v5350_v6, %v2425_v30 }
 0x4e6   : > { %4448 = vrsqrt.f32 %v2364_v29  ;;  %v2365_v31 = vadd.f32 1e-05, %v2333_v25  ;;  %v2334_v21 = vmul.f32 0.0078125, %v2286_v62 }
 0x4e7   : > { %v2527_v52 = vpack.c.bf16 %v2500_v34, %v2499_v43  ;;  %v2464_v8 = vmul.f32 %v5350_v6, %v2426_v2  ;;  %v2501_v4 = vadd.f32 %v5358_v42, %v2463_v38 }
 0x4e8   : > { %4450 = vrsqrt.f32 %v2365_v31  ;;  %v2366_v40 = vadd.f32 1e-05, %v2334_v21 }
 0x4e9   : > { %4046 = vmatprep.mubr.bf16.mxu0 %v2527_v52  ;;  %v2502_v16 = vadd.f32 %v5358_v42, %v2464_v8 }
 0x4ea   : > { %4452 = vrsqrt.f32 %v2366_v40 }
 0x4eb   : > { %v2528_v19 = vpack.c.bf16 %v2502_v16, %v2501_v4 }
 0x4ed   : > { %4047 = vmatmul.mubr.bf16.gmra.mrb[72].mxu0 %v2528_v19 }
 0x4ee   : > { %v4447_v27 = vpop.eup %4446 }
 0x4ef   : > { %v2288_v12 = vpop.xlane.xlu0 %2287  ;;  %v2427_v61 = vmul.f32 %v4447_v27, %v5248_v59 }
 0x4f0   : > { %v4449_v18 = vpop.eup %4448  ;;  %v2335_v58 = vmul.f32 0.0078125, %v2288_v12 }
 0x4f1   : > { %v2290_v54 = vpop.xlane.xlu1 %2289  ;;  %v2428_v50 = vmul.f32 %v4449_v18, %v5251_v15  ;;  %v2465_v49 = vmul.f32 %v5350_v6, %v2427_v61 }
 0x4f2   : > { %v4451_v48 = vpop.eup %4450  ;;  %v2367_v13 = vadd.f32 1e-05, %v2335_v58  ;;  %v2336_v7 = vmul.f32 0.0078125, %v2290_v54 }
 0x4f3   : > { %v2292_v30 = vpop.xlane.xlu0 %2291  ;;  %v2466_v45 = vmul.f32 %v5350_v6, %v2428_v50  ;;  %v2429_v29 = vmul.f32 %v4451_v48, %v5256_v3  ;;  %v2503_v34 = vadd.f32 %v5358_v42, %v2465_v49 }
 0x4f4   : > { %v4453_v25 = vpop.eup %4452  ;;  %4454 = vrsqrt.f32 %v2367_v13  ;;  %v2368_v62 = vadd.f32 1e-05, %v2336_v7  ;;  %v2337_v43 = vmul.f32 0.0078125, %v2292_v30 }
 0x4f5   : > { %v2294_v59 = vpop.xlane.xlu1 %2293  ;;  %v2504_v2 = vadd.f32 %v5358_v42, %v2466_v45  ;;  %v2430_v15 = vmul.f32 %v4453_v25, %v5261_v23  ;;  %v2467_v38 = vmul.f32 %v5350_v6, %v2429_v29 }
 0x4f6   : > { %4456 = vrsqrt.f32 %v2368_v62  ;;  %v2369_v31 = vadd.f32 1e-05, %v2337_v43  ;;  %v2338_v21 = vmul.f32 0.0078125, %v2294_v59 }
 0x4f7   : > { %v2529_v52 = vpack.c.bf16 %v2504_v2, %v2503_v34  ;;  %v2468_v8 = vmul.f32 %v5350_v6, %v2430_v15  ;;  %v2505_v40 = vadd.f32 %v5358_v42, %v2467_v38 }
 0x4f8   : > { %4458 = vrsqrt.f32 %v2369_v31  ;;  %v2370_v3 = vadd.f32 1e-05, %v2338_v21 }
 0x4f9   : > { %4050 = vmatprep.mubr.bf16.mxu0 %v2529_v52  ;;  %v2506_v4 = vadd.f32 %v5358_v42, %v2468_v8 }
 0x4fa   : > { %4460 = vrsqrt.f32 %v2370_v3 }
 0x4fb   : > { %v2530_v16 = vpack.c.bf16 %v2506_v4, %v2505_v40 }
 0x4fd   : > { %4051 = vmatmul.mubr.bf16.gmra.mrb[76].mxu0 %v2530_v16 }
 0x4fe   : > { %v4455_v19 = vpop.eup %4454 }
 0x4ff   : > { %v2296_v23 = vpop.xlane.xlu0 %2295  ;;  %v2431_v27 = vmul.f32 %v4455_v19, %v5268_v10 }
 0x500   : > { %v4457_v12 = vpop.eup %4456  ;;  %v2339_v61 = vmul.f32 0.0078125, %v2296_v23 }
 0x501   : > { %v2298_v18 = vpop.xlane.xlu1 %2297  ;;  %v2432_v58 = vmul.f32 %v4457_v12, %v5271_v41  ;;  %v2469_v54 = vmul.f32 %v5350_v6, %v2431_v27 }
 0x502   : > { %v4459_v50 = vpop.eup %4458  ;;  %v2371_v49 = vadd.f32 1e-05, %v2339_v61  ;;  %v2340_v48 = vmul.f32 0.0078125, %v2298_v18 }
 0x503   : > { %v2300_v13 = vpop.xlane.xlu0 %2299  ;;  %v2470_v7 = vmul.f32 %v5350_v6, %v2432_v58  ;;  %v2433_v30 = vmul.f32 %v4459_v50, %v5276_v0  ;;  %v2507_v62 = vadd.f32 %v5358_v42, %v2469_v54 }
 0x504   : > { %v4461_v45 = vpop.eup %4460  ;;  %4462 = vrsqrt.f32 %v2371_v49  ;;  %v2372_v29 = vadd.f32 1e-05, %v2340_v48  ;;  %v2341_v25 = vmul.f32 0.0078125, %v2300_v13 }
 0x505   : > { %v2302_v10 = vpop.xlane.xlu1 %2301  ;;  %v2508_v43 = vadd.f32 %v5358_v42, %v2470_v7  ;;  %v2434_v41 = vmul.f32 %v4461_v45, %v5281_v51  ;;  %v2471_v59 = vmul.f32 %v5350_v6, %v2433_v30 }
 0x506   : > { %4464 = vrsqrt.f32 %v2372_v29  ;;  %v2373_v34 = vadd.f32 1e-05, %v2341_v25  ;;  %v2342_v2 = vmul.f32 0.0078125, %v2302_v10 }
 0x507   : > { %v2531_v15 = vpack.c.bf16 %v2508_v43, %v2507_v62  ;;  %v2472_v38 = vmul.f32 %v5350_v6, %v2434_v41  ;;  %v2509_v31 = vadd.f32 %v5358_v42, %v2471_v59 }
 0x508   : > { %4466 = vrsqrt.f32 %v2373_v34  ;;  %v2374_v0 = vadd.f32 1e-05, %v2342_v2 }
 0x509   : > { %4054 = vmatprep.mubr.bf16.mxu0 %v2531_v15  ;;  %v2510_v21 = vadd.f32 %v5358_v42, %v2472_v38 }
 0x50a   : > { %4468 = vrsqrt.f32 %v2374_v0 }
 0x50b   : > { %v2532_v52 = vpack.c.bf16 %v2510_v21, %v2509_v31 }
 0x50d   : > { %4055 = vmatmul.mubr.bf16.gmra.mrb[80].mxu0 %v2532_v52 }
 0x50e   : > { %v4463_v8 = vpop.eup %4462 }
 0x50f   : > { %v2304_v51 = vpop.xlane.xlu0 %2303  ;;  %v2435_v3 = vmul.f32 %v4463_v8, %v5288_v17 }
 0x510   : > { %v4465_v40 = vpop.eup %4464  ;;  %v2343_v4 = vmul.f32 0.0078125, %v2304_v51 }
 0x511   : > { %v2306_v16 = vpop.xlane.xlu1 %2305  ;;  %v2436_v19 = vmul.f32 %v4465_v40, %v5291_v14  ;;  %v2473_v23 = vmul.f32 %v5350_v6, %v2435_v3 }
 0x512   : > { %v4467_v27 = vpop.eup %4466  ;;  %v2375_v12 = vadd.f32 1e-05, %v2343_v4  ;;  %v2344_v61 = vmul.f32 0.0078125, %v2306_v16  ;;  %v4222_v4 = vld [vmem:[%s5850_s10] sm:$0xff]  }
 0x513   : > { %v2308_v18 = vpop.xlane.xlu0 %2307  ;;  %v2474_v58 = vmul.f32 %v5350_v6, %v2436_v19  ;;  %v2437_v54 = vmul.f32 %v4467_v27, %v5296_v20  ;;  %v2511_v13 = vadd.f32 %v5358_v42, %v2473_v23  ;;  %4070 = vmatprep.subr.bf16.mxu0 %v4222_v4  ;;  %4118 = vmatprep.subr.bf16.mxu1 %v4222_v4 }
 0x514   : > { %v4469_v50 = vpop.eup %4468  ;;  %4470 = vrsqrt.f32 %v2375_v12  ;;  %v2376_v49 = vadd.f32 1e-05, %v2344_v61  ;;  %v2345_v48 = vmul.f32 0.0078125, %v2308_v18  ;;  %4071 = vmatpush3.bf16.msra.mxu0 %v4222_v4  ;;  %4126 = vmatpush3.bf16.msra.mxu1 %v4222_v4 }
 0x515   : > { %v2310_v17 = vpop.xlane.xlu1 %2309  ;;  %v2512_v7 = vadd.f32 %v5358_v42, %v2474_v58  ;;  %v2438_v14 = vmul.f32 %v4469_v50, %v5301_v55  ;;  %v2475_v30 = vmul.f32 %v5350_v6, %v2437_v54  ;;  %v4223_v50 = vld [vmem:[%s5850_s10 + $0x8] sm:$0xff]  }
 0x516   : > { %4472 = vrsqrt.f32 %v2376_v49  ;;  %v2377_v45 = vadd.f32 1e-05, %v2345_v48  ;;  %v2346_v29 = vmul.f32 0.0078125, %v2310_v17  ;;  %4072 = vmatprep.subr.bf16.mxu0 %v4223_v50  ;;  %4119 = vmatprep.subr.bf16.mxu1 %v4223_v50 }
 0x517   : > { %v2533_v25 = vpack.c.bf16 %v2512_v7, %v2511_v13  ;;  %v2476_v10 = vmul.f32 %v5350_v6, %v2438_v14  ;;  %v2513_v62 = vadd.f32 %v5358_v42, %v2475_v30  ;;  %v4224_v13 = vld [vmem:[%s5850_s10 + $0x10] sm:$0xff]   ;;  %v4225_v30 = vld [vmem:[%s5850_s10 + $0x18] sm:$0xff]  }
 0x518   : > { %4474 = vrsqrt.f32 %v2377_v45  ;;  %v2378_v20 = vadd.f32 1e-05, %v2346_v29  ;;  %4073 = vmatpush3.bf16.msra.mxu0 %v4223_v50  ;;  %4127 = vmatpush3.bf16.msra.mxu1 %v4223_v50 }
 0x519   : > { %4058 = vmatprep.mubr.bf16.mxu0 %v2533_v25  ;;  %v2514_v43 = vadd.f32 %v5358_v42, %v2476_v10  ;;  %4074 = vmatprep.subr.bf16.mxu0 %v4224_v13 }
 0x51a   : > { %4476 = vrsqrt.f32 %v2378_v20  ;;  %4120 = vmatprep.subr.bf16.mxu1 %v4224_v13 }
 0x51b   : > { %v2534_v41 = vpack.c.bf16 %v2514_v43, %v2513_v62 }
 0x51c   : > { %4075 = vmatpush3.bf16.msra.mxu0 %v4224_v13  ;;  %4128 = vmatpush3.bf16.msra.mxu1 %v4224_v13 }
 0x51d   : > { %4059 = vmatmul.mubr.bf16.gmra.mrb[84].mxu0 %v2534_v41  ;;  %4076 = vmatprep.subr.bf16.mxu0 %v4225_v30 }
 0x51e   : > { %v4471_v59 = vpop.eup %4470  ;;  %4121 = vmatprep.subr.bf16.mxu1 %v4225_v30 }
 0x51f   : > { %v2312_v55 = vpop.xlane.xlu0 %2311  ;;  %v2439_v34 = vmul.f32 %v4471_v59, %v5308_v33 }
 0x520   : > { %v4473_v2 = vpop.eup %4472  ;;  %v2347_v15 = vmul.f32 0.0078125, %v2312_v55  ;;  %4077 = vmatpush3.bf16.msra.mxu0 %v4225_v30  ;;  %4129 = vmatpush3.bf16.msra.mxu1 %v4225_v30 }
 0x521   : > { %v2314_v38 = vpop.xlane.xlu1 %2313  ;;  %v2440_v0 = vmul.f32 %v4473_v2, %v5311_v5  ;;  %v2477_v31 = vmul.f32 %v5350_v6, %v2439_v34  ;;  %v4227_v2 = vld [vmem:[%s5850_s10 + $0x28] sm:$0xff]  }
 0x522   : > { %v4475_v21 = vpop.eup %4474  ;;  %v2379_v52 = vadd.f32 1e-05, %v2347_v15  ;;  %v2348_v8 = vmul.f32 0.0078125, %v2314_v38 }
 0x523   : > { %v2316_v51 = vpop.xlane.xlu0 %2315  ;;  %v2478_v3 = vmul.f32 %v5350_v6, %v2440_v0  ;;  %v2441_v40 = vmul.f32 %v4475_v21, %v5316_v11  ;;  %v2515_v5 = vadd.f32 %v5358_v42, %v2477_v31  ;;  %v4228_v0 = vld [vmem:[%s5850_s10 + $0x30] sm:$0xff]  }
 0x524   : > { %v4477_v33 = vpop.eup %4476  ;;  %4478 = vrsqrt.f32 %v2379_v52  ;;  %v2380_v16 = vadd.f32 1e-05, %v2348_v8  ;;  %v2349_v19 = vmul.f32 0.0078125, %v2316_v51 }
 0x525   : > { %v2318_v23 = vpop.xlane.xlu1 %2317  ;;  %v2516_v27 = vadd.f32 %v5358_v42, %v2478_v3  ;;  %v2442_v12 = vmul.f32 %v4477_v33, %v5321_v44  ;;  %v2479_v61 = vmul.f32 %v5350_v6, %v2441_v40 }
 0x526   : > { %4480 = vrsqrt.f32 %v2380_v16  ;;  %v2381_v11 = vadd.f32 1e-05, %v2349_v19  ;;  %v2350_v18 = vmul.f32 0.0078125, %v2318_v23 }
 0x527   : > { %v2535_v58 = vpack.c.bf16 %v2516_v27, %v2515_v5  ;;  %v2480_v54 = vmul.f32 %v5350_v6, %v2442_v12  ;;  %v2517_v44 = vadd.f32 %v5358_v42, %v2479_v61 }
 0x528   : > { %4482 = vrsqrt.f32 %v2381_v11  ;;  %v2382_v49 = vadd.f32 1e-05, %v2350_v18 }
 0x529   : > { %4062 = vmatprep.mubr.bf16.mxu0 %v2535_v58  ;;  %v2518_v48 = vadd.f32 %v5358_v42, %v2480_v54 }
 0x52a   : > { %4484 = vrsqrt.f32 %v2382_v49 }
 0x52b   : > { %v2536_v17 = vpack.c.bf16 %v2518_v48, %v2517_v44 }
 0x52d   : > { %4063 = vmatmul.mubr.bf16.gmra.mrb[88].mxu0 %v2536_v17 }
 0x52e   : > { %v4479_v7 = vpop.eup %4478 }
 0x52f   : > { %v2443_v14 = vmul.f32 %v4479_v7, %v5328_v63  ;;  %v4226_v63 = vld [vmem:[%s5850_s10 + $0x20] sm:$0xff]  }
 0x530   : > { %v4481_v45 = vpop.eup %4480  ;;  %4078 = vmatprep.subr.bf16.mxu0 %v4226_v63  ;;  %4122 = vmatprep.subr.bf16.mxu1 %v4226_v63 }
 0x531   : > { %v2444_v29 = vmul.f32 %v4481_v45, %v5331_v46  ;;  %v2481_v25 = vmul.f32 %v5350_v6, %v2443_v14  ;;  %4079 = vmatpush3.bf16.msra.mxu0 %v4226_v63  ;;  %4130 = vmatpush3.bf16.msra.mxu1 %v4226_v63 }
 0x532   : > { %v4483_v10 = vpop.eup %4482  ;;  %4080 = vmatprep.subr.bf16.mxu0 %v4227_v2  ;;  %4123 = vmatprep.subr.bf16.mxu1 %v4227_v2 }
 0x533   : > { %v2482_v20 = vmul.f32 %v5350_v6, %v2444_v29  ;;  %v2445_v62 = vmul.f32 %v4483_v10, %v5336_v9  ;;  %v2519_v41 = vadd.f32 %v5358_v42, %v2481_v25 }
 0x534   : > { %v4485_v43 = vpop.eup %4484 }
 0x535   : > { %v2520_v46 = vadd.f32 %v5358_v42, %v2482_v20  ;;  %v2446_v59 = vmul.f32 %v4485_v43, %v5341_v24  ;;  %v2483_v55 = vmul.f32 %v5350_v6, %v2445_v62  ;;  %4081 = vmatpush3.bf16.msra.mxu0 %v4227_v2  ;;  %4131 = vmatpush3.bf16.msra.mxu1 %v4227_v2 }
 0x536   : > { %4082 = vmatprep.subr.bf16.mxu0 %v4228_v0  ;;  %4124 = vmatprep.subr.bf16.mxu1 %v4228_v0 }
 0x537   : > { %v2537_v34 = vpack.c.bf16 %v2520_v46, %v2519_v41  ;;  %v2484_v9 = vmul.f32 %v5350_v6, %v2446_v59  ;;  %v2521_v15 = vadd.f32 %v5358_v42, %v2483_v55  ;;  %v4229_v6 = vld [vmem:[%s5850_s10 + $0x38] sm:$0xff]  }
 0x539   : > { %4066 = vmatprep.mubr.bf16.mxu0 %v2537_v34  ;;  %v2522_v38 = vadd.f32 %v5358_v42, %v2484_v9  ;;  %4083 = vmatpush3.bf16.msra.mxu0 %v4228_v0  ;;  %v5480_v42 = vld [vmem:[%s5849_s9] ss:$0 sm:$0xff] }
 0x53a   : > { %4132 = vmatpush3.bf16.msra.mxu1 %v4228_v0  ;;  %4084 = vmatprep.subr.bf16.mxu0 %v4229_v6 }
 0x53b   : > { %v2538_v24 = vpack.c.bf16 %v2522_v38, %v2521_v15  ;;  %4125 = vmatprep.subr.bf16.mxu1 %v4229_v6 }
 0x53d   : > { %4067 = vmatmul.mubr.bf16.gmra.mrb[92].mxu0 %v2538_v24 }
 0x53e   : > { %4085 = vmatpush3.bf16.msra.mxu0 %v4229_v6  ;;  %4133 = vmatpush3.bf16.msra.mxu1 %v4229_v6 }
 0x5a0   : > { %v4040_v31 = vpop.f32.mrb[64].mxu0 }
 0x5a1   : > { %v5483_v21 = vadd.f32 %v4040_v31, %v5480_v42  ;;  %v2644_v52 = vpop.f32.mrb[65].mxu0 }
 0x5a2   : > { %v5486_v8 = vadd.f32 %v5480_v42, %v2644_v52  ;;  %v4041_v51 = vpop.f32.mrb[66].mxu0 }
 0x5a3   : > { %v2773_v3 = vmul.f32 %v5483_v21, %v5483_v21  ;;  %v5491_v40 = vadd.f32 %v4041_v51, %v5480_v42  ;;  %v2647_v4 = vpop.f32.mrb[67].mxu0 }
 0x5a4   : > { %v2771_v33 = vmul.f32 %v5486_v8, %v5486_v8  ;;  %v5496_v16 = vadd.f32 %v5480_v42, %v2647_v4 }
 0x5a5   : > { %v2805_v19 = vmul.f32 %v2773_v3, %v5483_v21  ;;  %v2774_v5 = vmul.f32 %v5491_v40, %v5491_v40 }
 0x5a6   : > { %v2803_v23 = vmul.f32 %v2771_v33, %v5486_v8  ;;  %v2772_v27 = vmul.f32 %v5496_v16, %v5496_v16 }
 0x5a7   : > { %v2837_v12 = vmul.f32 0.044715, %v2805_v19  ;;  %v2806_v61 = vmul.f32 %v2774_v5, %v5491_v40 }
 0x5a8   : > { %v2835_v11 = vmul.f32 0.044715, %v2803_v23  ;;  %v2804_v18 = vmul.f32 %v2772_v27, %v5496_v16 }
 0x5a9   : > { %v2869_v58 = vadd.f32 %v2837_v12, %v5483_v21  ;;  %v2838_v54 = vmul.f32 0.044715, %v2806_v61 }
 0x5aa   : > { %v2867_v50 = vadd.f32 %v2835_v11, %v5486_v8  ;;  %v2836_v49 = vmul.f32 0.044715, %v2804_v18 }
 0x5ab   : > { %v2901_v44 = vmul.f32 0.7978846, %v2869_v58  ;;  %v2870_v48 = vadd.f32 %v2838_v54, %v5491_v40 }
 0x5ac   : > { %v2899_v17 = vmul.f32 0.7978846, %v2867_v50  ;;  %v2868_v13 = vadd.f32 %v2836_v49, %v5496_v16 }
 0x5ad   : > { %4486 = vtanh.f32 %v2901_v44  ;;  %v2902_v7 = vmul.f32 0.7978846, %v2870_v48 }
 0x5ae   : > { %4488 = vtanh.f32 %v2899_v17  ;;  %v2900_v14 = vmul.f32 0.7978846, %v2868_v13 }
 0x5af   : > { %4490 = vtanh.f32 %v2902_v7 }
 0x5b0   : > { %4492 = vtanh.f32 %v2900_v14  ;;  %v4044_v30 = vpop.f32.mrb[68].mxu0 }
 0x5b1   : > { %v5511_v45 = vadd.f32 %v4044_v30, %v5480_v42  ;;  %v2660_v29 = vpop.f32.mrb[69].mxu0 }
 0x5b2   : > { %v5514_v25 = vadd.f32 %v5480_v42, %v2660_v29  ;;  %v4045_v10 = vpop.f32.mrb[70].mxu0 }
 0x5b3   : > { %v2777_v20 = vmul.f32 %v5511_v45, %v5511_v45  ;;  %v5519_v62 = vadd.f32 %v4045_v10, %v5480_v42  ;;  %v2663_v63 = vpop.f32.mrb[71].mxu0 }
 0x5b4   : > { %v2775_v43 = vmul.f32 %v5514_v25, %v5514_v25  ;;  %v5524_v41 = vadd.f32 %v5480_v42, %v2663_v63 }
 0x5b5   : > { %v2809_v46 = vmul.f32 %v2777_v20, %v5511_v45  ;;  %v2778_v59 = vmul.f32 %v5519_v62, %v5519_v62 }
 0x5b6   : > { %v2807_v55 = vmul.f32 %v2775_v43, %v5514_v25  ;;  %v2776_v34 = vmul.f32 %v5524_v41, %v5524_v41 }
 0x5b7   : > { %v4487_v9 = vpop.eup %4486  ;;  %v2841_v2 = vmul.f32 0.044715, %v2809_v46  ;;  %v2810_v15 = vmul.f32 %v2778_v59, %v5519_v62 }
 0x5b8   : > { %v4489_v38 = vpop.eup %4488  ;;  %v2965_v24 = vadd.f32 1.0, %v4487_v9  ;;  %v2839_v0 = vmul.f32 0.044715, %v2807_v55  ;;  %v2808_v6 = vmul.f32 %v2776_v34, %v5524_v41 }
 0x5b9   : > { %v4491_v31 = vpop.eup %4490  ;;  %v2873_v52 = vadd.f32 %v2841_v2, %v5511_v45  ;;  %v2842_v51 = vmul.f32 0.044715, %v2810_v15  ;;  %v2963_v3 = vadd.f32 1.0, %v4489_v38 }
 0x5ba   : > { %v4493_v4 = vpop.eup %4492  ;;  %v2997_v33 = vmul.f32 0.5, %v2965_v24  ;;  %v2966_v19 = vadd.f32 1.0, %v4491_v31  ;;  %v2871_v5 = vadd.f32 %v2839_v0, %v5514_v25  ;;  %v2840_v23 = vmul.f32 0.044715, %v2808_v6 }
 0x5bb   : > { %v2905_v27 = vmul.f32 0.7978846, %v2873_v52  ;;  %v2874_v12 = vadd.f32 %v2842_v51, %v5519_v62  ;;  %v2964_v61 = vadd.f32 1.0, %v4493_v4  ;;  %v2995_v11 = vmul.f32 0.5, %v2963_v3 }
 0x5bc   : > { %v2998_v18 = vmul.f32 0.5, %v2966_v19  ;;  %v2903_v58 = vmul.f32 0.7978846, %v2871_v5  ;;  %v2872_v54 = vadd.f32 %v2840_v23, %v5524_v41  ;;  %v3029_v44 = vmul.f32 %v2997_v33, %v5483_v21 }
 0x5bd   : > { %4494 = vtanh.f32 %v2905_v27  ;;  %v2906_v50 = vmul.f32 0.7978846, %v2874_v12  ;;  %v2996_v49 = vmul.f32 0.5, %v2964_v61  ;;  %v3027_v13 = vmul.f32 %v2995_v11, %v5486_v8 }
 0x5be   : > { %v3030_v48 = vmul.f32 %v2998_v18, %v5491_v40  ;;  %4496 = vtanh.f32 %v2903_v58  ;;  %v2904_v17 = vmul.f32 0.7978846, %v2872_v54 }
 0x5bf   : > { %4498 = vtanh.f32 %v2906_v50  ;;  %v3028_v7 = vmul.f32 %v2996_v49, %v5496_v16 }
 0x5c0   : > { %v3060_v14 = vpack.c.bf16 %v3030_v48, %v3029_v44  ;;  %4500 = vtanh.f32 %v2904_v17  ;;  %v4048_v30 = vpop.f32.mrb[72].mxu0 }
 0x5c1   : > { %v5543_v29 = vadd.f32 %v4048_v30, %v5480_v42  ;;  %v2676_v10 = vpop.f32.mrb[73].mxu0  ;;  %v3059_v20 = vpack.c.bf16 %v3028_v7, %v3027_v13 }
 0x5c2   : > { %v5546_v63 = vadd.f32 %v5480_v42, %v2676_v10  ;;  %v4049_v21 = vpop.f32.mrb[74].mxu0 }
 0x5c3   : > { %v2781_v40 = vmul.f32 %v5543_v29, %v5543_v29  ;;  %v5551_v43 = vadd.f32 %v4049_v21, %v5480_v42  ;;  %v2679_v8 = vpop.f32.mrb[75].mxu0  ;;  %4086 = vmatprep.mubr.bf16.mxu0 %v3059_v20 }
 0x5c4   : > { %v2779_v16 = vmul.f32 %v5546_v63, %v5546_v63  ;;  %v5556_v46 = vadd.f32 %v5480_v42, %v2679_v8  ;;  %4087 = vmatmul.mubr.bf16.vlgmr.msra.gmra.mrb[96].mxu0 %v3060_v14 }
 0x5c5   : > { %v2813_v59 = vmul.f32 %v2781_v40, %v5543_v29  ;;  %v2782_v55 = vmul.f32 %v5551_v43, %v5551_v43 }
 0x5c6   : > { %v2811_v34 = vmul.f32 %v2779_v16, %v5546_v63  ;;  %v2780_v9 = vmul.f32 %v5556_v46, %v5556_v46 }
 0x5c7   : > { %v4495_v2 = vpop.eup %4494  ;;  %v2845_v15 = vmul.f32 0.044715, %v2813_v59  ;;  %v2814_v38 = vmul.f32 %v2782_v55, %v5551_v43 }
 0x5c8   : > { %v4497_v24 = vpop.eup %4496  ;;  %v2843_v0 = vmul.f32 0.044715, %v2811_v34  ;;  %v2812_v6 = vmul.f32 %v2780_v9, %v5556_v46  ;;  %v2969_v31 = vadd.f32 1.0, %v4495_v2 }
 0x5c9   : > { %v4499_v52 = vpop.eup %4498  ;;  %v2877_v51 = vadd.f32 %v2845_v15, %v5543_v29  ;;  %v2846_v3 = vmul.f32 0.044715, %v2814_v38  ;;  %v2967_v4 = vadd.f32 1.0, %v4497_v24 }
 0x5ca   : > { %v4501_v33 = vpop.eup %4500  ;;  %v2875_v19 = vadd.f32 %v2843_v0, %v5546_v63  ;;  %v2844_v5 = vmul.f32 0.044715, %v2812_v6  ;;  %v2970_v23 = vadd.f32 1.0, %v4499_v52  ;;  %v3001_v27 = vmul.f32 0.5, %v2969_v31 }
 0x5cb   : > { %v2909_v12 = vmul.f32 0.7978846, %v2877_v51  ;;  %v2878_v61 = vadd.f32 %v2846_v3, %v5551_v43  ;;  %v2968_v11 = vadd.f32 1.0, %v4501_v33  ;;  %v2999_v18 = vmul.f32 0.5, %v2967_v4 }
 0x5cc   : > { %v2907_v58 = vmul.f32 0.7978846, %v2875_v19  ;;  %v2876_v54 = vadd.f32 %v2844_v5, %v5556_v46  ;;  %v3002_v50 = vmul.f32 0.5, %v2970_v23  ;;  %v3033_v17 = vmul.f32 %v3001_v27, %v5511_v45 }
 0x5cd   : > { %4502 = vtanh.f32 %v2909_v12  ;;  %v2910_v49 = vmul.f32 0.7978846, %v2878_v61  ;;  %v3000_v44 = vmul.f32 0.5, %v2968_v11  ;;  %v3031_v7 = vmul.f32 %v2999_v18, %v5514_v25 }
 0x5ce   : > { %4504 = vtanh.f32 %v2907_v58  ;;  %v2908_v48 = vmul.f32 0.7978846, %v2876_v54  ;;  %v3034_v13 = vmul.f32 %v3002_v50, %v5519_v62 }
 0x5cf   : > { %4506 = vtanh.f32 %v2910_v49  ;;  %v3032_v14 = vmul.f32 %v3000_v44, %v5524_v41 }
 0x5d0   : > { %4508 = vtanh.f32 %v2908_v48  ;;  %v4052_v30 = vpop.f32.mrb[76].mxu0  ;;  %v3062_v10 = vpack.c.bf16 %v3034_v13, %v3033_v17 }
 0x5d1   : > { %v5575_v20 = vadd.f32 %v4052_v30, %v5480_v42  ;;  %v2692_v21 = vpop.f32.mrb[77].mxu0  ;;  %v3061_v40 = vpack.c.bf16 %v3032_v14, %v3031_v7 }
 0x5d2   : > { %v5578_v8 = vadd.f32 %v5480_v42, %v2692_v21  ;;  %v4053_v16 = vpop.f32.mrb[78].mxu0 }
 0x5d3   : > { %v2785_v45 = vmul.f32 %v5575_v20, %v5575_v20  ;;  %v5583_v62 = vadd.f32 %v4053_v16, %v5480_v42  ;;  %v2695_v25 = vpop.f32.mrb[79].mxu0  ;;  %4090 = vmatprep.mubr.bf16.mxu0 %v3061_v40 }
 0x5d4   : > { %v2783_v41 = vmul.f32 %v5578_v8, %v5578_v8  ;;  %v5588_v59 = vadd.f32 %v5480_v42, %v2695_v25  ;;  %4091 = vmatmul.mubr.bf16.gmra.mrb[100].mxu0 %v3062_v10 }
 0x5d5   : > { %v2817_v55 = vmul.f32 %v2785_v45, %v5575_v20  ;;  %v2786_v34 = vmul.f32 %v5583_v62, %v5583_v62 }
 0x5d6   : > { %v2815_v9 = vmul.f32 %v2783_v41, %v5578_v8  ;;  %v2784_v2 = vmul.f32 %v5588_v59, %v5588_v59 }
 0x5d7   : > { %v4503_v15 = vpop.eup %4502  ;;  %v2849_v38 = vmul.f32 0.044715, %v2817_v55  ;;  %v2818_v24 = vmul.f32 %v2786_v34, %v5583_v62 }
 0x5d8   : > { %v4505_v0 = vpop.eup %4504  ;;  %v2973_v6 = vadd.f32 1.0, %v4503_v15  ;;  %v2847_v31 = vmul.f32 0.044715, %v2815_v9  ;;  %v2816_v52 = vmul.f32 %v2784_v2, %v5588_v59 }
 0x5d9   : > { %v4507_v51 = vpop.eup %4506  ;;  %v2881_v3 = vadd.f32 %v2849_v38, %v5575_v20  ;;  %v2850_v4 = vmul.f32 0.044715, %v2818_v24  ;;  %v2971_v33 = vadd.f32 1.0, %v4505_v0 }
 0x5da   : > { %v4509_v19 = vpop.eup %4508  ;;  %v3005_v5 = vmul.f32 0.5, %v2973_v6  ;;  %v2974_v23 = vadd.f32 1.0, %v4507_v51  ;;  %v2879_v27 = vadd.f32 %v2847_v31, %v5578_v8  ;;  %v2848_v12 = vmul.f32 0.044715, %v2816_v52 }
 0x5db   : > { %v2913_v61 = vmul.f32 0.7978846, %v2881_v3  ;;  %v2882_v11 = vadd.f32 %v2850_v4, %v5583_v62  ;;  %v2972_v18 = vadd.f32 1.0, %v4509_v19  ;;  %v3003_v58 = vmul.f32 0.5, %v2971_v33 }
 0x5dc   : > { %v3006_v54 = vmul.f32 0.5, %v2974_v23  ;;  %v2911_v50 = vmul.f32 0.7978846, %v2879_v27  ;;  %v2880_v49 = vadd.f32 %v2848_v12, %v5588_v59  ;;  %v3037_v17 = vmul.f32 %v3005_v5, %v5543_v29 }
 0x5dd   : > { %4510 = vtanh.f32 %v2913_v61  ;;  %v2914_v44 = vmul.f32 0.7978846, %v2882_v11  ;;  %v3004_v48 = vmul.f32 0.5, %v2972_v18  ;;  %v3035_v14 = vmul.f32 %v3003_v58, %v5546_v63 }
 0x5de   : > { %v3038_v13 = vmul.f32 %v3006_v54, %v5551_v43  ;;  %4512 = vtanh.f32 %v2911_v50  ;;  %v2912_v7 = vmul.f32 0.7978846, %v2880_v49 }
 0x5df   : > { %4514 = vtanh.f32 %v2914_v44  ;;  %v3036_v30 = vmul.f32 %v3004_v48, %v5556_v46 }
 0x5e0   : > { %v3064_v10 = vpack.c.bf16 %v3038_v13, %v3037_v17  ;;  %4516 = vtanh.f32 %v2912_v7  ;;  %v4056_v21 = vpop.f32.mrb[80].mxu0 }
 0x5e1   : > { %v5607_v40 = vadd.f32 %v4056_v21, %v5480_v42  ;;  %v2708_v16 = vpop.f32.mrb[81].mxu0  ;;  %v3063_v45 = vpack.c.bf16 %v3036_v30, %v3035_v14 }
 0x5e2   : > { %v5610_v25 = vadd.f32 %v5480_v42, %v2708_v16  ;;  %v4057_v29 = vpop.f32.mrb[82].mxu0 }
 0x5e3   : > { %v2789_v43 = vmul.f32 %v5607_v40, %v5607_v40  ;;  %v5615_v41 = vadd.f32 %v4057_v29, %v5480_v42  ;;  %v2711_v63 = vpop.f32.mrb[83].mxu0  ;;  %4094 = vmatprep.mubr.bf16.mxu1 %v3063_v45 }
 0x5e4   : > { %v2787_v46 = vmul.f32 %v5610_v25, %v5610_v25  ;;  %v5620_v55 = vadd.f32 %v5480_v42, %v2711_v63  ;;  %4095 = vmatmul.mubr.bf16.vlgmr.msra.gmra.mrb[96].mxu1 %v3064_v10 }
 0x5e5   : > { %v2821_v34 = vmul.f32 %v2789_v43, %v5607_v40  ;;  %v2790_v9 = vmul.f32 %v5615_v41, %v5615_v41 }
 0x5e6   : > { %v2819_v2 = vmul.f32 %v2787_v46, %v5610_v25  ;;  %v2788_v15 = vmul.f32 %v5620_v55, %v5620_v55 }
 0x5e7   : > { %v4511_v38 = vpop.eup %4510  ;;  %v2853_v24 = vmul.f32 0.044715, %v2821_v34  ;;  %v2822_v0 = vmul.f32 %v2790_v9, %v5615_v41 }
 0x5e8   : > { %v4513_v6 = vpop.eup %4512  ;;  %v2851_v31 = vmul.f32 0.044715, %v2819_v2  ;;  %v2820_v52 = vmul.f32 %v2788_v15, %v5620_v55  ;;  %v2977_v51 = vadd.f32 1.0, %v4511_v38 }
 0x5e9   : > { %v4515_v3 = vpop.eup %4514  ;;  %v2885_v4 = vadd.f32 %v2853_v24, %v5607_v40  ;;  %v2854_v33 = vmul.f32 0.044715, %v2822_v0  ;;  %v2975_v19 = vadd.f32 1.0, %v4513_v6 }
 0x5ea   : > { %v4517_v5 = vpop.eup %4516  ;;  %v2883_v23 = vadd.f32 %v2851_v31, %v5610_v25  ;;  %v2852_v27 = vmul.f32 0.044715, %v2820_v52  ;;  %v2978_v12 = vadd.f32 1.0, %v4515_v3  ;;  %v3009_v61 = vmul.f32 0.5, %v2977_v51 }
 0x5eb   : > { %v2917_v11 = vmul.f32 0.7978846, %v2885_v4  ;;  %v2886_v18 = vadd.f32 %v2854_v33, %v5615_v41  ;;  %v2976_v58 = vadd.f32 1.0, %v4517_v5  ;;  %v3007_v54 = vmul.f32 0.5, %v2975_v19 }
 0x5ec   : > { %v2915_v50 = vmul.f32 0.7978846, %v2883_v23  ;;  %v2884_v49 = vadd.f32 %v2852_v27, %v5620_v55  ;;  %v3010_v44 = vmul.f32 0.5, %v2978_v12  ;;  %v3041_v7 = vmul.f32 %v3009_v61, %v5575_v20 }
 0x5ed   : > { %4518 = vtanh.f32 %v2917_v11  ;;  %v2918_v48 = vmul.f32 0.7978846, %v2886_v18  ;;  %v3008_v17 = vmul.f32 0.5, %v2976_v58  ;;  %v3039_v30 = vmul.f32 %v3007_v54, %v5578_v8 }
 0x5ee   : > { %4520 = vtanh.f32 %v2915_v50  ;;  %v2916_v13 = vmul.f32 0.7978846, %v2884_v49  ;;  %v3042_v14 = vmul.f32 %v3010_v44, %v5583_v62 }
 0x5ef   : > { %4522 = vtanh.f32 %v2918_v48  ;;  %v3040_v10 = vmul.f32 %v3008_v17, %v5588_v59 }
 0x5f0   : > { %4524 = vtanh.f32 %v2916_v13  ;;  %v4060_v21 = vpop.f32.mrb[84].mxu0  ;;  %v3066_v16 = vpack.c.bf16 %v3042_v14, %v3041_v7 }
 0x5f1   : > { %v5639_v45 = vadd.f32 %v4060_v21, %v5480_v42  ;;  %v2724_v29 = vpop.f32.mrb[85].mxu0  ;;  %v3065_v43 = vpack.c.bf16 %v3040_v10, %v3039_v30 }
 0x5f2   : > { %v5642_v63 = vadd.f32 %v5480_v42, %v2724_v29  ;;  %v4061_v46 = vpop.f32.mrb[86].mxu0 }
 0x5f3   : > { %v2793_v20 = vmul.f32 %v5639_v45, %v5639_v45  ;;  %v5647_v62 = vadd.f32 %v4061_v46, %v5480_v42  ;;  %v2727_v8 = vpop.f32.mrb[87].mxu0  ;;  %4098 = vmatprep.mubr.bf16.mxu1 %v3065_v43 }
 0x5f4   : > { %v2791_v59 = vmul.f32 %v5642_v63, %v5642_v63  ;;  %v5652_v34 = vadd.f32 %v5480_v42, %v2727_v8  ;;  %4099 = vmatmul.mubr.bf16.gmra.mrb[100].mxu1 %v3066_v16 }
 0x5f5   : > { %v2825_v9 = vmul.f32 %v2793_v20, %v5639_v45  ;;  %v2794_v2 = vmul.f32 %v5647_v62, %v5647_v62 }
 0x5f6   : > { %v2823_v15 = vmul.f32 %v2791_v59, %v5642_v63  ;;  %v2792_v38 = vmul.f32 %v5652_v34, %v5652_v34 }
 0x5f7   : > { %v4519_v24 = vpop.eup %4518  ;;  %v2857_v0 = vmul.f32 0.044715, %v2825_v9  ;;  %v2826_v6 = vmul.f32 %v2794_v2, %v5647_v62 }
 0x5f8   : > { %v4521_v31 = vpop.eup %4520  ;;  %v2855_v52 = vmul.f32 0.044715, %v2823_v15  ;;  %v2824_v51 = vmul.f32 %v2792_v38, %v5652_v34  ;;  %v2981_v3 = vadd.f32 1.0, %v4519_v24 }
 0x5f9   : > { %v4523_v4 = vpop.eup %4522  ;;  %v2889_v33 = vadd.f32 %v2857_v0, %v5639_v45  ;;  %v2858_v19 = vmul.f32 0.044715, %v2826_v6  ;;  %v2979_v5 = vadd.f32 1.0, %v4521_v31 }
 0x5fa   : > { %v4525_v23 = vpop.eup %4524  ;;  %v2887_v27 = vadd.f32 %v2855_v52, %v5642_v63  ;;  %v2856_v12 = vmul.f32 0.044715, %v2824_v51  ;;  %v2982_v61 = vadd.f32 1.0, %v4523_v4  ;;  %v3013_v11 = vmul.f32 0.5, %v2981_v3 }
 0x5fb   : > { %v2921_v18 = vmul.f32 0.7978846, %v2889_v33  ;;  %v2890_v58 = vadd.f32 %v2858_v19, %v5647_v62  ;;  %v2980_v54 = vadd.f32 1.0, %v4525_v23  ;;  %v3011_v50 = vmul.f32 0.5, %v2979_v5 }
 0x5fc   : > { %v2919_v49 = vmul.f32 0.7978846, %v2887_v27  ;;  %v2888_v44 = vadd.f32 %v2856_v12, %v5652_v34  ;;  %v3014_v48 = vmul.f32 0.5, %v2982_v61  ;;  %v3045_v14 = vmul.f32 %v3013_v11, %v5607_v40 }
 0x5fd   : > { %4526 = vtanh.f32 %v2921_v18  ;;  %v2922_v17 = vmul.f32 0.7978846, %v2890_v58  ;;  %v3012_v13 = vmul.f32 0.5, %v2980_v54  ;;  %v3043_v10 = vmul.f32 %v3011_v50, %v5610_v25 }
 0x5fe   : > { %4528 = vtanh.f32 %v2919_v49  ;;  %v2920_v7 = vmul.f32 0.7978846, %v2888_v44  ;;  %v3046_v30 = vmul.f32 %v3014_v48, %v5615_v41 }
 0x5ff   : > { %4530 = vtanh.f32 %v2922_v17  ;;  %v3044_v21 = vmul.f32 %v3012_v13, %v5620_v55 }
 0x600   : > { %4532 = vtanh.f32 %v2920_v7  ;;  %v4064_v16 = vpop.f32.mrb[88].mxu0  ;;  %v3068_v29 = vpack.c.bf16 %v3046_v30, %v3045_v14 }
 0x601   : > { %v5671_v43 = vadd.f32 %v4064_v16, %v5480_v42  ;;  %v2740_v46 = vpop.f32.mrb[89].mxu0  ;;  %v3067_v20 = vpack.c.bf16 %v3044_v21, %v3043_v10 }
 0x602   : > { %v5674_v8 = vadd.f32 %v5480_v42, %v2740_v46  ;;  %v4065_v59 = vpop.f32.mrb[90].mxu0 }
 0x603   : > { %v2797_v40 = vmul.f32 %v5671_v43, %v5671_v43  ;;  %v5679_v41 = vadd.f32 %v4065_v59, %v5480_v42  ;;  %v2743_v25 = vpop.f32.mrb[91].mxu0  ;;  %4102 = vmatprep.mubr.bf16.mxu1 %v3067_v20 }
 0x604   : > { %v2795_v55 = vmul.f32 %v5674_v8, %v5674_v8  ;;  %v5684_v9 = vadd.f32 %v5480_v42, %v2743_v25  ;;  %4103 = vmatmul.mubr.bf16.gmra.mrb[104].mxu1 %v3068_v29 }
 0x605   : > { %v2829_v2 = vmul.f32 %v2797_v40, %v5671_v43  ;;  %v2798_v15 = vmul.f32 %v5679_v41, %v5679_v41 }
 0x606   : > { %v2827_v38 = vmul.f32 %v2795_v55, %v5674_v8  ;;  %v2796_v24 = vmul.f32 %v5684_v9, %v5684_v9 }
 0x607   : > { %v4527_v0 = vpop.eup %4526  ;;  %v2861_v6 = vmul.f32 0.044715, %v2829_v2  ;;  %v2830_v31 = vmul.f32 %v2798_v15, %v5679_v41 }
 0x608   : > { %v4529_v52 = vpop.eup %4528  ;;  %v2859_v51 = vmul.f32 0.044715, %v2827_v38  ;;  %v2828_v3 = vmul.f32 %v2796_v24, %v5684_v9  ;;  %v2985_v4 = vadd.f32 1.0, %v4527_v0 }
 0x609   : > { %v4531_v33 = vpop.eup %4530  ;;  %v2893_v19 = vadd.f32 %v2861_v6, %v5671_v43  ;;  %v2862_v5 = vmul.f32 0.044715, %v2830_v31  ;;  %v2983_v23 = vadd.f32 1.0, %v4529_v52 }
 0x60a   : > { %v4533_v27 = vpop.eup %4532  ;;  %v2891_v12 = vadd.f32 %v2859_v51, %v5674_v8  ;;  %v2860_v61 = vmul.f32 0.044715, %v2828_v3  ;;  %v2986_v11 = vadd.f32 1.0, %v4531_v33  ;;  %v3017_v18 = vmul.f32 0.5, %v2985_v4 }
 0x60b   : > { %v2925_v58 = vmul.f32 0.7978846, %v2893_v19  ;;  %v2894_v54 = vadd.f32 %v2862_v5, %v5679_v41  ;;  %v2984_v50 = vadd.f32 1.0, %v4533_v27  ;;  %v3015_v49 = vmul.f32 0.5, %v2983_v23 }
 0x60c   : > { %v2923_v44 = vmul.f32 0.7978846, %v2891_v12  ;;  %v2892_v48 = vadd.f32 %v2860_v61, %v5684_v9  ;;  %v3018_v17 = vmul.f32 0.5, %v2986_v11  ;;  %v3049_v30 = vmul.f32 %v3017_v18, %v5639_v45 }
 0x60d   : > { %4534 = vtanh.f32 %v2925_v58  ;;  %v2926_v13 = vmul.f32 0.7978846, %v2894_v54  ;;  %v3016_v7 = vmul.f32 0.5, %v2984_v50  ;;  %v3047_v21 = vmul.f32 %v3015_v49, %v5642_v63 }
 0x60e   : > { %4536 = vtanh.f32 %v2923_v44  ;;  %v2924_v14 = vmul.f32 0.7978846, %v2892_v48  ;;  %v3050_v10 = vmul.f32 %v3018_v17, %v5647_v62 }
 0x60f   : > { %4538 = vtanh.f32 %v2926_v13  ;;  %v3048_v16 = vmul.f32 %v3016_v7, %v5652_v34 }
 0x610   : > { %4540 = vtanh.f32 %v2924_v14  ;;  %v4068_v29 = vpop.f32.mrb[92].mxu0  ;;  %v3070_v46 = vpack.c.bf16 %v3050_v10, %v3049_v30 }
 0x611   : > { %v5703_v20 = vadd.f32 %v4068_v29, %v5480_v42  ;;  %v2756_v59 = vpop.f32.mrb[93].mxu0  ;;  %v3069_v40 = vpack.c.bf16 %v3048_v16, %v3047_v21 }
 0x612   : > { %v5706_v25 = vadd.f32 %v5480_v42, %v2756_v59  ;;  %v4069_v55 = vpop.f32.mrb[94].mxu0 }
 0x613   : > { %v2801_v45 = vmul.f32 %v5703_v20, %v5703_v20  ;;  %v2768_v62 = vadd.f32 %v4069_v55, %v5480_v42  ;;  %v2759_v63 = vpop.f32.mrb[95].mxu0  ;;  %4106 = vmatprep.mubr.bf16.mxu1 %v3069_v40 }
 0x614   : > { %v2799_v34 = vmul.f32 %v5706_v25, %v5706_v25  ;;  %v2760_v2 = vadd.f32 %v5480_v42, %v2759_v63  ;;  %4107 = vmatmul.mubr.bf16.gmra.mrb[108].mxu1 %v3070_v46 }
 0x615   : > { %v2833_v15 = vmul.f32 %v2801_v45, %v5703_v20  ;;  %v2802_v38 = vmul.f32 %v2768_v62, %v2768_v62 }
 0x616   : > { %v2831_v24 = vmul.f32 %v2799_v34, %v5706_v25  ;;  %v2800_v0 = vmul.f32 %v2760_v2, %v2760_v2 }
 0x617   : > { %v4535_v6 = vpop.eup %4534  ;;  %v2865_v31 = vmul.f32 0.044715, %v2833_v15  ;;  %v2834_v52 = vmul.f32 %v2802_v38, %v2768_v62 }
 0x618   : > { %v4537_v51 = vpop.eup %4536  ;;  %v2863_v3 = vmul.f32 0.044715, %v2831_v24  ;;  %v2832_v4 = vmul.f32 %v2800_v0, %v2760_v2  ;;  %v2989_v33 = vadd.f32 1.0, %v4535_v6 }
 0x619   : > { %v4539_v19 = vpop.eup %4538  ;;  %v2897_v5 = vadd.f32 %v2865_v31, %v5703_v20  ;;  %v2866_v23 = vmul.f32 0.044715, %v2834_v52  ;;  %v2987_v27 = vadd.f32 1.0, %v4537_v51 }
 0x61a   : > { %v4541_v42 = vpop.eup %4540  ;;  %v2895_v12 = vadd.f32 %v2863_v3, %v5706_v25  ;;  %v2864_v61 = vmul.f32 0.044715, %v2832_v4  ;;  %v2990_v11 = vadd.f32 1.0, %v4539_v19  ;;  %v3021_v18 = vmul.f32 0.5, %v2989_v33  ;;  %v5727_v3 = vld [vmem:[%s5851_s11] ss:$0 sm:$0xff] }
 0x61b   : > { %v2929_v58 = vmul.f32 0.7978846, %v2897_v5  ;;  %v2898_v54 = vadd.f32 %v2866_v23, %v2768_v62  ;;  %v2988_v50 = vadd.f32 1.0, %v4541_v42  ;;  %v3019_v49 = vmul.f32 0.5, %v2987_v27 }
 0x61c   : > { %v2927_v44 = vmul.f32 0.7978846, %v2895_v12  ;;  %v2896_v48 = vadd.f32 %v2864_v61, %v2760_v2  ;;  %v3022_v17 = vmul.f32 0.5, %v2990_v11  ;;  %v3053_v30 = vmul.f32 %v3021_v18, %v5671_v43 }
 0x61d   : > { %4542 = vtanh.f32 %v2929_v58  ;;  %v2930_v13 = vmul.f32 0.7978846, %v2898_v54  ;;  %v3020_v7 = vmul.f32 0.5, %v2988_v50  ;;  %v3051_v21 = vmul.f32 %v3019_v49, %v5674_v8 }
 0x61e   : > { %4544 = vtanh.f32 %v2927_v44  ;;  %v2928_v14 = vmul.f32 0.7978846, %v2896_v48  ;;  %v3054_v10 = vmul.f32 %v3022_v17, %v5679_v41 }
 0x61f   : > { %4546 = vtanh.f32 %v2930_v13  ;;  %v3052_v16 = vmul.f32 %v3020_v7, %v5684_v9 }
 0x620   : > { %4548 = vtanh.f32 %v2928_v14  ;;  %v3072_v29 = vpack.c.bf16 %v3054_v10, %v3053_v30 }
 0x621   : > { %v3071_v46 = vpack.c.bf16 %v3052_v16, %v3051_v21 }
 0x623   : > { %4110 = vmatprep.mubr.bf16.mxu1 %v3071_v46 }
 0x624   : > { %4111 = vmatmul.mubr.bf16.gmra.mrb[112].mxu1 %v3072_v29 }
 0x627   : > { %v4543_v59 = vpop.eup %4542 }
 0x628   : > { %v4545_v40 = vpop.eup %4544  ;;  %v2993_v55 = vadd.f32 1.0, %v4543_v59 }
 0x629   : > { %v4547_v45 = vpop.eup %4546  ;;  %v2991_v63 = vadd.f32 1.0, %v4545_v40 }
 0x62a   : > { %v4549_v34 = vpop.eup %4548  ;;  %v2994_v15 = vadd.f32 1.0, %v4547_v45  ;;  %v3025_v43 = vmul.f32 0.5, %v2993_v55  ;;  %v5928_v45 = vld [vmem:[#allocation2_spill] sm:$0xff] }
 0x62b   : > { %v2992_v38 = vadd.f32 1.0, %v4549_v34  ;;  %v3023_v41 = vmul.f32 0.5, %v2991_v63  ;;  %v5929_v34 = vld [vmem:[#allocation3_spill] sm:$0xff] }
 0x62c   : > { %v3026_v24 = vmul.f32 0.5, %v2994_v15  ;;  %v3057_v8 = vmul.f32 %v3025_v43, %v5703_v20 }
 0x62d   : > { %v3024_v0 = vmul.f32 0.5, %v2992_v38  ;;  %v3055_v6 = vmul.f32 %v3023_v41, %v5706_v25 }
 0x62e   : > { %v3058_v9 = vmul.f32 %v3026_v24, %v2768_v62 }
 0x62f   : > { %v3056_v31 = vmul.f32 %v3024_v0, %v2760_v2  ;;  %v5930_v0 = vld [vmem:[#allocation4_spill] sm:$0xff] }
 0x630   : > { %v3074_v52 = vpack.c.bf16 %v3058_v9, %v3057_v8 }
 0x631   : > { %v3073_v51 = vpack.c.bf16 %v3056_v31, %v3055_v6  ;;  %v5931_v6 = vld [vmem:[#allocation5_spill] sm:$0xff] }
 0x633   : > { %4114 = vmatprep.mubr.bf16.mxu1 %v3073_v51 }
 0x634   : > { %4115 = vmatmul.mubr.bf16.gmra.mrb[116].mxu1 %v3074_v52  ;;  %v5932_v52 = vld [vmem:[#allocation6_spill] sm:$0xff] }
 0x697   : > { %v4088_v4 = vpop.f32.mrb[96].mxu0 }
 0x698   : > { %v3180_v33 = vpop.f32.mrb[97].mxu0  ;;  %v3189_v62 = vadd.f32 %v4088_v4, %v5727_v3 }
 0x699   : > { %v3181_v19 = vadd.f32 %v5727_v3, %v3180_v33  ;;  %v4089_v5 = vpop.f32.mrb[98].mxu0  ;;  %v5933_v33 = vld [vmem:[#allocation7_spill] sm:$0xff] }
 0x69a   : > { %v3183_v23 = vpop.f32.mrb[99].mxu0  ;;  %v3309_v27 = vadd.f32 %v3189_v62, %v5030_v39  ;;  %v3192_v42 = vadd.f32 %v4089_v5, %v5727_v3 }
 0x69b   : > { %v3307_v20 = vadd.f32 %v3181_v19, %v5023_v32  ;;  %v3184_v25 = vadd.f32 %v5727_v3, %v3183_v23 }
 0x69c   : > { %v3310_v12 = vadd.f32 %v3192_v42, %v5033_v37 }
 0x69d   : > { %3339 = vxpose.xlu0.b32.start [1/16] %v3307_v20, 128  ;;  %v3308_v2 = vadd.f32 %v3184_v25, %v5027_v36 }
 0x6a1   : > { %3340 = vxpose.xlu0.b32.cont [2/16] %v3308_v2, 128  ;;  %v5934_v2 = vld [vmem:[#allocation8_spill] sm:$0xff] }
 0x6a5   : > { %3341 = vxpose.xlu0.b32.cont [3/16] %v3309_v27, 128 }
 0x6a7   : > { %v4092_v61 = vpop.f32.mrb[100].mxu0 }
 0x6a8   : > { %v3196_v11 = vpop.f32.mrb[101].mxu0  ;;  %v3205_v36 = vadd.f32 %v4092_v61, %v5727_v3  ;;  %v5935_v61 = vld [vmem:[#allocation9_spill] sm:$0xff] }
 0x6a9   : > { %v3197_v18 = vadd.f32 %v5727_v3, %v3196_v11  ;;  %v4093_v32 = vpop.f32.mrb[102].mxu0  ;;  %3342 = vxpose.xlu0.b32.cont [4/16] %v3310_v12, 128 }
 0x6aa   : > { %v3199_v58 = vpop.f32.mrb[103].mxu0  ;;  %v3313_v49 = vadd.f32 %v3205_v36, %v5048_v47  ;;  %v3208_v37 = vadd.f32 %v4093_v32, %v5727_v3 }
 0x6ab   : > { %v3311_v54 = vadd.f32 %v3197_v18, %v5041_v22  ;;  %v3200_v50 = vadd.f32 %v5727_v3, %v3199_v58  ;;  %v5936_v18 = vld [vmem:[#allocation10_spill] sm:$0xff] }
 0x6ac   : > { %v3314_v44 = vadd.f32 %v3208_v37, %v5051_v53 }
 0x6ad   : > { %3343 = vxpose.xlu0.b32.cont [5/16] %v3311_v54, 128  ;;  %v3312_v39 = vadd.f32 %v3200_v50, %v5045_v60  ;;  %v5937_v54 = vld [vmem:[#allocation11_spill] sm:$0xff] }
 0x6b1   : > { %3344 = vxpose.xlu0.b32.cont [6/16] %v3312_v39, 128 }
 0x6b5   : > { %3345 = vxpose.xlu0.b32.cont [7/16] %v3313_v49, 128 }
 0x6b7   : > { %v4096_v48 = vpop.f32.mrb[96].mxu1 }
 0x6b8   : > { %v3212_v17 = vpop.f32.mrb[97].mxu1  ;;  %v3221_v60 = vadd.f32 %v4096_v48, %v5727_v3  ;;  %v5938_v48 = vld [vmem:[#allocation12_spill] sm:$0xff] }
 0x6b9   : > { %v3213_v13 = vadd.f32 %v5727_v3, %v3212_v17  ;;  %v4097_v22 = vpop.f32.mrb[98].mxu1  ;;  %3346 = vxpose.xlu0.b32.cont [8/16] %v3314_v44, 128 }
 0x6ba   : > { %v3215_v7 = vpop.f32.mrb[99].mxu1  ;;  %v3317_v10 = vadd.f32 %v3221_v60, %v5066_v57  ;;  %v3224_v53 = vadd.f32 %v4097_v22, %v5727_v3 }
 0x6bb   : > { %v3315_v14 = vadd.f32 %v3213_v13, %v5059_v26  ;;  %v3216_v30 = vadd.f32 %v5727_v3, %v3215_v7  ;;  %v5939_v7 = vld [vmem:[#allocation13_spill] sm:$0xff] }
 0x6bc   : > { %v3318_v21 = vadd.f32 %v3224_v53, %v5069_v28 }
 0x6bd   : > { %3347 = vxpose.xlu0.b32.cont [9/16] %v3315_v14, 128  ;;  %v3316_v47 = vadd.f32 %v3216_v30, %v5063_v56  ;;  %v5940_v30 = vld [vmem:[#allocation14_spill] sm:$0xff] }
 0x6c1   : > { %3348 = vxpose.xlu0.b32.cont [10/16] %v3316_v47, 128 }
 0x6c5   : > { %3349 = vxpose.xlu0.b32.cont [11/16] %v3317_v10, 128  ;;  %v5941_v10 = vld [vmem:[#allocation15_spill] sm:$0xff] }
 0x6c7   : > { %v4100_v16 = vpop.f32.mrb[100].mxu1 }
 0x6c8   : > { %v3228_v29 = vpop.f32.mrb[101].mxu1  ;;  %v3237_v56 = vadd.f32 %v4100_v16, %v5727_v3 }
 0x6c9   : > { %v3229_v46 = vadd.f32 %v5727_v3, %v3228_v29  ;;  %v4101_v26 = vpop.f32.mrb[102].mxu1  ;;  %3350 = vxpose.xlu0.b32.cont [12/16] %v3318_v21, 128 }
 0x6ca   : > { %v3231_v59 = vpop.f32.mrb[103].mxu1  ;;  %v3321_v63 = vadd.f32 %v3237_v56, %v5928_v45  ;;  %v3240_v28 = vadd.f32 %v4101_v26, %v5727_v3 }
 0x6cb   : > { %v3319_v40 = vadd.f32 %v3229_v46, %v5077_v1  ;;  %v3232_v55 = vadd.f32 %v5727_v3, %v3231_v59  ;;  %v5942_v59 = vld [vmem:[#allocation16_spill] sm:$0xff] }
 0x6cc   : > { %v3322_v15 = vadd.f32 %v3240_v28, %v5929_v34 }
 0x6cd   : > { %3351 = vxpose.xlu0.b32.cont [13/16] %v3319_v40, 128  ;;  %v3320_v57 = vadd.f32 %v3232_v55, %v5081_v35 }
 0x6d1   : > { %3352 = vxpose.xlu0.b32.cont [14/16] %v3320_v57, 128  ;;  %v5943_v57 = vld [vmem:[#allocation17_spill] sm:$0xff] }
 0x6d5   : > { %3353 = vxpose.xlu0.b32.cont [15/16] %v3321_v63, 128  ;;  %v5944_v63 = vld [vmem:[#allocation18_spill] sm:$0xff] }
 0x6d7   : > { %v4104_v43 = vpop.f32.mrb[104].mxu1 }
 0x6d8   : > { %v3244_v38 = vpop.f32.mrb[105].mxu1  ;;  %v3253_v35 = vadd.f32 %v4104_v43, %v5727_v3 }
 0x6d9   : > { %v3245_v41 = vadd.f32 %v5727_v3, %v3244_v38  ;;  %v4105_v1 = vpop.f32.mrb[106].mxu1  ;;  %3354 = vxpose.xlu0.b32.end [16/16] %v3322_v15, 128  ;;  %v5945_v15 = vld [vmem:[#allocation19_spill] sm:$0xff] }
 0x6da   : > { %v3247_v24 = vpop.f32.mrb[107].mxu1  ;;  %v3325_v51 = vadd.f32 %v3253_v35, %v5932_v52  ;;  %v3256_v4 = vadd.f32 %v4105_v1, %v5727_v3 }
 0x6db   : > { %v3323_v8 = vadd.f32 %v3245_v41, %v5930_v0  ;;  %v3248_v9 = vadd.f32 %v5727_v3, %v3247_v24 }
 0x6dc   : > { %v3326_v19 = vadd.f32 %v3256_v4, %v5933_v33 }
 0x6dd   : > { %3371 = vxpose.xlu1.b32.start [1/16] %v3323_v8, 128  ;;  %v3324_v31 = vadd.f32 %v3248_v9, %v5931_v6 }
 0x6e1   : > { %3372 = vxpose.xlu1.b32.cont [2/16] %v3324_v31, 128 }
 0x6e5   : > { %3373 = vxpose.xlu1.b32.cont [3/16] %v3325_v51, 128 }
 0x6e7   : > { %v4108_v5 = vpop.f32.mrb[108].mxu1 }
 0x6e8   : > { %v3260_v23 = vpop.f32.mrb[109].mxu1  ;;  %v3269_v12 = vadd.f32 %v4108_v5, %v5727_v3 }
 0x6e9   : > { %v3261_v20 = vadd.f32 %v5727_v3, %v3260_v23  ;;  %3374 = vxpose.xlu1.b32.cont [4/16] %v3326_v19, 128  ;;  %v4109_v25 = vpop.f32.mrb[110].mxu1 }
 0x6ea   : > { %v3263_v62 = vpop.f32.mrb[111].mxu1  ;;  %v3329_v32 = vadd.f32 %v3269_v12, %v5936_v18  ;;  %v3272_v58 = vadd.f32 %v4109_v25, %v5727_v3 }
 0x6eb   : > { %v3327_v27 = vadd.f32 %v3261_v20, %v5934_v2  ;;  %v3264_v42 = vadd.f32 %v5727_v3, %v3263_v62 }
 0x6ec   : > { %v3330_v50 = vadd.f32 %v3272_v58, %v5937_v54 }
 0x6ed   : > { %3375 = vxpose.xlu1.b32.cont [5/16] %v3327_v27, 128  ;;  %v3328_v11 = vadd.f32 %v3264_v42, %v5935_v61 }
 0x6f1   : > { %3376 = vxpose.xlu1.b32.cont [6/16] %v3328_v11, 128 }
 0x6f5   : > { %3377 = vxpose.xlu1.b32.cont [7/16] %v3329_v32, 128 }
 0x6f7   : > { %v4112_v36 = vpop.f32.mrb[112].mxu1 }
 0x6f8   : > { %v3276_v39 = vpop.f32.mrb[113].mxu1  ;;  %v3285_v22 = vadd.f32 %v4112_v36, %v5727_v3 }
 0x6f9   : > { %v3277_v49 = vadd.f32 %v5727_v3, %v3276_v39  ;;  %3378 = vxpose.xlu1.b32.cont [8/16] %v3330_v50, 128  ;;  %v4113_v37 = vpop.f32.mrb[114].mxu1 }
 0x6fa   : > { %v3279_v44 = vpop.f32.mrb[115].mxu1  ;;  %v3333_v60 = vadd.f32 %v3285_v22, %v5940_v30  ;;  %v3288_v47 = vadd.f32 %v4113_v37, %v5727_v3 }
 0x6fb   : > { %v3331_v17 = vadd.f32 %v3277_v49, %v5938_v48  ;;  %v3280_v13 = vadd.f32 %v5727_v3, %v3279_v44 }
 0x6fc   : > { %v3334_v53 = vadd.f32 %v3288_v47, %v5941_v10 }
 0x6fd   : > { %3379 = vxpose.xlu1.b32.cont [9/16] %v3331_v17, 128  ;;  %v3332_v14 = vadd.f32 %v3280_v13, %v5939_v7 }
 0x701   : > { %3380 = vxpose.xlu1.b32.cont [10/16] %v3332_v14, 128 }
 0x705   : > { %3381 = vxpose.xlu1.b32.cont [11/16] %v3333_v60, 128 }
 0x707   : > { %v4116_v21 = vpop.f32.mrb[116].mxu1 }
 0x708   : > { %v3292_v16 = vpop.f32.mrb[117].mxu1  ;;  %v3301_v56 = vadd.f32 %v4116_v21, %v5727_v3 }
 0x709   : > { %v3293_v29 = vadd.f32 %v5727_v3, %v3292_v16  ;;  %3382 = vxpose.xlu1.b32.cont [12/16] %v3334_v53, 128  ;;  %v4117_v46 = vpop.f32.mrb[118].mxu1 }
 0x70a   : > { %v3295_v26 = vpop.f32.mrb[119].mxu1  ;;  %v3337_v28 = vadd.f32 %v3301_v56, %v5944_v63  ;;  %v3304_v34 = vadd.f32 %v4117_v46, %v5727_v3 }
 0x70b   : > { %v3335_v40 = vadd.f32 %v3293_v29, %v5942_v59  ;;  %v3296_v55 = vadd.f32 %v5727_v3, %v3295_v26 }
 0x70c   : > { %v3338_v43 = vadd.f32 %v3304_v34, %v5945_v15 }
 0x70d   : > { %3383 = vxpose.xlu1.b32.cont [13/16] %v3335_v40, 128  ;;  %v3336_v45 = vadd.f32 %v3296_v55, %v5943_v57 }
 0x711   : > { %3384 = vxpose.xlu1.b32.cont [14/16] %v3336_v45, 128 }
 0x715   : > { %3385 = vxpose.xlu1.b32.cont [15/16] %v3337_v28, 128 }
 0x719   : > { %3386 = vxpose.xlu1.b32.end [16/16] %v3338_v43, 128 }
 0x71d   : > { %v3355_v38 = vpop.trf.xlu0 }
 0x71e   : > { %3403 = vst [vmem:[%s5797_s30] sm:$0xff] %v3355_v38 }
 0x721   : > { %v3356_v3 = vpop.trf.xlu0 }
 0x722   : > { %3405 = vst [vmem:[%s5797_s30 + $0x10] sm:$0xff] %v3356_v3 }
 0x725   : > { %v3357_v41 = vpop.trf.xlu0 }
 0x726   : > { %3407 = vst [vmem:[%s5797_s30 + $0x20] sm:$0xff] %v3357_v41 }
 0x729   : > { %v3358_v1 = vpop.trf.xlu0 }
 0x72a   : > { %3409 = vst [vmem:[%s5797_s30 + $0x30] sm:$0xff] %v3358_v1 }
 0x72d   : > { %v3359_v24 = vpop.trf.xlu0 }
 0x72e   : > { %3411 = vst [vmem:[%s5797_s30 + $0x40] sm:$0xff] %v3359_v24 }
 0x731   : > { %v3360_v0 = vpop.trf.xlu0 }
 0x732   : > { %3413 = vst [vmem:[%s5797_s30 + $0x50] sm:$0xff] %v3360_v0 }
 0x735   : > { %v3361_v8 = vpop.trf.xlu0 }
 0x736   : > { %3415 = vst [vmem:[%s5797_s30 + $0x60] sm:$0xff] %v3361_v8 }
 0x739   : > { %v3362_v9 = vpop.trf.xlu0 }
 0x73a   : > { %3417 = vst [vmem:[%s5797_s30 + $0x70] sm:$0xff] %v3362_v9 }
 0x73d   : > { %v3363_v35 = vpop.trf.xlu0 }
 0x73e   : > { %3419 = vst [vmem:[%s5797_s30 + $0x80] sm:$0xff] %v3363_v35 }
 0x741   : > { %v3364_v6 = vpop.trf.xlu0 }
 0x742   : > { %3421 = vst [vmem:[%s5797_s30 + $0x90] sm:$0xff] %v3364_v6 }
 0x745   : > { %v3365_v31 = vpop.trf.xlu0 }
 0x746   : > { %3423 = vst [vmem:[%s5797_s30 + $0xa0] sm:$0xff] %v3365_v31 }
 0x749   : > { %v3366_v52 = vpop.trf.xlu0 }
 0x74a   : > { %3425 = vst [vmem:[%s5797_s30 + $0xb0] sm:$0xff] %v3366_v52 }
 0x74d   : > { %v3367_v51 = vpop.trf.xlu0 }
 0x74e   : > { %3427 = vst [vmem:[%s5797_s30 + $0xc0] sm:$0xff] %v3367_v51 }
 0x751   : > { %v3368_v4 = vpop.trf.xlu0 }
 0x752   : > { %3429 = vst [vmem:[%s5797_s30 + $0xd0] sm:$0xff] %v3368_v4 }
 0x755   : > { %v3369_v33 = vpop.trf.xlu0 }
 0x756   : > { %3431 = vst [vmem:[%s5797_s30 + $0xe0] sm:$0xff] %v3369_v33 }
 0x759   : > { %v3370_v19 = vpop.trf.xlu0 }
 0x75a   : > { %3433 = vst [vmem:[%s5797_s30 + $0xf0] sm:$0xff] %v3370_v19 }
 0x75d   : > { %v3387_v5 = vpop.trf.xlu1 }
 0x75e   : > { %3404 = vst [vmem:[%s5797_s30 + $0x8] sm:$0xff] %v3387_v5 }
 0x761   : > { %v3388_v23 = vpop.trf.xlu1 }
 0x762   : > { %3406 = vst [vmem:[%s5797_s30 + $0x18] sm:$0xff] %v3388_v23 }
 0x765   : > { %v3389_v20 = vpop.trf.xlu1 }
 0x766   : > { %3408 = vst [vmem:[%s5797_s30 + $0x28] sm:$0xff] %v3389_v20 }
 0x769   : > { %v3390_v25 = vpop.trf.xlu1 }
 0x76a   : > { %3410 = vst [vmem:[%s5797_s30 + $0x38] sm:$0xff] %v3390_v25 }
 0x76d   : > { %v3391_v62 = vpop.trf.xlu1 }
 0x76e   : > { %3412 = vst [vmem:[%s5797_s30 + $0x48] sm:$0xff] %v3391_v62 }
 0x771   : > { %v3392_v2 = vpop.trf.xlu1 }
 0x772   : > { %3414 = vst [vmem:[%s5797_s30 + $0x58] sm:$0xff] %v3392_v2 }
 0x775   : > { %v3393_v27 = vpop.trf.xlu1 }
 0x776   : > { %3416 = vst [vmem:[%s5797_s30 + $0x68] sm:$0xff] %v3393_v27 }
 0x779   : > { %v3394_v42 = vpop.trf.xlu1 }
 0x77a   : > { %3418 = vst [vmem:[%s5797_s30 + $0x78] sm:$0xff] %v3394_v42 }
 0x77d   : > { %v3395_v12 = vpop.trf.xlu1 }
 0x77e   : > { %3420 = vst [vmem:[%s5797_s30 + $0x88] sm:$0xff] %v3395_v12 }
 0x781   : > { %v3396_v61 = vpop.trf.xlu1 }
 0x782   : > { %3422 = vst [vmem:[%s5797_s30 + $0x98] sm:$0xff] %v3396_v61 }
 0x785   : > { %v3397_v11 = vpop.trf.xlu1 }
 0x786   : > { %3424 = vst [vmem:[%s5797_s30 + $0xa8] sm:$0xff] %v3397_v11 }
 0x789   : > { %v3398_v18 = vpop.trf.xlu1 }
 0x78a   : > { %3426 = vst [vmem:[%s5797_s30 + $0xb8] sm:$0xff] %v3398_v18 }
 0x78d   : > { %v3399_v32 = vpop.trf.xlu1 }
 0x78e   : > { %3428 = vst [vmem:[%s5797_s30 + $0xc8] sm:$0xff] %v3399_v32 }
 0x791   : > { %v3400_v58 = vpop.trf.xlu1 }
 0x792   : > { %3430 = vst [vmem:[%s5797_s30 + $0xd8] sm:$0xff] %v3400_v58 }
 0x795   : > { %v3401_v54 = vpop.trf.xlu1 }
 0x796   : > { %3432 = vst [vmem:[%s5797_s30 + $0xe8] sm:$0xff] %v3401_v54 }
 0x799   : > { %v3402_v50 = vpop.trf.xlu1 }
 0x79a   : > { %3434 = vst [vmem:[%s5797_s30 + $0xf8] sm:$0xff] %v3402_v50 }
 0x79b PF: > { %s22_s23 = sadd.s32 1, %s4572_s23   ;;  %s5946_s21 = smov %s4568_s22 }
 0x79c   : > { %p19_p5 = scmp.ge.s32.totalorder %s22_s23, 4   ;;  %s5947_s22 = smov %s5949_s24 }
 0x79e   :  { %21 = sbr.rel (!%p19_p5) target bundleno = 2 (0x2), region = 107 }

</bundles_post_ra>
